<compile_context>
chip_gen: v7x
topology: tpu7x:2x2x1
jax: 0.10.0
libtpu: 0.0.40
codegen_flags: <defaults>
</compile_context>

<pallas_src>
import functools

import jax
import jax.numpy as jnp
from jax import lax
from jax.experimental import pallas as pl
from jax.experimental.pallas import tpu as pltpu


# ----------------------------------------------------------------------------
# Fused bidirectional LSTM layer — single program, both directions interleaved.
# ----------------------------------------------------------------------------
def _bilstm_kernel(x_ref, wih_ref, whh_ref, b_ref, out_ref, *, batch):
    # x_ref:   (T*B, Din) f32   time-major, flattened (t outer, b inner)
    # wih_ref: (Din, 8H)  bf16  columns = [fwd i,f,o,g | bwd i,f,o,g]
    # whh_ref: (2H, 8H)   bf16  block-diagonal: rows 0:H -> cols 0:4H (fwd),
    #                           rows H:2H -> cols 4H:8H (bwd)
    # b_ref:   (1, 8H)    f32   b_ih + b_hh pre-summed, same column layout
    # out_ref: (T*B, 2H)  f32   per row: [h_fwd(t) | h_bwd(t)]  (PyTorch layout)
    TB, _ = x_ref.shape
    G8 = wih_ref.shape[1]
    H = G8 // 8
    G = 4 * H
    B = batch
    T = TB // B

    # Hoisted input projection for BOTH directions: one (T*B, Din) x (Din, 8H)
    # matmul (N=256) instead of 2*T tiny matmuls inside the recurrence.
    xp = jnp.dot(x_ref[...].astype(jnp.bfloat16), wih_ref[...],
                 preferred_element_type=jnp.float32) + b_ref[...]        # (T*B, 8H)
    whh = whh_ref[...]                                                   # (2H, 8H)

    h_f = jnp.zeros((B, H), jnp.float32)
    h_b = jnp.zeros((B, H), jnp.float32)
    c_f = jnp.zeros((B, H), jnp.float32)
    c_b = jnp.zeros((B, H), jnp.float32)
    out_f = [None] * T
    out_b = [None] * T

    # Fully unrolled recurrence (static slices, state stays in vregs).
    # TODO(synk): for long sequences switch to lax.fori_loop with partial
    # unroll and a chunked (bf16) xp scratch to bound vreg/VMEM pressure.
    for i in range(T):
        tf = i              # forward walks t = 0 .. T-1
        tb = T - 1 - i      # backward walks t = T-1 .. 0
        hcat = jnp.concatenate([h_f, h_b], axis=-1).astype(jnp.bfloat16)  # (B, 2H)
        # One fused block-diagonal matmul drives both directions' gates.
        g_hh = jnp.dot(hcat, whh, preferred_element_type=jnp.float32)     # (B, 8H)
        gf = g_hh[:, :G] + xp[tf * B:(tf + 1) * B, :G]                    # (B, 4H)
        gb = g_hh[:, G:] + xp[tb * B:(tb + 1) * B, G:]                    # (B, 4H)
        # Gate order within a direction is [i, f, o, g]: one contiguous
        # sigmoid over [:, :3H] per direction, tanh over [:, 3H:].
        sf = jax.nn.sigmoid(gf[:, :3 * H])
        sb = jax.nn.sigmoid(gb[:, :3 * H])
        c_f = sf[:, H:2 * H] * c_f + sf[:, :H] * jnp.tanh(gf[:, 3 * H:])
        c_b = sb[:, H:2 * H] * c_b + sb[:, :H] * jnp.tanh(gb[:, 3 * H:])
        h_f = sf[:, 2 * H:] * jnp.tanh(c_f)
        h_b = sb[:, 2 * H:] * jnp.tanh(c_b)
        out_f[tf] = h_f
        out_b[tb] = h_b

    # Assemble the full (T*B, 2H) output in registers and store it once.
    rows = [jnp.concatenate([out_f[t], out_b[t]], axis=-1) for t in range(T)]
    out_ref[...] = jnp.concatenate(rows, axis=0)


def bilstm_layer(x_flat, wih, whh, b, *, batch):
    # x_flat: (T*B, Din) time-major flat  ->  (T*B, 2H) time-major flat
    TB, Din = x_flat.shape
    H2, G8 = whh.shape            # (2H, 8H)
    H = H2 // 2
    kern = functools.partial(_bilstm_kernel, batch=batch)
    return pl.pallas_call(
        kern,
        out_shape=jax.ShapeDtypeStruct((TB, 2 * H), jnp.float32),
        grid=(1,),
        in_specs=[
            pl.BlockSpec((TB, Din), lambda i: (0, 0)),
            pl.BlockSpec((Din, G8), lambda i: (0, 0)),
            pl.BlockSpec((H2, G8), lambda i: (0, 0)),
            pl.BlockSpec((1, G8), lambda i: (0, 0)),
        ],
        out_specs=pl.BlockSpec((TB, 2 * H), lambda i: (0, 0)),
        compiler_params=pltpu.CompilerParams(dimension_semantics=("arbitrary",)),
    )(x_flat, wih, whh, b)


# ----------------------------------------------------------------------------
# TransformerEncoderLayer (post-norm, ReLU, batch_first) — whole batch in one
# program; matmuls on flattened (B*T, E) rows.
# ----------------------------------------------------------------------------
def _encoder_layer_kernel(x_ref, wqkv_ref, bqkv_ref, wo_ref, bo_ref,
                          w1_ref, b1_ref, w2_ref, b2_ref,
                          g1_ref, bt1_ref, g2_ref, bt2_ref, out_ref,
                          *, nheads, batch):
    M, E = x_ref.shape            # M = B*T, batch-major flat (b outer, t inner)
    T = M // batch
    hd = E // nheads
    x = x_ref[...]                                   # (M, E) f32
    xb = x.astype(jnp.bfloat16)

    # Fused QKV projection on all B*T rows at once: (M, E) x (E, 3E).
    qkv = jnp.dot(xb, wqkv_ref[...], preferred_element_type=jnp.float32) + bqkv_ref[...]

    scale = 1.0 / (hd ** 0.5)
    ctx_blocks = []
    for bi in range(batch):                          # tiny static loop (B=2)
        rows = qkv[bi * T:(bi + 1) * T]              # (T, 3E) static slice
        q = rows[:, 0 * E:1 * E].reshape(T, nheads, hd)
        k = rows[:, 1 * E:2 * E].reshape(T, nheads, hd)
        v = rows[:, 2 * E:3 * E].reshape(T, nheads, hd)
        # Batched-head attention on the native (T, heads, hd) layout
        # (no explicit (1,0,2) transposes).
        s = jnp.einsum('qhd,khd->hqk',
                       q.astype(jnp.bfloat16), k.astype(jnp.bfloat16),
                       preferred_element_type=jnp.float32) * scale
        s = s - jnp.max(s, axis=-1, keepdims=True)
        p = jnp.exp(s)
        p = p * pl.reciprocal(jnp.sum(p, axis=-1, keepdims=True), approx=True)
        ctx = jnp.einsum('hqk,khd->qhd',
                         p.astype(jnp.bfloat16), v.astype(jnp.bfloat16),
                         preferred_element_type=jnp.float32)             # (T, h, hd)
        ctx_blocks.append(ctx.reshape(T, E))
    ctx_all = jnp.concatenate(ctx_blocks, axis=0)                         # (M, E)

    attn = jnp.dot(ctx_all.astype(jnp.bfloat16), wo_ref[...],
                   preferred_element_type=jnp.float32) + bo_ref[...]

    def layernorm(y, g, bt):
        mu = jnp.mean(y, axis=-1, keepdims=True)
        var = jnp.mean((y - mu) ** 2, axis=-1, keepdims=True)
        return (y - mu) * lax.rsqrt(var + 1e-5) * g + bt

    # TODO(synk): dropout (p=0.2) is inference-mode identity here.
    y = layernorm(x + attn, g1_ref[...], bt1_ref[...])

    # Feed-forward (ReLU). FF width is zero-padded to a lane-dense 128 => exact.
    ff = jnp.dot(y.astype(jnp.bfloat16), w1_ref[...],
                 preferred_element_type=jnp.float32) + b1_ref[...]
    ff = jnp.maximum(ff, 0.0)
    ff = jnp.dot(ff.astype(jnp.bfloat16), w2_ref[...],
                 preferred_element_type=jnp.float32) + b2_ref[...]

    out_ref[...] = layernorm(y + ff, g2_ref[...], bt2_ref[...])


def transformer_layer_flat(x_flat, p, *, nheads, batch):
    # x_flat: (B*T, E) batch-major flat -> (B*T, E)
    M, E = x_flat.shape
    FFP = p['w1'].shape[1]
    kern = functools.partial(_encoder_layer_kernel, nheads=nheads, batch=batch)

    def full(shape):
        nd = len(shape)
        return pl.BlockSpec(shape, lambda i, _nd=nd: (0,) * _nd)

    # NOTE: with grid=(1,) the replicated-weight double-buffering is a non-issue
    # at these sizes; for large E/FFP on v7x one would single-buffer them.
    return pl.pallas_call(
        kern,
        out_shape=jax.ShapeDtypeStruct((M, E), jnp.float32),
        grid=(1,),
        in_specs=[
            full((M, E)),
            full((E, 3 * E)), full((1, 3 * E)),
            full((E, E)), full((1, E)),
            full((E, FFP)), full((1, FFP)),
            full((FFP, E)), full((1, E)),
            full((1, E)), full((1, E)), full((1, E)), full((1, E)),
        ],
        out_specs=full((M, E)),
        compiler_params=pltpu.CompilerParams(dimension_semantics=("arbitrary",)),
    )(x_flat, p['wqkv'], p['bqkv'], p['wo'], p['bo'],
      p['w1'], p['b1'], p['w2'], p['b2'],
      p['g1'], p['bt1'], p['g2'], p['bt2'])


# ----------------------------------------------------------------------------
# Parameter initialization (deterministic, synthetic).
# ----------------------------------------------------------------------------
class _KeyGen:
    def __init__(self, key):
        self.key = key

    def __call__(self):
        self.key, sub = jax.random.split(self.key)
        return sub


def init_params(key, ipt_dim, hid_dim, lr_num, nheads):
    kg = _KeyGen(key)
    H = hid_dim
    E = 2 * H
    G = 4 * H
    G8 = 8 * H
    ff = hid_dim
    FFP = ((ff + 127) // 128) * 128            # lane-dense (zero-padded) FF width
    params = {'nheads': nheads, 'lstm': [], 'tr': []}

    klstm = 1.0 / float(H) ** 0.5
    for layer in range(lr_num):
        din = ipt_dim if layer == 0 else E
        # Fused gate axis layout: [fwd i,f,o,g | bwd i,f,o,g].
        # NOTE: gate order is reordered from PyTorch's i,f,g,o — real
        # checkpoints must permute gate columns accordingly.
        wih = jax.random.uniform(kg(), (din, G8), jnp.float32, -klstm, klstm)
        whh_f = jax.random.uniform(kg(), (H, G), jnp.float32, -klstm, klstm)
        whh_b = jax.random.uniform(kg(), (H, G), jnp.float32, -klstm, klstm)
        whh = jnp.zeros((E, G8), jnp.float32)
        whh = whh.at[:H, :G].set(whh_f).at[H:, G:].set(whh_b)   # block-diagonal
        b = (jax.random.uniform(kg(), (1, G8), jnp.float32, -klstm, klstm) +
             jax.random.uniform(kg(), (1, G8), jnp.float32, -klstm, klstm))
        params['lstm'].append({
            'wih': wih.astype(jnp.bfloat16),
            'whh': whh.astype(jnp.bfloat16),
            'b': b,
        })

    ke = 1.0 / float(E) ** 0.5
    kf = 1.0 / float(ff) ** 0.5
    for _ in range(lr_num):
        # Padded FF weights: padding columns/rows are zero => numerically exact.
        w1 = jnp.zeros((E, FFP), jnp.float32).at[:, :ff].set(
            jax.random.uniform(kg(), (E, ff), jnp.float32, -ke, ke))
        b1 = jnp.zeros((1, FFP), jnp.float32).at[:, :ff].set(
            jax.random.uniform(kg(), (1, ff), jnp.float32, -ke, ke))
        w2 = jnp.zeros((FFP, E), jnp.float32).at[:ff, :].set(
            jax.random.uniform(kg(), (ff, E), jnp.float32, -kf, kf))
        tp = {
            # weights stored pre-transposed for right-multiplication (in, out)
            'wqkv': jax.random.uniform(kg(), (E, 3 * E), jnp.float32, -ke, ke).astype(jnp.bfloat16),
            'bqkv': jax.random.uniform(kg(), (1, 3 * E), jnp.float32, -ke, ke),
            'wo': jax.random.uniform(kg(), (E, E), jnp.float32, -ke, ke).astype(jnp.bfloat16),
            'bo': jax.random.uniform(kg(), (1, E), jnp.float32, -ke, ke),
            'w1': w1.astype(jnp.bfloat16),
            'b1': b1,
            'w2': w2.astype(jnp.bfloat16),
            'b2': jax.random.uniform(kg(), (1, E), jnp.float32, -kf, kf),
            'g1': jnp.ones((1, E), jnp.float32),
            'bt1': jnp.zeros((1, E), jnp.float32),
            'g2': jnp.ones((1, E), jnp.float32),
            'bt2': jnp.zeros((1, E), jnp.float32),
        }
        params['tr'].append(tp)
    return params


# ----------------------------------------------------------------------------
# Full forward pass: BiLSTM stack -> TransformerEncoder stack -> last timestep.
# ----------------------------------------------------------------------------
def bilstm_att_forward(x, params):
    # x: (B, T, ipt_dim), batch-first like the PyTorch module
    B, T, Din = x.shape
    # time-major flat (t outer, b inner) for the whole LSTM stack
    h = jnp.transpose(x, (1, 0, 2)).reshape(T * B, Din)
    for lp in params['lstm']:
        h = bilstm_layer(h, lp['wih'], lp['whh'], lp['b'], batch=B)   # (T*B, 2H)
    E = h.shape[-1]
    # one tiny relayout between stages: time-major flat -> batch-major flat
    h = jnp.transpose(h.reshape(T, B, E), (1, 0, 2)).reshape(B * T, E)
    for tp in params['tr']:
        h = transformer_layer_flat(h, tp, nheads=params['nheads'], batch=B)
    # take the last timestep of every batch element (free reshape + slice)
    return h.reshape(B, T, E)[:, -1, :]                               # (B, 2H)


if __name__ == "__main__":
    B, T = 2, 8
    ipt_dim, hid_dim, lr_num, nheads = 16, 32, 2, 4

    key = jax.random.PRNGKey(0)
    k_x, k_p = jax.random.split(key)
    x = jax.random.normal(k_x, (B, T, ipt_dim), jnp.float32)
    params = init_params(k_p, ipt_dim, hid_dim, lr_num, nheads)

    fwd = jax.jit(lambda xx: bilstm_att_forward(xx, params))
    out = fwd(x)
    out = jax.block_until_ready(out)

    assert out.shape == (B, 2 * hid_dim), out.shape
    assert out.dtype == jnp.float32
    print("KERNEL_OK")
</pallas_src>

<mosaic_0001>
module attributes {stable_mosaic.version = 11 : i64} {
  func.func @_bilstm_kernel(%arg0: i32, %arg1: memref<16x16xf32, #tpu.memory_space<vmem>>, %arg2: memref<16x256xbf16, #tpu.memory_space<vmem>>, %arg3: memref<64x256xbf16, #tpu.memory_space<vmem>>, %arg4: memref<1x256xf32, #tpu.memory_space<vmem>>, %arg5: memref<16x64xf32, #tpu.memory_space<vmem>>) attributes {dimension_semantics = [#tpu.dimension_semantics<arbitrary>], iteration_bounds = array<i64: 1>, scalar_prefetch = 0 : i64, scratch_operands = 0 : i64, tpu.core_type = #tpu.core_type<tc>, window_params = [{pipeline_mode = #tpu.pipeline_mode<synchronous>, transform_indices = @transform_0, window_bounds = array<i64: 16, 16>}, {pipeline_mode = #tpu.pipeline_mode<synchronous>, transform_indices = @transform_1, window_bounds = array<i64: 16, 256>}, {pipeline_mode = #tpu.pipeline_mode<synchronous>, transform_indices = @transform_2, window_bounds = array<i64: 64, 256>}, {pipeline_mode = #tpu.pipeline_mode<synchronous>, transform_indices = @transform_3, window_bounds = array<i64: 1, 256>}, {pipeline_mode = #tpu.pipeline_mode<synchronous>, transform_indices = @transform_4, window_bounds = array<i64: 16, 64>}]} {
    %c0 = arith.constant 0 : index
    %c0_0 = arith.constant 0 : index
    %0 = vector.load %arg1[%c0, %c0_0] : memref<16x16xf32, #tpu.memory_space<vmem>>, vector<16x16xf32>
    %1 = arith.truncf %0 : vector<16x16xf32> to vector<16x16xbf16>
    %c0_1 = arith.constant 0 : index
    %c0_2 = arith.constant 0 : index
    %2 = vector.load %arg2[%c0_1, %c0_2] : memref<16x256xbf16, #tpu.memory_space<vmem>>, vector<16x256xbf16>
    %cst = arith.constant dense<0.000000e+00> : vector<16x256xf32>
    %3 = tpu.matmul %1, %2, %cst {dimension_numbers = #tpu.dot_dimension_numbers<[1], [0], [0], [1], [0, 0, 1, 1], [], []>} : vector<16x16xbf16>, vector<16x256xbf16>, vector<16x256xf32> -> vector<16x256xf32>
    %c0_3 = arith.constant 0 : index
    %c0_4 = arith.constant 0 : index
    %4 = vector.load %arg4[%c0_3, %c0_4] : memref<1x256xf32, #tpu.memory_space<vmem>>, vector<1x256xf32>
    %5 = vector.broadcast %4 : vector<1x256xf32> to vector<16x256xf32>
    %6 = arith.addf %3, %5 : vector<16x256xf32>
    %c0_5 = arith.constant 0 : index
    %c0_6 = arith.constant 0 : index
    %7 = vector.load %arg3[%c0_5, %c0_6] : memref<64x256xbf16, #tpu.memory_space<vmem>>, vector<64x256xbf16>
    %cst_7 = arith.constant 0.000000e+00 : f32
    %8 = vector.broadcast %cst_7 : f32 to vector<2x32xf32>
    %cst_8 = arith.constant 0.000000e+00 : f32
    %9 = vector.broadcast %cst_8 : f32 to vector<2x32xf32>
    %cst_9 = arith.constant 0.000000e+00 : f32
    %10 = vector.broadcast %cst_9 : f32 to vector<2x32xf32>
    %cst_10 = arith.constant 0.000000e+00 : f32
    %11 = vector.broadcast %cst_10 : f32 to vector<2x32xf32>
    %12 = tpu.concatenate %8, %9 in 1 : vector<2x32xf32>, vector<2x32xf32> -> vector<2x64xf32>
    %13 = arith.truncf %12 : vector<2x64xf32> to vector<2x64xbf16>
    %cst_11 = arith.constant dense<0.000000e+00> : vector<2x256xf32>
    %14 = tpu.matmul %13, %7, %cst_11 {dimension_numbers = #tpu.dot_dimension_numbers<[1], [0], [0], [1], [0, 0, 1, 1], [], []>} : vector<2x64xbf16>, vector<64x256xbf16>, vector<2x256xf32> -> vector<2x256xf32>
    %15 = vector.extract_strided_slice %14 {offsets = [0, 0], sizes = [2, 128], strides = [1, 1]} : vector<2x256xf32> to vector<2x128xf32>
    %16 = vector.extract_strided_slice %6 {offsets = [0, 0], sizes = [2, 128], strides = [1, 1]} : vector<16x256xf32> to vector<2x128xf32>
    %17 = arith.addf %15, %16 : vector<2x128xf32>
    %18 = vector.extract_strided_slice %14 {offsets = [0, 128], sizes = [2, 128], strides = [1, 1]} : vector<2x256xf32> to vector<2x128xf32>
    %19 = vector.extract_strided_slice %6 {offsets = [14, 128], sizes = [2, 128], strides = [1, 1]} : vector<16x256xf32> to vector<2x128xf32>
    %20 = arith.addf %18, %19 : vector<2x128xf32>
    %21 = vector.extract_strided_slice %17 {offsets = [0, 0], sizes = [2, 96], strides = [1, 1]} : vector<2x128xf32> to vector<2x96xf32>
    %22 = arith.negf %21 : vector<2x96xf32>
    %23 = math.exp %22 : vector<2x96xf32>
    %cst_12 = arith.constant 1.000000e+00 : f32
    %24 = vector.broadcast %cst_12 : f32 to vector<2x96xf32>
    %25 = arith.addf %24, %23 : vector<2x96xf32>
    %26 = arith.divf %24, %25 : vector<2x96xf32>
    %27 = vector.extract_strided_slice %20 {offsets = [0, 0], sizes = [2, 96], strides = [1, 1]} : vector<2x128xf32> to vector<2x96xf32>
    %28 = arith.negf %27 : vector<2x96xf32>
    %29 = math.exp %28 : vector<2x96xf32>
    %cst_13 = arith.constant 1.000000e+00 : f32
    %30 = vector.broadcast %cst_13 : f32 to vector<2x96xf32>
    %31 = arith.addf %30, %29 : vector<2x96xf32>
    %32 = arith.divf %30, %31 : vector<2x96xf32>
    %33 = vector.extract_strided_slice %26 {offsets = [0, 32], sizes = [2, 32], strides = [1, 1]} : vector<2x96xf32> to vector<2x32xf32>
    %34 = arith.mulf %33, %10 : vector<2x32xf32>
    %35 = vector.extract_strided_slice %26 {offsets = [0, 0], sizes = [2, 32], strides = [1, 1]} : vector<2x96xf32> to vector<2x32xf32>
    %36 = vector.extract_strided_slice %17 {offsets = [0, 96], sizes = [2, 32], strides = [1, 1]} : vector<2x128xf32> to vector<2x32xf32>
    %37 = math.tanh %36 : vector<2x32xf32>
    %38 = arith.mulf %35, %37 : vector<2x32xf32>
    %39 = arith.addf %34, %38 : vector<2x32xf32>
    %40 = vector.extract_strided_slice %32 {offsets = [0, 32], sizes = [2, 32], strides = [1, 1]} : vector<2x96xf32> to vector<2x32xf32>
    %41 = arith.mulf %40, %11 : vector<2x32xf32>
    %42 = vector.extract_strided_slice %32 {offsets = [0, 0], sizes = [2, 32], strides = [1, 1]} : vector<2x96xf32> to vector<2x32xf32>
    %43 = vector.extract_strided_slice %20 {offsets = [0, 96], sizes = [2, 32], strides = [1, 1]} : vector<2x128xf32> to vector<2x32xf32>
    %44 = math.tanh %43 : vector<2x32xf32>
    %45 = arith.mulf %42, %44 : vector<2x32xf32>
    %46 = arith.addf %41, %45 : vector<2x32xf32>
    %47 = vector.extract_strided_slice %26 {offsets = [0, 64], sizes = [2, 32], strides = [1, 1]} : vector<2x96xf32> to vector<2x32xf32>
    %48 = math.tanh %39 : vector<2x32xf32>
    %49 = arith.mulf %47, %48 : vector<2x32xf32>
    %50 = vector.extract_strided_slice %32 {offsets = [0, 64], sizes = [2, 32], strides = [1, 1]} : vector<2x96xf32> to vector<2x32xf32>
    %51 = math.tanh %46 : vector<2x32xf32>
    %52 = arith.mulf %50, %51 : vector<2x32xf32>
    %53 = tpu.concatenate %49, %52 in 1 : vector<2x32xf32>, vector<2x32xf32> -> vector<2x64xf32>
    %54 = arith.truncf %53 : vector<2x64xf32> to vector<2x64xbf16>
    %cst_14 = arith.constant dense<0.000000e+00> : vector<2x256xf32>
    %55 = tpu.matmul %54, %7, %cst_14 {dimension_numbers = #tpu.dot_dimension_numbers<[1], [0], [0], [1], [0, 0, 1, 1], [], []>} : vector<2x64xbf16>, vector<64x256xbf16>, vector<2x256xf32> -> vector<2x256xf32>
    %56 = vector.extract_strided_slice %55 {offsets = [0, 0], sizes = [2, 128], strides = [1, 1]} : vector<2x256xf32> to vector<2x128xf32>
    %57 = vector.extract_strided_slice %6 {offsets = [2, 0], sizes = [2, 128], strides = [1, 1]} : vector<16x256xf32> to vector<2x128xf32>
    %58 = arith.addf %56, %57 : vector<2x128xf32>
    %59 = vector.extract_strided_slice %55 {offsets = [0, 128], sizes = [2, 128], strides = [1, 1]} : vector<2x256xf32> to vector<2x128xf32>
    %60 = vector.extract_strided_slice %6 {offsets = [12, 128], sizes = [2, 128], strides = [1, 1]} : vector<16x256xf32> to vector<2x128xf32>
    %61 = arith.addf %59, %60 : vector<2x128xf32>
    %62 = vector.extract_strided_slice %58 {offsets = [0, 0], sizes = [2, 96], strides = [1, 1]} : vector<2x128xf32> to vector<2x96xf32>
    %63 = arith.negf %62 : vector<2x96xf32>
    %64 = math.exp %63 : vector<2x96xf32>
    %cst_15 = arith.constant 1.000000e+00 : f32
    %65 = vector.broadcast %cst_15 : f32 to vector<2x96xf32>
    %66 = arith.addf %65, %64 : vector<2x96xf32>
    %67 = arith.divf %65, %66 : vector<2x96xf32>
    %68 = vector.extract_strided_slice %61 {offsets = [0, 0], sizes = [2, 96], strides = [1, 1]} : vector<2x128xf32> to vector<2x96xf32>
    %69 = arith.negf %68 : vector<2x96xf32>
    %70 = math.exp %69 : vector<2x96xf32>
    %cst_16 = arith.constant 1.000000e+00 : f32
    %71 = vector.broadcast %cst_16 : f32 to vector<2x96xf32>
    %72 = arith.addf %71, %70 : vector<2x96xf32>
    %73 = arith.divf %71, %72 : vector<2x96xf32>
    %74 = vector.extract_strided_slice %67 {offsets = [0, 32], sizes = [2, 32], strides = [1, 1]} : vector<2x96xf32> to vector<2x32xf32>
    %75 = arith.mulf %74, %39 : vector<2x32xf32>
    %76 = vector.extract_strided_slice %67 {offsets = [0, 0], sizes = [2, 32], strides = [1, 1]} : vector<2x96xf32> to vector<2x32xf32>
    %77 = vector.extract_strided_slice %58 {offsets = [0, 96], sizes = [2, 32], strides = [1, 1]} : vector<2x128xf32> to vector<2x32xf32>
    %78 = math.tanh %77 : vector<2x32xf32>
    %79 = arith.mulf %76, %78 : vector<2x32xf32>
    %80 = arith.addf %75, %79 : vector<2x32xf32>
    %81 = vector.extract_strided_slice %73 {offsets = [0, 32], sizes = [2, 32], strides = [1, 1]} : vector<2x96xf32> to vector<2x32xf32>
    %82 = arith.mulf %81, %46 : vector<2x32xf32>
    %83 = vector.extract_strided_slice %73 {offsets = [0, 0], sizes = [2, 32], strides = [1, 1]} : vector<2x96xf32> to vector<2x32xf32>
    %84 = vector.extract_strided_slice %61 {offsets = [0, 96], sizes = [2, 32], strides = [1, 1]} : vector<2x128xf32> to vector<2x32xf32>
    %85 = math.tanh %84 : vector<2x32xf32>
    %86 = arith.mulf %83, %85 : vector<2x32xf32>
    %87 = arith.addf %82, %86 : vector<2x32xf32>
    %88 = vector.extract_strided_slice %67 {offsets = [0, 64], sizes = [2, 32], strides = [1, 1]} : vector<2x96xf32> to vector<2x32xf32>
    %89 = math.tanh %80 : vector<2x32xf32>
    %90 = arith.mulf %88, %89 : vector<2x32xf32>
    %91 = vector.extract_strided_slice %73 {offsets = [0, 64], sizes = [2, 32], strides = [1, 1]} : vector<2x96xf32> to vector<2x32xf32>
    %92 = math.tanh %87 : vector<2x32xf32>
    %93 = arith.mulf %91, %92 : vector<2x32xf32>
    %94 = tpu.concatenate %90, %93 in 1 : vector<2x32xf32>, vector<2x32xf32> -> vector<2x64xf32>
    %95 = arith.truncf %94 : vector<2x64xf32> to vector<2x64xbf16>
    %cst_17 = arith.constant dense<0.000000e+00> : vector<2x256xf32>
    %96 = tpu.matmul %95, %7, %cst_17 {dimension_numbers = #tpu.dot_dimension_numbers<[1], [0], [0], [1], [0, 0, 1, 1], [], []>} : vector<2x64xbf16>, vector<64x256xbf16>, vector<2x256xf32> -> vector<2x256xf32>
    %97 = vector.extract_strided_slice %96 {offsets = [0, 0], sizes = [2, 128], strides = [1, 1]} : vector<2x256xf32> to vector<2x128xf32>
    %98 = vector.extract_strided_slice %6 {offsets = [4, 0], sizes = [2, 128], strides = [1, 1]} : vector<16x256xf32> to vector<2x128xf32>
    %99 = arith.addf %97, %98 : vector<2x128xf32>
    %100 = vector.extract_strided_slice %96 {offsets = [0, 128], sizes = [2, 128], strides = [1, 1]} : vector<2x256xf32> to vector<2x128xf32>
    %101 = vector.extract_strided_slice %6 {offsets = [10, 128], sizes = [2, 128], strides = [1, 1]} : vector<16x256xf32> to vector<2x128xf32>
    %102 = arith.addf %100, %101 : vector<2x128xf32>
    %103 = vector.extract_strided_slice %99 {offsets = [0, 0], sizes = [2, 96], strides = [1, 1]} : vector<2x128xf32> to vector<2x96xf32>
    %104 = arith.negf %103 : vector<2x96xf32>
    %105 = math.exp %104 : vector<2x96xf32>
    %cst_18 = arith.constant 1.000000e+00 : f32
    %106 = vector.broadcast %cst_18 : f32 to vector<2x96xf32>
    %107 = arith.addf %106, %105 : vector<2x96xf32>
    %108 = arith.divf %106, %107 : vector<2x96xf32>
    %109 = vector.extract_strided_slice %102 {offsets = [0, 0], sizes = [2, 96], strides = [1, 1]} : vector<2x128xf32> to vector<2x96xf32>
    %110 = arith.negf %109 : vector<2x96xf32>
    %111 = math.exp %110 : vector<2x96xf32>
    %cst_19 = arith.constant 1.000000e+00 : f32
    %112 = vector.broadcast %cst_19 : f32 to vector<2x96xf32>
    %113 = arith.addf %112, %111 : vector<2x96xf32>
    %114 = arith.divf %112, %113 : vector<2x96xf32>
    %115 = vector.extract_strided_slice %108 {offsets = [0, 32], sizes = [2, 32], strides = [1, 1]} : vector<2x96xf32> to vector<2x32xf32>
    %116 = arith.mulf %115, %80 : vector<2x32xf32>
    %117 = vector.extract_strided_slice %108 {offsets = [0, 0], sizes = [2, 32], strides = [1, 1]} : vector<2x96xf32> to vector<2x32xf32>
    %118 = vector.extract_strided_slice %99 {offsets = [0, 96], sizes = [2, 32], strides = [1, 1]} : vector<2x128xf32> to vector<2x32xf32>
    %119 = math.tanh %118 : vector<2x32xf32>
    %120 = arith.mulf %117, %119 : vector<2x32xf32>
    %121 = arith.addf %116, %120 : vector<2x32xf32>
    %122 = vector.extract_strided_slice %114 {offsets = [0, 32], sizes = [2, 32], strides = [1, 1]} : vector<2x96xf32> to vector<2x32xf32>
    %123 = arith.mulf %122, %87 : vector<2x32xf32>
    %124 = vector.extract_strided_slice %114 {offsets = [0, 0], sizes = [2, 32], strides = [1, 1]} : vector<2x96xf32> to vector<2x32xf32>
    %125 = vector.extract_strided_slice %102 {offsets = [0, 96], sizes = [2, 32], strides = [1, 1]} : vector<2x128xf32> to vector<2x32xf32>
    %126 = math.tanh %125 : vector<2x32xf32>
    %127 = arith.mulf %124, %126 : vector<2x32xf32>
    %128 = arith.addf %123, %127 : vector<2x32xf32>
    %129 = vector.extract_strided_slice %108 {offsets = [0, 64], sizes = [2, 32], strides = [1, 1]} : vector<2x96xf32> to vector<2x32xf32>
    %130 = math.tanh %121 : vector<2x32xf32>
    %131 = arith.mulf %129, %130 : vector<2x32xf32>
    %132 = vector.extract_strided_slice %114 {offsets = [0, 64], sizes = [2, 32], strides = [1, 1]} : vector<2x96xf32> to vector<2x32xf32>
    %133 = math.tanh %128 : vector<2x32xf32>
    %134 = arith.mulf %132, %133 : vector<2x32xf32>
    %135 = tpu.concatenate %131, %134 in 1 : vector<2x32xf32>, vector<2x32xf32> -> vector<2x64xf32>
    %136 = arith.truncf %135 : vector<2x64xf32> to vector<2x64xbf16>
    %cst_20 = arith.constant dense<0.000000e+00> : vector<2x256xf32>
    %137 = tpu.matmul %136, %7, %cst_20 {dimension_numbers = #tpu.dot_dimension_numbers<[1], [0], [0], [1], [0, 0, 1, 1], [], []>} : vector<2x64xbf16>, vector<64x256xbf16>, vector<2x256xf32> -> vector<2x256xf32>
    %138 = vector.extract_strided_slice %137 {offsets = [0, 0], sizes = [2, 128], strides = [1, 1]} : vector<2x256xf32> to vector<2x128xf32>
    %139 = vector.extract_strided_slice %6 {offsets = [6, 0], sizes = [2, 128], strides = [1, 1]} : vector<16x256xf32> to vector<2x128xf32>
    %140 = arith.addf %138, %139 : vector<2x128xf32>
    %141 = vector.extract_strided_slice %137 {offsets = [0, 128], sizes = [2, 128], strides = [1, 1]} : vector<2x256xf32> to vector<2x128xf32>
    %142 = vector.extract_strided_slice %6 {offsets = [8, 128], sizes = [2, 128], strides = [1, 1]} : vector<16x256xf32> to vector<2x128xf32>
    %143 = arith.addf %141, %142 : vector<2x128xf32>
    %144 = vector.extract_strided_slice %140 {offsets = [0, 0], sizes = [2, 96], strides = [1, 1]} : vector<2x128xf32> to vector<2x96xf32>
    %145 = arith.negf %144 : vector<2x96xf32>
    %146 = math.exp %145 : vector<2x96xf32>
    %cst_21 = arith.constant 1.000000e+00 : f32
    %147 = vector.broadcast %cst_21 : f32 to vector<2x96xf32>
    %148 = arith.addf %147, %146 : vector<2x96xf32>
    %149 = arith.divf %147, %148 : vector<2x96xf32>
    %150 = vector.extract_strided_slice %143 {offsets = [0, 0], sizes = [2, 96], strides = [1, 1]} : vector<2x128xf32> to vector<2x96xf32>
    %151 = arith.negf %150 : vector<2x96xf32>
    %152 = math.exp %151 : vector<2x96xf32>
    %cst_22 = arith.constant 1.000000e+00 : f32
    %153 = vector.broadcast %cst_22 : f32 to vector<2x96xf32>
    %154 = arith.addf %153, %152 : vector<2x96xf32>
    %155 = arith.divf %153, %154 : vector<2x96xf32>
    %156 = vector.extract_strided_slice %149 {offsets = [0, 32], sizes = [2, 32], strides = [1, 1]} : vector<2x96xf32> to vector<2x32xf32>
    %157 = arith.mulf %156, %121 : vector<2x32xf32>
    %158 = vector.extract_strided_slice %149 {offsets = [0, 0], sizes = [2, 32], strides = [1, 1]} : vector<2x96xf32> to vector<2x32xf32>
    %159 = vector.extract_strided_slice %140 {offsets = [0, 96], sizes = [2, 32], strides = [1, 1]} : vector<2x128xf32> to vector<2x32xf32>
    %160 = math.tanh %159 : vector<2x32xf32>
    %161 = arith.mulf %158, %160 : vector<2x32xf32>
    %162 = arith.addf %157, %161 : vector<2x32xf32>
    %163 = vector.extract_strided_slice %155 {offsets = [0, 32], sizes = [2, 32], strides = [1, 1]} : vector<2x96xf32> to vector<2x32xf32>
    %164 = arith.mulf %163, %128 : vector<2x32xf32>
    %165 = vector.extract_strided_slice %155 {offsets = [0, 0], sizes = [2, 32], strides = [1, 1]} : vector<2x96xf32> to vector<2x32xf32>
    %166 = vector.extract_strided_slice %143 {offsets = [0, 96], sizes = [2, 32], strides = [1, 1]} : vector<2x128xf32> to vector<2x32xf32>
    %167 = math.tanh %166 : vector<2x32xf32>
    %168 = arith.mulf %165, %167 : vector<2x32xf32>
    %169 = arith.addf %164, %168 : vector<2x32xf32>
    %170 = vector.extract_strided_slice %149 {offsets = [0, 64], sizes = [2, 32], strides = [1, 1]} : vector<2x96xf32> to vector<2x32xf32>
    %171 = math.tanh %162 : vector<2x32xf32>
    %172 = arith.mulf %170, %171 : vector<2x32xf32>
    %173 = vector.extract_strided_slice %155 {offsets = [0, 64], sizes = [2, 32], strides = [1, 1]} : vector<2x96xf32> to vector<2x32xf32>
    %174 = math.tanh %169 : vector<2x32xf32>
    %175 = arith.mulf %173, %174 : vector<2x32xf32>
    %176 = tpu.concatenate %172, %175 in 1 : vector<2x32xf32>, vector<2x32xf32> -> vector<2x64xf32>
    %177 = arith.truncf %176 : vector<2x64xf32> to vector<2x64xbf16>
    %cst_23 = arith.constant dense<0.000000e+00> : vector<2x256xf32>
    %178 = tpu.matmul %177, %7, %cst_23 {dimension_numbers = #tpu.dot_dimension_numbers<[1], [0], [0], [1], [0, 0, 1, 1], [], []>} : vector<2x64xbf16>, vector<64x256xbf16>, vector<2x256xf32> -> vector<2x256xf32>
    %179 = vector.extract_strided_slice %178 {offsets = [0, 0], sizes = [2, 128], strides = [1, 1]} : vector<2x256xf32> to vector<2x128xf32>
    %180 = vector.extract_strided_slice %6 {offsets = [8, 0], sizes = [2, 128], strides = [1, 1]} : vector<16x256xf32> to vector<2x128xf32>
    %181 = arith.addf %179, %180 : vector<2x128xf32>
    %182 = vector.extract_strided_slice %178 {offsets = [0, 128], sizes = [2, 128], strides = [1, 1]} : vector<2x256xf32> to vector<2x128xf32>
    %183 = vector.extract_strided_slice %6 {offsets = [6, 128], sizes = [2, 128], strides = [1, 1]} : vector<16x256xf32> to vector<2x128xf32>
    %184 = arith.addf %182, %183 : vector<2x128xf32>
    %185 = vector.extract_strided_slice %181 {offsets = [0, 0], sizes = [2, 96], strides = [1, 1]} : vector<2x128xf32> to vector<2x96xf32>
    %186 = arith.negf %185 : vector<2x96xf32>
    %187 = math.exp %186 : vector<2x96xf32>
    %cst_24 = arith.constant 1.000000e+00 : f32
    %188 = vector.broadcast %cst_24 : f32 to vector<2x96xf32>
    %189 = arith.addf %188, %187 : vector<2x96xf32>
    %190 = arith.divf %188, %189 : vector<2x96xf32>
    %191 = vector.extract_strided_slice %184 {offsets = [0, 0], sizes = [2, 96], strides = [1, 1]} : vector<2x128xf32> to vector<2x96xf32>
    %192 = arith.negf %191 : vector<2x96xf32>
    %193 = math.exp %192 : vector<2x96xf32>
    %cst_25 = arith.constant 1.000000e+00 : f32
    %194 = vector.broadcast %cst_25 : f32 to vector<2x96xf32>
    %195 = arith.addf %194, %193 : vector<2x96xf32>
    %196 = arith.divf %194, %195 : vector<2x96xf32>
    %197 = vector.extract_strided_slice %190 {offsets = [0, 32], sizes = [2, 32], strides = [1, 1]} : vector<2x96xf32> to vector<2x32xf32>
    %198 = arith.mulf %197, %162 : vector<2x32xf32>
    %199 = vector.extract_strided_slice %190 {offsets = [0, 0], sizes = [2, 32], strides = [1, 1]} : vector<2x96xf32> to vector<2x32xf32>
    %200 = vector.extract_strided_slice %181 {offsets = [0, 96], sizes = [2, 32], strides = [1, 1]} : vector<2x128xf32> to vector<2x32xf32>
    %201 = math.tanh %200 : vector<2x32xf32>
    %202 = arith.mulf %199, %201 : vector<2x32xf32>
    %203 = arith.addf %198, %202 : vector<2x32xf32>
    %204 = vector.extract_strided_slice %196 {offsets = [0, 32], sizes = [2, 32], strides = [1, 1]} : vector<2x96xf32> to vector<2x32xf32>
    %205 = arith.mulf %204, %169 : vector<2x32xf32>
    %206 = vector.extract_strided_slice %196 {offsets = [0, 0], sizes = [2, 32], strides = [1, 1]} : vector<2x96xf32> to vector<2x32xf32>
    %207 = vector.extract_strided_slice %184 {offsets = [0, 96], sizes = [2, 32], strides = [1, 1]} : vector<2x128xf32> to vector<2x32xf32>
    %208 = math.tanh %207 : vector<2x32xf32>
    %209 = arith.mulf %206, %208 : vector<2x32xf32>
    %210 = arith.addf %205, %209 : vector<2x32xf32>
    %211 = vector.extract_strided_slice %190 {offsets = [0, 64], sizes = [2, 32], strides = [1, 1]} : vector<2x96xf32> to vector<2x32xf32>
    %212 = math.tanh %203 : vector<2x32xf32>
    %213 = arith.mulf %211, %212 : vector<2x32xf32>
    %214 = vector.extract_strided_slice %196 {offsets = [0, 64], sizes = [2, 32], strides = [1, 1]} : vector<2x96xf32> to vector<2x32xf32>
    %215 = math.tanh %210 : vector<2x32xf32>
    %216 = arith.mulf %214, %215 : vector<2x32xf32>
    %217 = tpu.concatenate %213, %216 in 1 : vector<2x32xf32>, vector<2x32xf32> -> vector<2x64xf32>
    %218 = arith.truncf %217 : vector<2x64xf32> to vector<2x64xbf16>
    %cst_26 = arith.constant dense<0.000000e+00> : vector<2x256xf32>
    %219 = tpu.matmul %218, %7, %cst_26 {dimension_numbers = #tpu.dot_dimension_numbers<[1], [0], [0], [1], [0, 0, 1, 1], [], []>} : vector<2x64xbf16>, vector<64x256xbf16>, vector<2x256xf32> -> vector<2x256xf32>
    %220 = vector.extract_strided_slice %219 {offsets = [0, 0], sizes = [2, 128], strides = [1, 1]} : vector<2x256xf32> to vector<2x128xf32>
    %221 = vector.extract_strided_slice %6 {offsets = [10, 0], sizes = [2, 128], strides = [1, 1]} : vector<16x256xf32> to vector<2x128xf32>
    %222 = arith.addf %220, %221 : vector<2x128xf32>
    %223 = vector.extract_strided_slice %219 {offsets = [0, 128], sizes = [2, 128], strides = [1, 1]} : vector<2x256xf32> to vector<2x128xf32>
    %224 = vector.extract_strided_slice %6 {offsets = [4, 128], sizes = [2, 128], strides = [1, 1]} : vector<16x256xf32> to vector<2x128xf32>
    %225 = arith.addf %223, %224 : vector<2x128xf32>
    %226 = vector.extract_strided_slice %222 {offsets = [0, 0], sizes = [2, 96], strides = [1, 1]} : vector<2x128xf32> to vector<2x96xf32>
    %227 = arith.negf %226 : vector<2x96xf32>
    %228 = math.exp %227 : vector<2x96xf32>
    %cst_27 = arith.constant 1.000000e+00 : f32
    %229 = vector.broadcast %cst_27 : f32 to vector<2x96xf32>
    %230 = arith.addf %229, %228 : vector<2x96xf32>
    %231 = arith.divf %229, %230 : vector<2x96xf32>
    %232 = vector.extract_strided_slice %225 {offsets = [0, 0], sizes = [2, 96], strides = [1, 1]} : vector<2x128xf32> to vector<2x96xf32>
    %233 = arith.negf %232 : vector<2x96xf32>
    %234 = math.exp %233 : vector<2x96xf32>
    %cst_28 = arith.constant 1.000000e+00 : f32
    %235 = vector.broadcast %cst_28 : f32 to vector<2x96xf32>
    %236 = arith.addf %235, %234 : vector<2x96xf32>
    %237 = arith.divf %235, %236 : vector<2x96xf32>
    %238 = vector.extract_strided_slice %231 {offsets = [0, 32], sizes = [2, 32], strides = [1, 1]} : vector<2x96xf32> to vector<2x32xf32>
    %239 = arith.mulf %238, %203 : vector<2x32xf32>
    %240 = vector.extract_strided_slice %231 {offsets = [0, 0], sizes = [2, 32], strides = [1, 1]} : vector<2x96xf32> to vector<2x32xf32>
    %241 = vector.extract_strided_slice %222 {offsets = [0, 96], sizes = [2, 32], strides = [1, 1]} : vector<2x128xf32> to vector<2x32xf32>
    %242 = math.tanh %241 : vector<2x32xf32>
    %243 = arith.mulf %240, %242 : vector<2x32xf32>
    %244 = arith.addf %239, %243 : vector<2x32xf32>
    %245 = vector.extract_strided_slice %237 {offsets = [0, 32], sizes = [2, 32], strides = [1, 1]} : vector<2x96xf32> to vector<2x32xf32>
    %246 = arith.mulf %245, %210 : vector<2x32xf32>
    %247 = vector.extract_strided_slice %237 {offsets = [0, 0], sizes = [2, 32], strides = [1, 1]} : vector<2x96xf32> to vector<2x32xf32>
    %248 = vector.extract_strided_slice %225 {offsets = [0, 96], sizes = [2, 32], strides = [1, 1]} : vector<2x128xf32> to vector<2x32xf32>
    %249 = math.tanh %248 : vector<2x32xf32>
    %250 = arith.mulf %247, %249 : vector<2x32xf32>
    %251 = arith.addf %246, %250 : vector<2x32xf32>
    %252 = vector.extract_strided_slice %231 {offsets = [0, 64], sizes = [2, 32], strides = [1, 1]} : vector<2x96xf32> to vector<2x32xf32>
    %253 = math.tanh %244 : vector<2x32xf32>
    %254 = arith.mulf %252, %253 : vector<2x32xf32>
    %255 = vector.extract_strided_slice %237 {offsets = [0, 64], sizes = [2, 32], strides = [1, 1]} : vector<2x96xf32> to vector<2x32xf32>
    %256 = math.tanh %251 : vector<2x32xf32>
    %257 = arith.mulf %255, %256 : vector<2x32xf32>
    %258 = tpu.concatenate %254, %257 in 1 : vector<2x32xf32>, vector<2x32xf32> -> vector<2x64xf32>
    %259 = arith.truncf %258 : vector<2x64xf32> to vector<2x64xbf16>
    %cst_29 = arith.constant dense<0.000000e+00> : vector<2x256xf32>
    %260 = tpu.matmul %259, %7, %cst_29 {dimension_numbers = #tpu.dot_dimension_numbers<[1], [0], [0], [1], [0, 0, 1, 1], [], []>} : vector<2x64xbf16>, vector<64x256xbf16>, vector<2x256xf32> -> vector<2x256xf32>
    %261 = vector.extract_strided_slice %260 {offsets = [0, 0], sizes = [2, 128], strides = [1, 1]} : vector<2x256xf32> to vector<2x128xf32>
    %262 = vector.extract_strided_slice %6 {offsets = [12, 0], sizes = [2, 128], strides = [1, 1]} : vector<16x256xf32> to vector<2x128xf32>
    %263 = arith.addf %261, %262 : vector<2x128xf32>
    %264 = vector.extract_strided_slice %260 {offsets = [0, 128], sizes = [2, 128], strides = [1, 1]} : vector<2x256xf32> to vector<2x128xf32>
    %265 = vector.extract_strided_slice %6 {offsets = [2, 128], sizes = [2, 128], strides = [1, 1]} : vector<16x256xf32> to vector<2x128xf32>
    %266 = arith.addf %264, %265 : vector<2x128xf32>
    %267 = vector.extract_strided_slice %263 {offsets = [0, 0], sizes = [2, 96], strides = [1, 1]} : vector<2x128xf32> to vector<2x96xf32>
    %268 = arith.negf %267 : vector<2x96xf32>
    %269 = math.exp %268 : vector<2x96xf32>
    %cst_30 = arith.constant 1.000000e+00 : f32
    %270 = vector.broadcast %cst_30 : f32 to vector<2x96xf32>
    %271 = arith.addf %270, %269 : vector<2x96xf32>
    %272 = arith.divf %270, %271 : vector<2x96xf32>
    %273 = vector.extract_strided_slice %266 {offsets = [0, 0], sizes = [2, 96], strides = [1, 1]} : vector<2x128xf32> to vector<2x96xf32>
    %274 = arith.negf %273 : vector<2x96xf32>
    %275 = math.exp %274 : vector<2x96xf32>
    %cst_31 = arith.constant 1.000000e+00 : f32
    %276 = vector.broadcast %cst_31 : f32 to vector<2x96xf32>
    %277 = arith.addf %276, %275 : vector<2x96xf32>
    %278 = arith.divf %276, %277 : vector<2x96xf32>
    %279 = vector.extract_strided_slice %272 {offsets = [0, 32], sizes = [2, 32], strides = [1, 1]} : vector<2x96xf32> to vector<2x32xf32>
    %280 = arith.mulf %279, %244 : vector<2x32xf32>
    %281 = vector.extract_strided_slice %272 {offsets = [0, 0], sizes = [2, 32], strides = [1, 1]} : vector<2x96xf32> to vector<2x32xf32>
    %282 = vector.extract_strided_slice %263 {offsets = [0, 96], sizes = [2, 32], strides = [1, 1]} : vector<2x128xf32> to vector<2x32xf32>
    %283 = math.tanh %282 : vector<2x32xf32>
    %284 = arith.mulf %281, %283 : vector<2x32xf32>
    %285 = arith.addf %280, %284 : vector<2x32xf32>
    %286 = vector.extract_strided_slice %278 {offsets = [0, 32], sizes = [2, 32], strides = [1, 1]} : vector<2x96xf32> to vector<2x32xf32>
    %287 = arith.mulf %286, %251 : vector<2x32xf32>
    %288 = vector.extract_strided_slice %278 {offsets = [0, 0], sizes = [2, 32], strides = [1, 1]} : vector<2x96xf32> to vector<2x32xf32>
    %289 = vector.extract_strided_slice %266 {offsets = [0, 96], sizes = [2, 32], strides = [1, 1]} : vector<2x128xf32> to vector<2x32xf32>
    %290 = math.tanh %289 : vector<2x32xf32>
    %291 = arith.mulf %288, %290 : vector<2x32xf32>
    %292 = arith.addf %287, %291 : vector<2x32xf32>
    %293 = vector.extract_strided_slice %272 {offsets = [0, 64], sizes = [2, 32], strides = [1, 1]} : vector<2x96xf32> to vector<2x32xf32>
    %294 = math.tanh %285 : vector<2x32xf32>
    %295 = arith.mulf %293, %294 : vector<2x32xf32>
    %296 = vector.extract_strided_slice %278 {offsets = [0, 64], sizes = [2, 32], strides = [1, 1]} : vector<2x96xf32> to vector<2x32xf32>
    %297 = math.tanh %292 : vector<2x32xf32>
    %298 = arith.mulf %296, %297 : vector<2x32xf32>
    %299 = tpu.concatenate %295, %298 in 1 : vector<2x32xf32>, vector<2x32xf32> -> vector<2x64xf32>
    %300 = arith.truncf %299 : vector<2x64xf32> to vector<2x64xbf16>
    %cst_32 = arith.constant dense<0.000000e+00> : vector<2x256xf32>
    %301 = tpu.matmul %300, %7, %cst_32 {dimension_numbers = #tpu.dot_dimension_numbers<[1], [0], [0], [1], [0, 0, 1, 1], [], []>} : vector<2x64xbf16>, vector<64x256xbf16>, vector<2x256xf32> -> vector<2x256xf32>
    %302 = vector.extract_strided_slice %301 {offsets = [0, 0], sizes = [2, 128], strides = [1, 1]} : vector<2x256xf32> to vector<2x128xf32>
    %303 = vector.extract_strided_slice %6 {offsets = [14, 0], sizes = [2, 128], strides = [1, 1]} : vector<16x256xf32> to vector<2x128xf32>
    %304 = arith.addf %302, %303 : vector<2x128xf32>
    %305 = vector.extract_strided_slice %301 {offsets = [0, 128], sizes = [2, 128], strides = [1, 1]} : vector<2x256xf32> to vector<2x128xf32>
    %306 = vector.extract_strided_slice %6 {offsets = [0, 128], sizes = [2, 128], strides = [1, 1]} : vector<16x256xf32> to vector<2x128xf32>
    %307 = arith.addf %305, %306 : vector<2x128xf32>
    %308 = vector.extract_strided_slice %304 {offsets = [0, 0], sizes = [2, 96], strides = [1, 1]} : vector<2x128xf32> to vector<2x96xf32>
    %309 = arith.negf %308 : vector<2x96xf32>
    %310 = math.exp %309 : vector<2x96xf32>
    %cst_33 = arith.constant 1.000000e+00 : f32
    %311 = vector.broadcast %cst_33 : f32 to vector<2x96xf32>
    %312 = arith.addf %311, %310 : vector<2x96xf32>
    %313 = arith.divf %311, %312 : vector<2x96xf32>
    %314 = vector.extract_strided_slice %307 {offsets = [0, 0], sizes = [2, 96], strides = [1, 1]} : vector<2x128xf32> to vector<2x96xf32>
    %315 = arith.negf %314 : vector<2x96xf32>
    %316 = math.exp %315 : vector<2x96xf32>
    %cst_34 = arith.constant 1.000000e+00 : f32
    %317 = vector.broadcast %cst_34 : f32 to vector<2x96xf32>
    %318 = arith.addf %317, %316 : vector<2x96xf32>
    %319 = arith.divf %317, %318 : vector<2x96xf32>
    %320 = vector.extract_strided_slice %313 {offsets = [0, 32], sizes = [2, 32], strides = [1, 1]} : vector<2x96xf32> to vector<2x32xf32>
    %321 = arith.mulf %320, %285 : vector<2x32xf32>
    %322 = vector.extract_strided_slice %313 {offsets = [0, 0], sizes = [2, 32], strides = [1, 1]} : vector<2x96xf32> to vector<2x32xf32>
    %323 = vector.extract_strided_slice %304 {offsets = [0, 96], sizes = [2, 32], strides = [1, 1]} : vector<2x128xf32> to vector<2x32xf32>
    %324 = math.tanh %323 : vector<2x32xf32>
    %325 = arith.mulf %322, %324 : vector<2x32xf32>
    %326 = arith.addf %321, %325 : vector<2x32xf32>
    %327 = vector.extract_strided_slice %319 {offsets = [0, 32], sizes = [2, 32], strides = [1, 1]} : vector<2x96xf32> to vector<2x32xf32>
    %328 = arith.mulf %327, %292 : vector<2x32xf32>
    %329 = vector.extract_strided_slice %319 {offsets = [0, 0], sizes = [2, 32], strides = [1, 1]} : vector<2x96xf32> to vector<2x32xf32>
    %330 = vector.extract_strided_slice %307 {offsets = [0, 96], sizes = [2, 32], strides = [1, 1]} : vector<2x128xf32> to vector<2x32xf32>
    %331 = math.tanh %330 : vector<2x32xf32>
    %332 = arith.mulf %329, %331 : vector<2x32xf32>
    %333 = arith.addf %328, %332 : vector<2x32xf32>
    %334 = vector.extract_strided_slice %313 {offsets = [0, 64], sizes = [2, 32], strides = [1, 1]} : vector<2x96xf32> to vector<2x32xf32>
    %335 = math.tanh %326 : vector<2x32xf32>
    %336 = arith.mulf %334, %335 : vector<2x32xf32>
    %337 = vector.extract_strided_slice %319 {offsets = [0, 64], sizes = [2, 32], strides = [1, 1]} : vector<2x96xf32> to vector<2x32xf32>
    %338 = math.tanh %333 : vector<2x32xf32>
    %339 = arith.mulf %337, %338 : vector<2x32xf32>
    %340 = tpu.concatenate %49, %339 in 1 : vector<2x32xf32>, vector<2x32xf32> -> vector<2x64xf32>
    %341 = tpu.concatenate %90, %298 in 1 : vector<2x32xf32>, vector<2x32xf32> -> vector<2x64xf32>
    %342 = tpu.concatenate %131, %257 in 1 : vector<2x32xf32>, vector<2x32xf32> -> vector<2x64xf32>
    %343 = tpu.concatenate %172, %216 in 1 : vector<2x32xf32>, vector<2x32xf32> -> vector<2x64xf32>
    %344 = tpu.concatenate %213, %175 in 1 : vector<2x32xf32>, vector<2x32xf32> -> vector<2x64xf32>
    %345 = tpu.concatenate %254, %134 in 1 : vector<2x32xf32>, vector<2x32xf32> -> vector<2x64xf32>
    %346 = tpu.concatenate %295, %93 in 1 : vector<2x32xf32>, vector<2x32xf32> -> vector<2x64xf32>
    %347 = tpu.concatenate %336, %52 in 1 : vector<2x32xf32>, vector<2x32xf32> -> vector<2x64xf32>
    %348 = tpu.concatenate %340, %341, %342, %343, %344, %345, %346, %347 in 0 : vector<2x64xf32>, vector<2x64xf32>, vector<2x64xf32>, vector<2x64xf32>, vector<2x64xf32>, vector<2x64xf32>, vector<2x64xf32>, vector<2x64xf32> -> vector<16x64xf32>
    %c0_35 = arith.constant 0 : index
    %c0_36 = arith.constant 0 : index
    %349 = vector.load %arg5[%c0_35, %c0_36] : memref<16x64xf32, #tpu.memory_space<vmem>>, vector<16x64xf32>
    tpu.vector_store %arg5[%c0_35, %c0_36], %348 {strides = array<i32>} : memref<16x64xf32, #tpu.memory_space<vmem>>, vector<16x64xf32>,
    return
  }
  func.func @transform_0(%arg0: i32) -> (i32, i32) {
    %c0_i32 = arith.constant 0 : i32
    %c0_i32_0 = arith.constant 0 : i32
    %c0_i32_1 = arith.constant 0 : i32
    return %c0_i32, %c0_i32_0 : i32, i32
  }
  func.func @transform_1(%arg0: i32) -> (i32, i32) {
    %c0_i32 = arith.constant 0 : i32
    %c0_i32_0 = arith.constant 0 : i32
    %c0_i32_1 = arith.constant 0 : i32
    return %c0_i32, %c0_i32_0 : i32, i32
  }
  func.func @transform_2(%arg0: i32) -> (i32, i32) {
    %c0_i32 = arith.constant 0 : i32
    %c0_i32_0 = arith.constant 0 : i32
    %c0_i32_1 = arith.constant 0 : i32
    return %c0_i32, %c0_i32_0 : i32, i32
  }
  func.func @transform_3(%arg0: i32) -> (i32, i32) {
    %c0_i32 = arith.constant 0 : i32
    %c0_i32_0 = arith.constant 0 : i32
    %c0_i32_1 = arith.constant 0 : i32
    return %c0_i32, %c0_i32_0 : i32, i32
  }
  func.func @transform_4(%arg0: i32) -> (i32, i32) {
    %c0_i32 = arith.constant 0 : i32
    %c0_i32_0 = arith.constant 0 : i32
    %c0_i32_1 = arith.constant 0 : i32
    return %c0_i32, %c0_i32_0 : i32, i32
  }
}

module attributes {stable_mosaic.version = 11 : i64} {
  func.func @_bilstm_kernel(%arg0: i32, %arg1: memref<16x64xf32, #tpu.memory_space<vmem>>, %arg2: memref<64x256xbf16, #tpu.memory_space<vmem>>, %arg3: memref<64x256xbf16, #tpu.memory_space<vmem>>, %arg4: memref<1x256xf32, #tpu.memory_space<vmem>>, %arg5: memref<16x64xf32, #tpu.memory_space<vmem>>) attributes {dimension_semantics = [#tpu.dimension_semantics<arbitrary>], iteration_bounds = array<i64: 1>, scalar_prefetch = 0 : i64, scratch_operands = 0 : i64, tpu.core_type = #tpu.core_type<tc>, window_params = [{pipeline_mode = #tpu.pipeline_mode<synchronous>, transform_indices = @transform_0, window_bounds = array<i64: 16, 64>}, {pipeline_mode = #tpu.pipeline_mode<synchronous>, transform_indices = @transform_1, window_bounds = array<i64: 64, 256>}, {pipeline_mode = #tpu.pipeline_mode<synchronous>, transform_indices = @transform_2, window_bounds = array<i64: 64, 256>}, {pipeline_mode = #tpu.pipeline_mode<synchronous>, transform_indices = @transform_3, window_bounds = array<i64: 1, 256>}, {pipeline_mode = #tpu.pipeline_mode<synchronous>, transform_indices = @transform_4, window_bounds = array<i64: 16, 64>}]} {
    %c0 = arith.constant 0 : index
    %c0_0 = arith.constant 0 : index
    %0 = vector.load %arg1[%c0, %c0_0] : memref<16x64xf32, #tpu.memory_space<vmem>>, vector<16x64xf32>
    %1 = arith.truncf %0 : vector<16x64xf32> to vector<16x64xbf16>
    %c0_1 = arith.constant 0 : index
    %c0_2 = arith.constant 0 : index
    %2 = vector.load %arg2[%c0_1, %c0_2] : memref<64x256xbf16, #tpu.memory_space<vmem>>, vector<64x256xbf16>
    %cst = arith.constant dense<0.000000e+00> : vector<16x256xf32>
    %3 = tpu.matmul %1, %2, %cst {dimension_numbers = #tpu.dot_dimension_numbers<[1], [0], [0], [1], [0, 0, 1, 1], [], []>} : vector<16x64xbf16>, vector<64x256xbf16>, vector<16x256xf32> -> vector<16x256xf32>
    %c0_3 = arith.constant 0 : index
    %c0_4 = arith.constant 0 : index
    %4 = vector.load %arg4[%c0_3, %c0_4] : memref<1x256xf32, #tpu.memory_space<vmem>>, vector<1x256xf32>
    %5 = vector.broadcast %4 : vector<1x256xf32> to vector<16x256xf32>
    %6 = arith.addf %3, %5 : vector<16x256xf32>
    %c0_5 = arith.constant 0 : index
    %c0_6 = arith.constant 0 : index
    %7 = vector.load %arg3[%c0_5, %c0_6] : memref<64x256xbf16, #tpu.memory_space<vmem>>, vector<64x256xbf16>
    %cst_7 = arith.constant 0.000000e+00 : f32
    %8 = vector.broadcast %cst_7 : f32 to vector<2x32xf32>
    %cst_8 = arith.constant 0.000000e+00 : f32
    %9 = vector.broadcast %cst_8 : f32 to vector<2x32xf32>
    %cst_9 = arith.constant 0.000000e+00 : f32
    %10 = vector.broadcast %cst_9 : f32 to vector<2x32xf32>
    %cst_10 = arith.constant 0.000000e+00 : f32
    %11 = vector.broadcast %cst_10 : f32 to vector<2x32xf32>
    %12 = tpu.concatenate %8, %9 in 1 : vector<2x32xf32>, vector<2x32xf32> -> vector<2x64xf32>
    %13 = arith.truncf %12 : vector<2x64xf32> to vector<2x64xbf16>
    %cst_11 = arith.constant dense<0.000000e+00> : vector<2x256xf32>
    %14 = tpu.matmul %13, %7, %cst_11 {dimension_numbers = #tpu.dot_dimension_numbers<[1], [0], [0], [1], [0, 0, 1, 1], [], []>} : vector<2x64xbf16>, vector<64x256xbf16>, vector<2x256xf32> -> vector<2x256xf32>
    %15 = vector.extract_strided_slice %14 {offsets = [0, 0], sizes = [2, 128], strides = [1, 1]} : vector<2x256xf32> to vector<2x128xf32>
    %16 = vector.extract_strided_slice %6 {offsets = [0, 0], sizes = [2, 128], strides = [1, 1]} : vector<16x256xf32> to vector<2x128xf32>
    %17 = arith.addf %15, %16 : vector<2x128xf32>
    %18 = vector.extract_strided_slice %14 {offsets = [0, 128], sizes = [2, 128], strides = [1, 1]} : vector<2x256xf32> to vector<2x128xf32>
    %19 = vector.extract_strided_slice %6 {offsets = [14, 128], sizes = [2, 128], strides = [1, 1]} : vector<16x256xf32> to vector<2x128xf32>
    %20 = arith.addf %18, %19 : vector<2x128xf32>
    %21 = vector.extract_strided_slice %17 {offsets = [0, 0], sizes = [2, 96], strides = [1, 1]} : vector<2x128xf32> to vector<2x96xf32>
    %22 = arith.negf %21 : vector<2x96xf32>
    %23 = math.exp %22 : vector<2x96xf32>
    %cst_12 = arith.constant 1.000000e+00 : f32
    %24 = vector.broadcast %cst_12 : f32 to vector<2x96xf32>
    %25 = arith.addf %24, %23 : vector<2x96xf32>
    %26 = arith.divf %24, %25 : vector<2x96xf32>
    %27 = vector.extract_strided_slice %20 {offsets = [0, 0], sizes = [2, 96], strides = [1, 1]} : vector<2x128xf32> to vector<2x96xf32>
    %28 = arith.negf %27 : vector<2x96xf32>
    %29 = math.exp %28 : vector<2x96xf32>
    %cst_13 = arith.constant 1.000000e+00 : f32
    %30 = vector.broadcast %cst_13 : f32 to vector<2x96xf32>
    %31 = arith.addf %30, %29 : vector<2x96xf32>
    %32 = arith.divf %30, %31 : vector<2x96xf32>
    %33 = vector.extract_strided_slice %26 {offsets = [0, 32], sizes = [2, 32], strides = [1, 1]} : vector<2x96xf32> to vector<2x32xf32>
    %34 = arith.mulf %33, %10 : vector<2x32xf32>
    %35 = vector.extract_strided_slice %26 {offsets = [0, 0], sizes = [2, 32], strides = [1, 1]} : vector<2x96xf32> to vector<2x32xf32>
    %36 = vector.extract_strided_slice %17 {offsets = [0, 96], sizes = [2, 32], strides = [1, 1]} : vector<2x128xf32> to vector<2x32xf32>
    %37 = math.tanh %36 : vector<2x32xf32>
    %38 = arith.mulf %35, %37 : vector<2x32xf32>
    %39 = arith.addf %34, %38 : vector<2x32xf32>
    %40 = vector.extract_strided_slice %32 {offsets = [0, 32], sizes = [2, 32], strides = [1, 1]} : vector<2x96xf32> to vector<2x32xf32>
    %41 = arith.mulf %40, %11 : vector<2x32xf32>
    %42 = vector.extract_strided_slice %32 {offsets = [0, 0], sizes = [2, 32], strides = [1, 1]} : vector<2x96xf32> to vector<2x32xf32>
    %43 = vector.extract_strided_slice %20 {offsets = [0, 96], sizes = [2, 32], strides = [1, 1]} : vector<2x128xf32> to vector<2x32xf32>
    %44 = math.tanh %43 : vector<2x32xf32>
    %45 = arith.mulf %42, %44 : vector<2x32xf32>
    %46 = arith.addf %41, %45 : vector<2x32xf32>
    %47 = vector.extract_strided_slice %26 {offsets = [0, 64], sizes = [2, 32], strides = [1, 1]} : vector<2x96xf32> to vector<2x32xf32>
    %48 = math.tanh %39 : vector<2x32xf32>
    %49 = arith.mulf %47, %48 : vector<2x32xf32>
    %50 = vector.extract_strided_slice %32 {offsets = [0, 64], sizes = [2, 32], strides = [1, 1]} : vector<2x96xf32> to vector<2x32xf32>
    %51 = math.tanh %46 : vector<2x32xf32>
    %52 = arith.mulf %50, %51 : vector<2x32xf32>
    %53 = tpu.concatenate %49, %52 in 1 : vector<2x32xf32>, vector<2x32xf32> -> vector<2x64xf32>
    %54 = arith.truncf %53 : vector<2x64xf32> to vector<2x64xbf16>
    %cst_14 = arith.constant dense<0.000000e+00> : vector<2x256xf32>
    %55 = tpu.matmul %54, %7, %cst_14 {dimension_numbers = #tpu.dot_dimension_numbers<[1], [0], [0], [1], [0, 0, 1, 1], [], []>} : vector<2x64xbf16>, vector<64x256xbf16>, vector<2x256xf32> -> vector<2x256xf32>
    %56 = vector.extract_strided_slice %55 {offsets = [0, 0], sizes = [2, 128], strides = [1, 1]} : vector<2x256xf32> to vector<2x128xf32>
    %57 = vector.extract_strided_slice %6 {offsets = [2, 0], sizes = [2, 128], strides = [1, 1]} : vector<16x256xf32> to vector<2x128xf32>
    %58 = arith.addf %56, %57 : vector<2x128xf32>
    %59 = vector.extract_strided_slice %55 {offsets = [0, 128], sizes = [2, 128], strides = [1, 1]} : vector<2x256xf32> to vector<2x128xf32>
    %60 = vector.extract_strided_slice %6 {offsets = [12, 128], sizes = [2, 128], strides = [1, 1]} : vector<16x256xf32> to vector<2x128xf32>
    %61 = arith.addf %59, %60 : vector<2x128xf32>
    %62 = vector.extract_strided_slice %58 {offsets = [0, 0], sizes = [2, 96], strides = [1, 1]} : vector<2x128xf32> to vector<2x96xf32>
    %63 = arith.negf %62 : vector<2x96xf32>
    %64 = math.exp %63 : vector<2x96xf32>
    %cst_15 = arith.constant 1.000000e+00 : f32
    %65 = vector.broadcast %cst_15 : f32 to vector<2x96xf32>
    %66 = arith.addf %65, %64 : vector<2x96xf32>
    %67 = arith.divf %65, %66 : vector<2x96xf32>
    %68 = vector.extract_strided_slice %61 {offsets = [0, 0], sizes = [2, 96], strides = [1, 1]} : vector<2x128xf32> to vector<2x96xf32>
    %69 = arith.negf %68 : vector<2x96xf32>
    %70 = math.exp %69 : vector<2x96xf32>
    %cst_16 = arith.constant 1.000000e+00 : f32
    %71 = vector.broadcast %cst_16 : f32 to vector<2x96xf32>
    %72 = arith.addf %71, %70 : vector<2x96xf32>
    %73 = arith.divf %71, %72 : vector<2x96xf32>
    %74 = vector.extract_strided_slice %67 {offsets = [0, 32], sizes = [2, 32], strides = [1, 1]} : vector<2x96xf32> to vector<2x32xf32>
    %75 = arith.mulf %74, %39 : vector<2x32xf32>
    %76 = vector.extract_strided_slice %67 {offsets = [0, 0], sizes = [2, 32], strides = [1, 1]} : vector<2x96xf32> to vector<2x32xf32>
    %77 = vector.extract_strided_slice %58 {offsets = [0, 96], sizes = [2, 32], strides = [1, 1]} : vector<2x128xf32> to vector<2x32xf32>
    %78 = math.tanh %77 : vector<2x32xf32>
    %79 = arith.mulf %76, %78 : vector<2x32xf32>
    %80 = arith.addf %75, %79 : vector<2x32xf32>
    %81 = vector.extract_strided_slice %73 {offsets = [0, 32], sizes = [2, 32], strides = [1, 1]} : vector<2x96xf32> to vector<2x32xf32>
    %82 = arith.mulf %81, %46 : vector<2x32xf32>
    %83 = vector.extract_strided_slice %73 {offsets = [0, 0], sizes = [2, 32], strides = [1, 1]} : vector<2x96xf32> to vector<2x32xf32>
    %84 = vector.extract_strided_slice %61 {offsets = [0, 96], sizes = [2, 32], strides = [1, 1]} : vector<2x128xf32> to vector<2x32xf32>
    %85 = math.tanh %84 : vector<2x32xf32>
    %86 = arith.mulf %83, %85 : vector<2x32xf32>
    %87 = arith.addf %82, %86 : vector<2x32xf32>
    %88 = vector.extract_strided_slice %67 {offsets = [0, 64], sizes = [2, 32], strides = [1, 1]} : vector<2x96xf32> to vector<2x32xf32>
    %89 = math.tanh %80 : vector<2x32xf32>
    %90 = arith.mulf %88, %89 : vector<2x32xf32>
    %91 = vector.extract_strided_slice %73 {offsets = [0, 64], sizes = [2, 32], strides = [1, 1]} : vector<2x96xf32> to vector<2x32xf32>
    %92 = math.tanh %87 : vector<2x32xf32>
    %93 = arith.mulf %91, %92 : vector<2x32xf32>
    %94 = tpu.concatenate %90, %93 in 1 : vector<2x32xf32>, vector<2x32xf32> -> vector<2x64xf32>
    %95 = arith.truncf %94 : vector<2x64xf32> to vector<2x64xbf16>
    %cst_17 = arith.constant dense<0.000000e+00> : vector<2x256xf32>
    %96 = tpu.matmul %95, %7, %cst_17 {dimension_numbers = #tpu.dot_dimension_numbers<[1], [0], [0], [1], [0, 0, 1, 1], [], []>} : vector<2x64xbf16>, vector<64x256xbf16>, vector<2x256xf32> -> vector<2x256xf32>
    %97 = vector.extract_strided_slice %96 {offsets = [0, 0], sizes = [2, 128], strides = [1, 1]} : vector<2x256xf32> to vector<2x128xf32>
    %98 = vector.extract_strided_slice %6 {offsets = [4, 0], sizes = [2, 128], strides = [1, 1]} : vector<16x256xf32> to vector<2x128xf32>
    %99 = arith.addf %97, %98 : vector<2x128xf32>
    %100 = vector.extract_strided_slice %96 {offsets = [0, 128], sizes = [2, 128], strides = [1, 1]} : vector<2x256xf32> to vector<2x128xf32>
    %101 = vector.extract_strided_slice %6 {offsets = [10, 128], sizes = [2, 128], strides = [1, 1]} : vector<16x256xf32> to vector<2x128xf32>
    %102 = arith.addf %100, %101 : vector<2x128xf32>
    %103 = vector.extract_strided_slice %99 {offsets = [0, 0], sizes = [2, 96], strides = [1, 1]} : vector<2x128xf32> to vector<2x96xf32>
    %104 = arith.negf %103 : vector<2x96xf32>
    %105 = math.exp %104 : vector<2x96xf32>
    %cst_18 = arith.constant 1.000000e+00 : f32
    %106 = vector.broadcast %cst_18 : f32 to vector<2x96xf32>
    %107 = arith.addf %106, %105 : vector<2x96xf32>
    %108 = arith.divf %106, %107 : vector<2x96xf32>
    %109 = vector.extract_strided_slice %102 {offsets = [0, 0], sizes = [2, 96], strides = [1, 1]} : vector<2x128xf32> to vector<2x96xf32>
    %110 = arith.negf %109 : vector<2x96xf32>
    %111 = math.exp %110 : vector<2x96xf32>
    %cst_19 = arith.constant 1.000000e+00 : f32
    %112 = vector.broadcast %cst_19 : f32 to vector<2x96xf32>
    %113 = arith.addf %112, %111 : vector<2x96xf32>
    %114 = arith.divf %112, %113 : vector<2x96xf32>
    %115 = vector.extract_strided_slice %108 {offsets = [0, 32], sizes = [2, 32], strides = [1, 1]} : vector<2x96xf32> to vector<2x32xf32>
    %116 = arith.mulf %115, %80 : vector<2x32xf32>
    %117 = vector.extract_strided_slice %108 {offsets = [0, 0], sizes = [2, 32], strides = [1, 1]} : vector<2x96xf32> to vector<2x32xf32>
    %118 = vector.extract_strided_slice %99 {offsets = [0, 96], sizes = [2, 32], strides = [1, 1]} : vector<2x128xf32> to vector<2x32xf32>
    %119 = math.tanh %118 : vector<2x32xf32>
    %120 = arith.mulf %117, %119 : vector<2x32xf32>
    %121 = arith.addf %116, %120 : vector<2x32xf32>
    %122 = vector.extract_strided_slice %114 {offsets = [0, 32], sizes = [2, 32], strides = [1, 1]} : vector<2x96xf32> to vector<2x32xf32>
    %123 = arith.mulf %122, %87 : vector<2x32xf32>
    %124 = vector.extract_strided_slice %114 {offsets = [0, 0], sizes = [2, 32], strides = [1, 1]} : vector<2x96xf32> to vector<2x32xf32>
    %125 = vector.extract_strided_slice %102 {offsets = [0, 96], sizes = [2, 32], strides = [1, 1]} : vector<2x128xf32> to vector<2x32xf32>
    %126 = math.tanh %125 : vector<2x32xf32>
    %127 = arith.mulf %124, %126 : vector<2x32xf32>
    %128 = arith.addf %123, %127 : vector<2x32xf32>
    %129 = vector.extract_strided_slice %108 {offsets = [0, 64], sizes = [2, 32], strides = [1, 1]} : vector<2x96xf32> to vector<2x32xf32>
    %130 = math.tanh %121 : vector<2x32xf32>
    %131 = arith.mulf %129, %130 : vector<2x32xf32>
    %132 = vector.extract_strided_slice %114 {offsets = [0, 64], sizes = [2, 32], strides = [1, 1]} : vector<2x96xf32> to vector<2x32xf32>
    %133 = math.tanh %128 : vector<2x32xf32>
    %134 = arith.mulf %132, %133 : vector<2x32xf32>
    %135 = tpu.concatenate %131, %134 in 1 : vector<2x32xf32>, vector<2x32xf32> -> vector<2x64xf32>
    %136 = arith.truncf %135 : vector<2x64xf32> to vector<2x64xbf16>
    %cst_20 = arith.constant dense<0.000000e+00> : vector<2x256xf32>
    %137 = tpu.matmul %136, %7, %cst_20 {dimension_numbers = #tpu.dot_dimension_numbers<[1], [0], [0], [1], [0, 0, 1, 1], [], []>} : vector<2x64xbf16>, vector<64x256xbf16>, vector<2x256xf32> -> vector<2x256xf32>
    %138 = vector.extract_strided_slice %137 {offsets = [0, 0], sizes = [2, 128], strides = [1, 1]} : vector<2x256xf32> to vector<2x128xf32>
    %139 = vector.extract_strided_slice %6 {offsets = [6, 0], sizes = [2, 128], strides = [1, 1]} : vector<16x256xf32> to vector<2x128xf32>
    %140 = arith.addf %138, %139 : vector<2x128xf32>
    %141 = vector.extract_strided_slice %137 {offsets = [0, 128], sizes = [2, 128], strides = [1, 1]} : vector<2x256xf32> to vector<2x128xf32>
    %142 = vector.extract_strided_slice %6 {offsets = [8, 128], sizes = [2, 128], strides = [1, 1]} : vector<16x256xf32> to vector<2x128xf32>
    %143 = arith.addf %141, %142 : vector<2x128xf32>
    %144 = vector.extract_strided_slice %140 {offsets = [0, 0], sizes = [2, 96], strides = [1, 1]} : vector<2x128xf32> to vector<2x96xf32>
    %145 = arith.negf %144 : vector<2x96xf32>
    %146 = math.exp %145 : vector<2x96xf32>
    %cst_21 = arith.constant 1.000000e+00 : f32
    %147 = vector.broadcast %cst_21 : f32 to vector<2x96xf32>
    %148 = arith.addf %147, %146 : vector<2x96xf32>
    %149 = arith.divf %147, %148 : vector<2x96xf32>
    %150 = vector.extract_strided_slice %143 {offsets = [0, 0], sizes = [2, 96], strides = [1, 1]} : vector<2x128xf32> to vector<2x96xf32>
    %151 = arith.negf %150 : vector<2x96xf32>
    %152 = math.exp %151 : vector<2x96xf32>
    %cst_22 = arith.constant 1.000000e+00 : f32
    %153 = vector.broadcast %cst_22 : f32 to vector<2x96xf32>
    %154 = arith.addf %153, %152 : vector<2x96xf32>
    %155 = arith.divf %153, %154 : vector<2x96xf32>
    %156 = vector.extract_strided_slice %149 {offsets = [0, 32], sizes = [2, 32], strides = [1, 1]} : vector<2x96xf32> to vector<2x32xf32>
    %157 = arith.mulf %156, %121 : vector<2x32xf32>
    %158 = vector.extract_strided_slice %149 {offsets = [0, 0], sizes = [2, 32], strides = [1, 1]} : vector<2x96xf32> to vector<2x32xf32>
    %159 = vector.extract_strided_slice %140 {offsets = [0, 96], sizes = [2, 32], strides = [1, 1]} : vector<2x128xf32> to vector<2x32xf32>
    %160 = math.tanh %159 : vector<2x32xf32>
    %161 = arith.mulf %158, %160 : vector<2x32xf32>
    %162 = arith.addf %157, %161 : vector<2x32xf32>
    %163 = vector.extract_strided_slice %155 {offsets = [0, 32], sizes = [2, 32], strides = [1, 1]} : vector<2x96xf32> to vector<2x32xf32>
    %164 = arith.mulf %163, %128 : vector<2x32xf32>
    %165 = vector.extract_strided_slice %155 {offsets = [0, 0], sizes = [2, 32], strides = [1, 1]} : vector<2x96xf32> to vector<2x32xf32>
    %166 = vector.extract_strided_slice %143 {offsets = [0, 96], sizes = [2, 32], strides = [1, 1]} : vector<2x128xf32> to vector<2x32xf32>
    %167 = math.tanh %166 : vector<2x32xf32>
    %168 = arith.mulf %165, %167 : vector<2x32xf32>
    %169 = arith.addf %164, %168 : vector<2x32xf32>
    %170 = vector.extract_strided_slice %149 {offsets = [0, 64], sizes = [2, 32], strides = [1, 1]} : vector<2x96xf32> to vector<2x32xf32>
    %171 = math.tanh %162 : vector<2x32xf32>
    %172 = arith.mulf %170, %171 : vector<2x32xf32>
    %173 = vector.extract_strided_slice %155 {offsets = [0, 64], sizes = [2, 32], strides = [1, 1]} : vector<2x96xf32> to vector<2x32xf32>
    %174 = math.tanh %169 : vector<2x32xf32>
    %175 = arith.mulf %173, %174 : vector<2x32xf32>
    %176 = tpu.concatenate %172, %175 in 1 : vector<2x32xf32>, vector<2x32xf32> -> vector<2x64xf32>
    %177 = arith.truncf %176 : vector<2x64xf32> to vector<2x64xbf16>
    %cst_23 = arith.constant dense<0.000000e+00> : vector<2x256xf32>
    %178 = tpu.matmul %177, %7, %cst_23 {dimension_numbers = #tpu.dot_dimension_numbers<[1], [0], [0], [1], [0, 0, 1, 1], [], []>} : vector<2x64xbf16>, vector<64x256xbf16>, vector<2x256xf32> -> vector<2x256xf32>
    %179 = vector.extract_strided_slice %178 {offsets = [0, 0], sizes = [2, 128], strides = [1, 1]} : vector<2x256xf32> to vector<2x128xf32>
    %180 = vector.extract_strided_slice %6 {offsets = [8, 0], sizes = [2, 128], strides = [1, 1]} : vector<16x256xf32> to vector<2x128xf32>
    %181 = arith.addf %179, %180 : vector<2x128xf32>
    %182 = vector.extract_strided_slice %178 {offsets = [0, 128], sizes = [2, 128], strides = [1, 1]} : vector<2x256xf32> to vector<2x128xf32>
    %183 = vector.extract_strided_slice %6 {offsets = [6, 128], sizes = [2, 128], strides = [1, 1]} : vector<16x256xf32> to vector<2x128xf32>
    %184 = arith.addf %182, %183 : vector<2x128xf32>
    %185 = vector.extract_strided_slice %181 {offsets = [0, 0], sizes = [2, 96], strides = [1, 1]} : vector<2x128xf32> to vector<2x96xf32>
    %186 = arith.negf %185 : vector<2x96xf32>
    %187 = math.exp %186 : vector<2x96xf32>
    %cst_24 = arith.constant 1.000000e+00 : f32
    %188 = vector.broadcast %cst_24 : f32 to vector<2x96xf32>
    %189 = arith.addf %188, %187 : vector<2x96xf32>
    %190 = arith.divf %188, %189 : vector<2x96xf32>
    %191 = vector.extract_strided_slice %184 {offsets = [0, 0], sizes = [2, 96], strides = [1, 1]} : vector<2x128xf32> to vector<2x96xf32>
    %192 = arith.negf %191 : vector<2x96xf32>
    %193 = math.exp %192 : vector<2x96xf32>
    %cst_25 = arith.constant 1.000000e+00 : f32
    %194 = vector.broadcast %cst_25 : f32 to vector<2x96xf32>
    %195 = arith.addf %194, %193 : vector<2x96xf32>
    %196 = arith.divf %194, %195 : vector<2x96xf32>
    %197 = vector.extract_strided_slice %190 {offsets = [0, 32], sizes = [2, 32], strides = [1, 1]} : vector<2x96xf32> to vector<2x32xf32>
    %198 = arith.mulf %197, %162 : vector<2x32xf32>
    %199 = vector.extract_strided_slice %190 {offsets = [0, 0], sizes = [2, 32], strides = [1, 1]} : vector<2x96xf32> to vector<2x32xf32>
    %200 = vector.extract_strided_slice %181 {offsets = [0, 96], sizes = [2, 32], strides = [1, 1]} : vector<2x128xf32> to vector<2x32xf32>
    %201 = math.tanh %200 : vector<2x32xf32>
    %202 = arith.mulf %199, %201 : vector<2x32xf32>
    %203 = arith.addf %198, %202 : vector<2x32xf32>
    %204 = vector.extract_strided_slice %196 {offsets = [0, 32], sizes = [2, 32], strides = [1, 1]} : vector<2x96xf32> to vector<2x32xf32>
    %205 = arith.mulf %204, %169 : vector<2x32xf32>
    %206 = vector.extract_strided_slice %196 {offsets = [0, 0], sizes = [2, 32], strides = [1, 1]} : vector<2x96xf32> to vector<2x32xf32>
    %207 = vector.extract_strided_slice %184 {offsets = [0, 96], sizes = [2, 32], strides = [1, 1]} : vector<2x128xf32> to vector<2x32xf32>
    %208 = math.tanh %207 : vector<2x32xf32>
    %209 = arith.mulf %206, %208 : vector<2x32xf32>
    %210 = arith.addf %205, %209 : vector<2x32xf32>
    %211 = vector.extract_strided_slice %190 {offsets = [0, 64], sizes = [2, 32], strides = [1, 1]} : vector<2x96xf32> to vector<2x32xf32>
    %212 = math.tanh %203 : vector<2x32xf32>
    %213 = arith.mulf %211, %212 : vector<2x32xf32>
    %214 = vector.extract_strided_slice %196 {offsets = [0, 64], sizes = [2, 32], strides = [1, 1]} : vector<2x96xf32> to vector<2x32xf32>
    %215 = math.tanh %210 : vector<2x32xf32>
    %216 = arith.mulf %214, %215 : vector<2x32xf32>
    %217 = tpu.concatenate %213, %216 in 1 : vector<2x32xf32>, vector<2x32xf32> -> vector<2x64xf32>
    %218 = arith.truncf %217 : vector<2x64xf32> to vector<2x64xbf16>
    %cst_26 = arith.constant dense<0.000000e+00> : vector<2x256xf32>
    %219 = tpu.matmul %218, %7, %cst_26 {dimension_numbers = #tpu.dot_dimension_numbers<[1], [0], [0], [1], [0, 0, 1, 1], [], []>} : vector<2x64xbf16>, vector<64x256xbf16>, vector<2x256xf32> -> vector<2x256xf32>
    %220 = vector.extract_strided_slice %219 {offsets = [0, 0], sizes = [2, 128], strides = [1, 1]} : vector<2x256xf32> to vector<2x128xf32>
    %221 = vector.extract_strided_slice %6 {offsets = [10, 0], sizes = [2, 128], strides = [1, 1]} : vector<16x256xf32> to vector<2x128xf32>
    %222 = arith.addf %220, %221 : vector<2x128xf32>
    %223 = vector.extract_strided_slice %219 {offsets = [0, 128], sizes = [2, 128], strides = [1, 1]} : vector<2x256xf32> to vector<2x128xf32>
    %224 = vector.extract_strided_slice %6 {offsets = [4, 128], sizes = [2, 128], strides = [1, 1]} : vector<16x256xf32> to vector<2x128xf32>
    %225 = arith.addf %223, %224 : vector<2x128xf32>
    %226 = vector.extract_strided_slice %222 {offsets = [0, 0], sizes = [2, 96], strides = [1, 1]} : vector<2x128xf32> to vector<2x96xf32>
    %227 = arith.negf %226 : vector<2x96xf32>
    %228 = math.exp %227 : vector<2x96xf32>
    %cst_27 = arith.constant 1.000000e+00 : f32
    %229 = vector.broadcast %cst_27 : f32 to vector<2x96xf32>
    %230 = arith.addf %229, %228 : vector<2x96xf32>
    %231 = arith.divf %229, %230 : vector<2x96xf32>
    %232 = vector.extract_strided_slice %225 {offsets = [0, 0], sizes = [2, 96], strides = [1, 1]} : vector<2x128xf32> to vector<2x96xf32>
    %233 = arith.negf %232 : vector<2x96xf32>
    %234 = math.exp %233 : vector<2x96xf32>
    %cst_28 = arith.constant 1.000000e+00 : f32
    %235 = vector.broadcast %cst_28 : f32 to vector<2x96xf32>
    %236 = arith.addf %235, %234 : vector<2x96xf32>
    %237 = arith.divf %235, %236 : vector<2x96xf32>
    %238 = vector.extract_strided_slice %231 {offsets = [0, 32], sizes = [2, 32], strides = [1, 1]} : vector<2x96xf32> to vector<2x32xf32>
    %239 = arith.mulf %238, %203 : vector<2x32xf32>
    %240 = vector.extract_strided_slice %231 {offsets = [0, 0], sizes = [2, 32], strides = [1, 1]} : vector<2x96xf32> to vector<2x32xf32>
    %241 = vector.extract_strided_slice %222 {offsets = [0, 96], sizes = [2, 32], strides = [1, 1]} : vector<2x128xf32> to vector<2x32xf32>
    %242 = math.tanh %241 : vector<2x32xf32>
    %243 = arith.mulf %240, %242 : vector<2x32xf32>
    %244 = arith.addf %239, %243 : vector<2x32xf32>
    %245 = vector.extract_strided_slice %237 {offsets = [0, 32], sizes = [2, 32], strides = [1, 1]} : vector<2x96xf32> to vector<2x32xf32>
    %246 = arith.mulf %245, %210 : vector<2x32xf32>
    %247 = vector.extract_strided_slice %237 {offsets = [0, 0], sizes = [2, 32], strides = [1, 1]} : vector<2x96xf32> to vector<2x32xf32>
    %248 = vector.extract_strided_slice %225 {offsets = [0, 96], sizes = [2, 32], strides = [1, 1]} : vector<2x128xf32> to vector<2x32xf32>
    %249 = math.tanh %248 : vector<2x32xf32>
    %250 = arith.mulf %247, %249 : vector<2x32xf32>
    %251 = arith.addf %246, %250 : vector<2x32xf32>
    %252 = vector.extract_strided_slice %231 {offsets = [0, 64], sizes = [2, 32], strides = [1, 1]} : vector<2x96xf32> to vector<2x32xf32>
    %253 = math.tanh %244 : vector<2x32xf32>
    %254 = arith.mulf %252, %253 : vector<2x32xf32>
    %255 = vector.extract_strided_slice %237 {offsets = [0, 64], sizes = [2, 32], strides = [1, 1]} : vector<2x96xf32> to vector<2x32xf32>
    %256 = math.tanh %251 : vector<2x32xf32>
    %257 = arith.mulf %255, %256 : vector<2x32xf32>
    %258 = tpu.concatenate %254, %257 in 1 : vector<2x32xf32>, vector<2x32xf32> -> vector<2x64xf32>
    %259 = arith.truncf %258 : vector<2x64xf32> to vector<2x64xbf16>
    %cst_29 = arith.constant dense<0.000000e+00> : vector<2x256xf32>
    %260 = tpu.matmul %259, %7, %cst_29 {dimension_numbers = #tpu.dot_dimension_numbers<[1], [0], [0], [1], [0, 0, 1, 1], [], []>} : vector<2x64xbf16>, vector<64x256xbf16>, vector<2x256xf32> -> vector<2x256xf32>
    %261 = vector.extract_strided_slice %260 {offsets = [0, 0], sizes = [2, 128], strides = [1, 1]} : vector<2x256xf32> to vector<2x128xf32>
    %262 = vector.extract_strided_slice %6 {offsets = [12, 0], sizes = [2, 128], strides = [1, 1]} : vector<16x256xf32> to vector<2x128xf32>
    %263 = arith.addf %261, %262 : vector<2x128xf32>
    %264 = vector.extract_strided_slice %260 {offsets = [0, 128], sizes = [2, 128], strides = [1, 1]} : vector<2x256xf32> to vector<2x128xf32>
    %265 = vector.extract_strided_slice %6 {offsets = [2, 128], sizes = [2, 128], strides = [1, 1]} : vector<16x256xf32> to vector<2x128xf32>
    %266 = arith.addf %264, %265 : vector<2x128xf32>
    %267 = vector.extract_strided_slice %263 {offsets = [0, 0], sizes = [2, 96], strides = [1, 1]} : vector<2x128xf32> to vector<2x96xf32>
    %268 = arith.negf %267 : vector<2x96xf32>
    %269 = math.exp %268 : vector<2x96xf32>
    %cst_30 = arith.constant 1.000000e+00 : f32
    %270 = vector.broadcast %cst_30 : f32 to vector<2x96xf32>
    %271 = arith.addf %270, %269 : vector<2x96xf32>
    %272 = arith.divf %270, %271 : vector<2x96xf32>
    %273 = vector.extract_strided_slice %266 {offsets = [0, 0], sizes = [2, 96], strides = [1, 1]} : vector<2x128xf32> to vector<2x96xf32>
    %274 = arith.negf %273 : vector<2x96xf32>
    %275 = math.exp %274 : vector<2x96xf32>
    %cst_31 = arith.constant 1.000000e+00 : f32
    %276 = vector.broadcast %cst_31 : f32 to vector<2x96xf32>
    %277 = arith.addf %276, %275 : vector<2x96xf32>
    %278 = arith.divf %276, %277 : vector<2x96xf32>
    %279 = vector.extract_strided_slice %272 {offsets = [0, 32], sizes = [2, 32], strides = [1, 1]} : vector<2x96xf32> to vector<2x32xf32>
    %280 = arith.mulf %279, %244 : vector<2x32xf32>
    %281 = vector.extract_strided_slice %272 {offsets = [0, 0], sizes = [2, 32], strides = [1, 1]} : vector<2x96xf32> to vector<2x32xf32>
    %282 = vector.extract_strided_slice %263 {offsets = [0, 96], sizes = [2, 32], strides = [1, 1]} : vector<2x128xf32> to vector<2x32xf32>
    %283 = math.tanh %282 : vector<2x32xf32>
    %284 = arith.mulf %281, %283 : vector<2x32xf32>
    %285 = arith.addf %280, %284 : vector<2x32xf32>
    %286 = vector.extract_strided_slice %278 {offsets = [0, 32], sizes = [2, 32], strides = [1, 1]} : vector<2x96xf32> to vector<2x32xf32>
    %287 = arith.mulf %286, %251 : vector<2x32xf32>
    %288 = vector.extract_strided_slice %278 {offsets = [0, 0], sizes = [2, 32], strides = [1, 1]} : vector<2x96xf32> to vector<2x32xf32>
    %289 = vector.extract_strided_slice %266 {offsets = [0, 96], sizes = [2, 32], strides = [1, 1]} : vector<2x128xf32> to vector<2x32xf32>
    %290 = math.tanh %289 : vector<2x32xf32>
    %291 = arith.mulf %288, %290 : vector<2x32xf32>
    %292 = arith.addf %287, %291 : vector<2x32xf32>
    %293 = vector.extract_strided_slice %272 {offsets = [0, 64], sizes = [2, 32], strides = [1, 1]} : vector<2x96xf32> to vector<2x32xf32>
    %294 = math.tanh %285 : vector<2x32xf32>
    %295 = arith.mulf %293, %294 : vector<2x32xf32>
    %296 = vector.extract_strided_slice %278 {offsets = [0, 64], sizes = [2, 32], strides = [1, 1]} : vector<2x96xf32> to vector<2x32xf32>
    %297 = math.tanh %292 : vector<2x32xf32>
    %298 = arith.mulf %296, %297 : vector<2x32xf32>
    %299 = tpu.concatenate %295, %298 in 1 : vector<2x32xf32>, vector<2x32xf32> -> vector<2x64xf32>
    %300 = arith.truncf %299 : vector<2x64xf32> to vector<2x64xbf16>
    %cst_32 = arith.constant dense<0.000000e+00> : vector<2x256xf32>
    %301 = tpu.matmul %300, %7, %cst_32 {dimension_numbers = #tpu.dot_dimension_numbers<[1], [0], [0], [1], [0, 0, 1, 1], [], []>} : vector<2x64xbf16>, vector<64x256xbf16>, vector<2x256xf32> -> vector<2x256xf32>
    %302 = vector.extract_strided_slice %301 {offsets = [0, 0], sizes = [2, 128], strides = [1, 1]} : vector<2x256xf32> to vector<2x128xf32>
    %303 = vector.extract_strided_slice %6 {offsets = [14, 0], sizes = [2, 128], strides = [1, 1]} : vector<16x256xf32> to vector<2x128xf32>
    %304 = arith.addf %302, %303 : vector<2x128xf32>
    %305 = vector.extract_strided_slice %301 {offsets = [0, 128], sizes = [2, 128], strides = [1, 1]} : vector<2x256xf32> to vector<2x128xf32>
    %306 = vector.extract_strided_slice %6 {offsets = [0, 128], sizes = [2, 128], strides = [1, 1]} : vector<16x256xf32> to vector<2x128xf32>
    %307 = arith.addf %305, %306 : vector<2x128xf32>
    %308 = vector.extract_strided_slice %304 {offsets = [0, 0], sizes = [2, 96], strides = [1, 1]} : vector<2x128xf32> to vector<2x96xf32>
    %309 = arith.negf %308 : vector<2x96xf32>
    %310 = math.exp %309 : vector<2x96xf32>
    %cst_33 = arith.constant 1.000000e+00 : f32
    %311 = vector.broadcast %cst_33 : f32 to vector<2x96xf32>
    %312 = arith.addf %311, %310 : vector<2x96xf32>
    %313 = arith.divf %311, %312 : vector<2x96xf32>
    %314 = vector.extract_strided_slice %307 {offsets = [0, 0], sizes = [2, 96], strides = [1, 1]} : vector<2x128xf32> to vector<2x96xf32>
    %315 = arith.negf %314 : vector<2x96xf32>
    %316 = math.exp %315 : vector<2x96xf32>
    %cst_34 = arith.constant 1.000000e+00 : f32
    %317 = vector.broadcast %cst_34 : f32 to vector<2x96xf32>
    %318 = arith.addf %317, %316 : vector<2x96xf32>
    %319 = arith.divf %317, %318 : vector<2x96xf32>
    %320 = vector.extract_strided_slice %313 {offsets = [0, 32], sizes = [2, 32], strides = [1, 1]} : vector<2x96xf32> to vector<2x32xf32>
    %321 = arith.mulf %320, %285 : vector<2x32xf32>
    %322 = vector.extract_strided_slice %313 {offsets = [0, 0], sizes = [2, 32], strides = [1, 1]} : vector<2x96xf32> to vector<2x32xf32>
    %323 = vector.extract_strided_slice %304 {offsets = [0, 96], sizes = [2, 32], strides = [1, 1]} : vector<2x128xf32> to vector<2x32xf32>
    %324 = math.tanh %323 : vector<2x32xf32>
    %325 = arith.mulf %322, %324 : vector<2x32xf32>
    %326 = arith.addf %321, %325 : vector<2x32xf32>
    %327 = vector.extract_strided_slice %319 {offsets = [0, 32], sizes = [2, 32], strides = [1, 1]} : vector<2x96xf32> to vector<2x32xf32>
    %328 = arith.mulf %327, %292 : vector<2x32xf32>
    %329 = vector.extract_strided_slice %319 {offsets = [0, 0], sizes = [2, 32], strides = [1, 1]} : vector<2x96xf32> to vector<2x32xf32>
    %330 = vector.extract_strided_slice %307 {offsets = [0, 96], sizes = [2, 32], strides = [1, 1]} : vector<2x128xf32> to vector<2x32xf32>
    %331 = math.tanh %330 : vector<2x32xf32>
    %332 = arith.mulf %329, %331 : vector<2x32xf32>
    %333 = arith.addf %328, %332 : vector<2x32xf32>
    %334 = vector.extract_strided_slice %313 {offsets = [0, 64], sizes = [2, 32], strides = [1, 1]} : vector<2x96xf32> to vector<2x32xf32>
    %335 = math.tanh %326 : vector<2x32xf32>
    %336 = arith.mulf %334, %335 : vector<2x32xf32>
    %337 = vector.extract_strided_slice %319 {offsets = [0, 64], sizes = [2, 32], strides = [1, 1]} : vector<2x96xf32> to vector<2x32xf32>
    %338 = math.tanh %333 : vector<2x32xf32>
    %339 = arith.mulf %337, %338 : vector<2x32xf32>
    %340 = tpu.concatenate %49, %339 in 1 : vector<2x32xf32>, vector<2x32xf32> -> vector<2x64xf32>
    %341 = tpu.concatenate %90, %298 in 1 : vector<2x32xf32>, vector<2x32xf32> -> vector<2x64xf32>
    %342 = tpu.concatenate %131, %257 in 1 : vector<2x32xf32>, vector<2x32xf32> -> vector<2x64xf32>
    %343 = tpu.concatenate %172, %216 in 1 : vector<2x32xf32>, vector<2x32xf32> -> vector<2x64xf32>
    %344 = tpu.concatenate %213, %175 in 1 : vector<2x32xf32>, vector<2x32xf32> -> vector<2x64xf32>
    %345 = tpu.concatenate %254, %134 in 1 : vector<2x32xf32>, vector<2x32xf32> -> vector<2x64xf32>
    %346 = tpu.concatenate %295, %93 in 1 : vector<2x32xf32>, vector<2x32xf32> -> vector<2x64xf32>
    %347 = tpu.concatenate %336, %52 in 1 : vector<2x32xf32>, vector<2x32xf32> -> vector<2x64xf32>
    %348 = tpu.concatenate %340, %341, %342, %343, %344, %345, %346, %347 in 0 : vector<2x64xf32>, vector<2x64xf32>, vector<2x64xf32>, vector<2x64xf32>, vector<2x64xf32>, vector<2x64xf32>, vector<2x64xf32>, vector<2x64xf32> -> vector<16x64xf32>
    %c0_35 = arith.constant 0 : index
    %c0_36 = arith.constant 0 : index
    %349 = vector.load %arg5[%c0_35, %c0_36] : memref<16x64xf32, #tpu.memory_space<vmem>>, vector<16x64xf32>
    tpu.vector_store %arg5[%c0_35, %c0_36], %348 {strides = array<i32>} : memref<16x64xf32, #tpu.memory_space<vmem>>, vector<16x64xf32>,
    return
  }
  func.func @transform_0(%arg0: i32) -> (i32, i32) {
    %c0_i32 = arith.constant 0 : i32
    %c0_i32_0 = arith.constant 0 : i32
    %c0_i32_1 = arith.constant 0 : i32
    return %c0_i32, %c0_i32_0 : i32, i32
  }
  func.func @transform_1(%arg0: i32) -> (i32, i32) {
    %c0_i32 = arith.constant 0 : i32
    %c0_i32_0 = arith.constant 0 : i32
    %c0_i32_1 = arith.constant 0 : i32
    return %c0_i32, %c0_i32_0 : i32, i32
  }
  func.func @transform_2(%arg0: i32) -> (i32, i32) {
    %c0_i32 = arith.constant 0 : i32
    %c0_i32_0 = arith.constant 0 : i32
    %c0_i32_1 = arith.constant 0 : i32
    return %c0_i32, %c0_i32_0 : i32, i32
  }
  func.func @transform_3(%arg0: i32) -> (i32, i32) {
    %c0_i32 = arith.constant 0 : i32
    %c0_i32_0 = arith.constant 0 : i32
    %c0_i32_1 = arith.constant 0 : i32
    return %c0_i32, %c0_i32_0 : i32, i32
  }
  func.func @transform_4(%arg0: i32) -> (i32, i32) {
    %c0_i32 = arith.constant 0 : i32
    %c0_i32_0 = arith.constant 0 : i32
    %c0_i32_1 = arith.constant 0 : i32
    return %c0_i32, %c0_i32_0 : i32, i32
  }
}

module attributes {stable_mosaic.version = 11 : i64} {
  func.func @_encoder_layer_kernel(%arg0: i32, %arg1: memref<16x64xf32, #tpu.memory_space<vmem>>, %arg2: memref<64x192xbf16, #tpu.memory_space<vmem>>, %arg3: memref<1x192xf32, #tpu.memory_space<vmem>>, %arg4: memref<64x64xbf16, #tpu.memory_space<vmem>>, %arg5: memref<1x64xf32, #tpu.memory_space<vmem>>, %arg6: memref<64x128xbf16, #tpu.memory_space<vmem>>, %arg7: memref<1x128xf32, #tpu.memory_space<vmem>>, %arg8: memref<128x64xbf16, #tpu.memory_space<vmem>>, %arg9: memref<1x64xf32, #tpu.memory_space<vmem>>, %arg10: memref<1x64xf32, #tpu.memory_space<vmem>>, %arg11: memref<1x64xf32, #tpu.memory_space<vmem>>, %arg12: memref<1x64xf32, #tpu.memory_space<vmem>>, %arg13: memref<1x64xf32, #tpu.memory_space<vmem>>, %arg14: memref<16x64xf32, #tpu.memory_space<vmem>>) attributes {dimension_semantics = [#tpu.dimension_semantics<arbitrary>], iteration_bounds = array<i64: 1>, scalar_prefetch = 0 : i64, scratch_operands = 0 : i64, tpu.core_type = #tpu.core_type<tc>, window_params = [{pipeline_mode = #tpu.pipeline_mode<synchronous>, transform_indices = @transform_0, window_bounds = array<i64: 16, 64>}, {pipeline_mode = #tpu.pipeline_mode<synchronous>, transform_indices = @transform_1, window_bounds = array<i64: 64, 192>}, {pipeline_mode = #tpu.pipeline_mode<synchronous>, transform_indices = @transform_2, window_bounds = array<i64: 1, 192>}, {pipeline_mode = #tpu.pipeline_mode<synchronous>, transform_indices = @transform_3, window_bounds = array<i64: 64, 64>}, {pipeline_mode = #tpu.pipeline_mode<synchronous>, transform_indices = @transform_4, window_bounds = array<i64: 1, 64>}, {pipeline_mode = #tpu.pipeline_mode<synchronous>, transform_indices = @transform_5, window_bounds = array<i64: 64, 128>}, {pipeline_mode = #tpu.pipeline_mode<synchronous>, transform_indices = @transform_6, window_bounds = array<i64: 1, 128>}, {pipeline_mode = #tpu.pipeline_mode<synchronous>, transform_indices = @transform_7, window_bounds = array<i64: 128, 64>}, {pipeline_mode = #tpu.pipeline_mode<synchronous>, transform_indices = @transform_8, window_bounds = array<i64: 1, 64>}, {pipeline_mode = #tpu.pipeline_mode<synchronous>, transform_indices = @transform_9, window_bounds = array<i64: 1, 64>}, {pipeline_mode = #tpu.pipeline_mode<synchronous>, transform_indices = @transform_10, window_bounds = array<i64: 1, 64>}, {pipeline_mode = #tpu.pipeline_mode<synchronous>, transform_indices = @transform_11, window_bounds = array<i64: 1, 64>}, {pipeline_mode = #tpu.pipeline_mode<synchronous>, transform_indices = @transform_12, window_bounds = array<i64: 1, 64>}, {pipeline_mode = #tpu.pipeline_mode<synchronous>, transform_indices = @transform_13, window_bounds = array<i64: 16, 64>}]} {
    %c0 = arith.constant 0 : index
    %c0_0 = arith.constant 0 : index
    %0 = vector.load %arg1[%c0, %c0_0] : memref<16x64xf32, #tpu.memory_space<vmem>>, vector<16x64xf32>
    %1 = arith.truncf %0 : vector<16x64xf32> to vector<16x64xbf16>
    %c0_1 = arith.constant 0 : index
    %c0_2 = arith.constant 0 : index
    %2 = vector.load %arg2[%c0_1, %c0_2] : memref<64x192xbf16, #tpu.memory_space<vmem>>, vector<64x192xbf16>
    %cst = arith.constant dense<0.000000e+00> : vector<16x192xf32>
    %3 = tpu.matmul %1, %2, %cst {dimension_numbers = #tpu.dot_dimension_numbers<[1], [0], [0], [1], [0, 0, 1, 1], [], []>} : vector<16x64xbf16>, vector<64x192xbf16>, vector<16x192xf32> -> vector<16x192xf32>
    %c0_3 = arith.constant 0 : index
    %c0_4 = arith.constant 0 : index
    %4 = vector.load %arg3[%c0_3, %c0_4] : memref<1x192xf32, #tpu.memory_space<vmem>>, vector<1x192xf32>
    %5 = vector.broadcast %4 : vector<1x192xf32> to vector<16x192xf32>
    %6 = arith.addf %3, %5 : vector<16x192xf32>
    %7 = vector.extract_strided_slice %6 {offsets = [0, 0], sizes = [8, 192], strides = [1, 1]} : vector<16x192xf32> to vector<8x192xf32>
    %8 = vector.extract_strided_slice %7 {offsets = [0, 0], sizes = [8, 64], strides = [1, 1]} : vector<8x192xf32> to vector<8x64xf32>
    %9 = vector.shape_cast %8 : vector<8x64xf32> to vector<8x4x16xf32>
    %10 = vector.extract_strided_slice %7 {offsets = [0, 64], sizes = [8, 64], strides = [1, 1]} : vector<8x192xf32> to vector<8x64xf32>
    %11 = vector.shape_cast %10 : vector<8x64xf32> to vector<8x4x16xf32>
    %12 = vector.extract_strided_slice %7 {offsets = [0, 128], sizes = [8, 64], strides = [1, 1]} : vector<8x192xf32> to vector<8x64xf32>
    %13 = vector.shape_cast %12 : vector<8x64xf32> to vector<8x4x16xf32>
    %14 = arith.truncf %9 : vector<8x4x16xf32> to vector<8x4x16xbf16>
    %15 = arith.truncf %11 : vector<8x4x16xf32> to vector<8x4x16xbf16>
    "tpu.trace_start"() <{level = 10 : i32, message = "qhd,khd->hqk"}> : () -> ()
    %cst_5 = arith.constant dense<0.000000e+00> : vector<4x8x8xf32>
    %16 = tpu.matmul %14, %15, %cst_5 {dimension_numbers = #tpu.dot_dimension_numbers<[2], [2], [0], [0], [0, 1, 0, 0, 1, 0], [1], [1]>} : vector<8x4x16xbf16>, vector<8x4x16xbf16>, vector<4x8x8xf32> -> vector<4x8x8xf32>
    "tpu.trace_stop"() : () -> ()
    %cst_6 = arith.constant 2.500000e-01 : f32
    %17 = vector.broadcast %cst_6 : f32 to vector<4x8x8xf32>
    %18 = arith.mulf %16, %17 : vector<4x8x8xf32>
    %cst_7 = arith.constant dense<0xFF800000> : vector<4x8xf32>
    %19 = vector.multi_reduction <maximumf>, %18, %cst_7 [2] : vector<4x8x8xf32> to vector<4x8xf32>
    %20 = vector.shape_cast %19 : vector<4x8xf32> to vector<4x8x1xf32>
    %21 = vector.broadcast %20 : vector<4x8x1xf32> to vector<4x8x8xf32>
    %22 = arith.subf %18, %21 : vector<4x8x8xf32>
    %23 = math.exp %22 : vector<4x8x8xf32>
    %cst_8 = arith.constant dense<0.000000e+00> : vector<4x8xf32>
    %24 = vector.multi_reduction <add>, %23, %cst_8 [2] : vector<4x8x8xf32> to vector<4x8xf32>
    %25 = vector.shape_cast %24 : vector<4x8xf32> to vector<4x8x1xf32>
    %26 = tpu.reciprocal %25 {approx = true} : vector<4x8x1xf32> -> vector<4x8x1xf32>
    %27 = vector.broadcast %26 : vector<4x8x1xf32> to vector<4x8x8xf32>
    %28 = arith.mulf %23, %27 : vector<4x8x8xf32>
    %29 = arith.truncf %28 : vector<4x8x8xf32> to vector<4x8x8xbf16>
    %30 = arith.truncf %13 : vector<8x4x16xf32> to vector<8x4x16xbf16>
    "tpu.trace_start"() <{level = 10 : i32, message = "hqk,khd->qhd"}> : () -> ()
    %cst_9 = arith.constant dense<0.000000e+00> : vector<4x16x8xf32>
    %31 = tpu.matmul %30, %29, %cst_9 {dimension_numbers = #tpu.dot_dimension_numbers<[0], [2], [2], [1], [0, 1, 0, 2, 1, 1], [1], [0]>} : vector<8x4x16xbf16>, vector<4x8x8xbf16>, vector<4x16x8xf32> -> vector<4x16x8xf32>
    %32 = tpu.transpose %31, [2, 0, 1] : vector<4x16x8xf32> -> vector<8x4x16xf32>
    "tpu.trace_stop"() : () -> ()
    %33 = vector.shape_cast %32 : vector<8x4x16xf32> to vector<8x64xf32>
    %34 = vector.extract_strided_slice %6 {offsets = [8, 0], sizes = [8, 192], strides = [1, 1]} : vector<16x192xf32> to vector<8x192xf32>
    %35 = vector.extract_strided_slice %34 {offsets = [0, 0], sizes = [8, 64], strides = [1, 1]} : vector<8x192xf32> to vector<8x64xf32>
    %36 = vector.shape_cast %35 : vector<8x64xf32> to vector<8x4x16xf32>
    %37 = vector.extract_strided_slice %34 {offsets = [0, 64], sizes = [8, 64], strides = [1, 1]} : vector<8x192xf32> to vector<8x64xf32>
    %38 = vector.shape_cast %37 : vector<8x64xf32> to vector<8x4x16xf32>
    %39 = vector.extract_strided_slice %34 {offsets = [0, 128], sizes = [8, 64], strides = [1, 1]} : vector<8x192xf32> to vector<8x64xf32>
    %40 = vector.shape_cast %39 : vector<8x64xf32> to vector<8x4x16xf32>
    %41 = arith.truncf %36 : vector<8x4x16xf32> to vector<8x4x16xbf16>
    %42 = arith.truncf %38 : vector<8x4x16xf32> to vector<8x4x16xbf16>
    "tpu.trace_start"() <{level = 10 : i32, message = "qhd,khd->hqk"}> : () -> ()
    %cst_10 = arith.constant dense<0.000000e+00> : vector<4x8x8xf32>
    %43 = tpu.matmul %41, %42, %cst_10 {dimension_numbers = #tpu.dot_dimension_numbers<[2], [2], [0], [0], [0, 1, 0, 0, 1, 0], [1], [1]>} : vector<8x4x16xbf16>, vector<8x4x16xbf16>, vector<4x8x8xf32> -> vector<4x8x8xf32>
    "tpu.trace_stop"() : () -> ()
    %cst_11 = arith.constant 2.500000e-01 : f32
    %44 = vector.broadcast %cst_11 : f32 to vector<4x8x8xf32>
    %45 = arith.mulf %43, %44 : vector<4x8x8xf32>
    %cst_12 = arith.constant dense<0xFF800000> : vector<4x8xf32>
    %46 = vector.multi_reduction <maximumf>, %45, %cst_12 [2] : vector<4x8x8xf32> to vector<4x8xf32>
    %47 = vector.shape_cast %46 : vector<4x8xf32> to vector<4x8x1xf32>
    %48 = vector.broadcast %47 : vector<4x8x1xf32> to vector<4x8x8xf32>
    %49 = arith.subf %45, %48 : vector<4x8x8xf32>
    %50 = math.exp %49 : vector<4x8x8xf32>
    %cst_13 = arith.constant dense<0.000000e+00> : vector<4x8xf32>
    %51 = vector.multi_reduction <add>, %50, %cst_13 [2] : vector<4x8x8xf32> to vector<4x8xf32>
    %52 = vector.shape_cast %51 : vector<4x8xf32> to vector<4x8x1xf32>
    %53 = tpu.reciprocal %52 {approx = true} : vector<4x8x1xf32> -> vector<4x8x1xf32>
    %54 = vector.broadcast %53 : vector<4x8x1xf32> to vector<4x8x8xf32>
    %55 = arith.mulf %50, %54 : vector<4x8x8xf32>
    %56 = arith.truncf %55 : vector<4x8x8xf32> to vector<4x8x8xbf16>
    %57 = arith.truncf %40 : vector<8x4x16xf32> to vector<8x4x16xbf16>
    "tpu.trace_start"() <{level = 10 : i32, message = "hqk,khd->qhd"}> : () -> ()
    %cst_14 = arith.constant dense<0.000000e+00> : vector<4x16x8xf32>
    %58 = tpu.matmul %57, %56, %cst_14 {dimension_numbers = #tpu.dot_dimension_numbers<[0], [2], [2], [1], [0, 1, 0, 2, 1, 1], [1], [0]>} : vector<8x4x16xbf16>, vector<4x8x8xbf16>, vector<4x16x8xf32> -> vector<4x16x8xf32>
    %59 = tpu.transpose %58, [2, 0, 1] : vector<4x16x8xf32> -> vector<8x4x16xf32>
    "tpu.trace_stop"() : () -> ()
    %60 = vector.shape_cast %59 : vector<8x4x16xf32> to vector<8x64xf32>
    %61 = tpu.concatenate %33, %60 in 0 : vector<8x64xf32>, vector<8x64xf32> -> vector<16x64xf32>
    %62 = arith.truncf %61 : vector<16x64xf32> to vector<16x64xbf16>
    %c0_15 = arith.constant 0 : index
    %c0_16 = arith.constant 0 : index
    %63 = vector.load %arg4[%c0_15, %c0_16] : memref<64x64xbf16, #tpu.memory_space<vmem>>, vector<64x64xbf16>
    %cst_17 = arith.constant dense<0.000000e+00> : vector<16x64xf32>
    %64 = tpu.matmul %62, %63, %cst_17 {dimension_numbers = #tpu.dot_dimension_numbers<[1], [0], [0], [1], [0, 0, 1, 1], [], []>} : vector<16x64xbf16>, vector<64x64xbf16>, vector<16x64xf32> -> vector<16x64xf32>
    %c0_18 = arith.constant 0 : index
    %c0_19 = arith.constant 0 : index
    %65 = vector.load %arg5[%c0_18, %c0_19] : memref<1x64xf32, #tpu.memory_space<vmem>>, vector<1x64xf32>
    %66 = vector.broadcast %65 : vector<1x64xf32> to vector<16x64xf32>
    %67 = arith.addf %64, %66 : vector<16x64xf32>
    %68 = arith.addf %0, %67 : vector<16x64xf32>
    %c0_20 = arith.constant 0 : index
    %c0_21 = arith.constant 0 : index
    %69 = vector.load %arg10[%c0_20, %c0_21] : memref<1x64xf32, #tpu.memory_space<vmem>>, vector<1x64xf32>
    %c0_22 = arith.constant 0 : index
    %c0_23 = arith.constant 0 : index
    %70 = vector.load %arg11[%c0_22, %c0_23] : memref<1x64xf32, #tpu.memory_space<vmem>>, vector<1x64xf32>
    %cst_24 = arith.constant dense<0.000000e+00> : vector<16xf32>
    %71 = vector.multi_reduction <add>, %68, %cst_24 [1] : vector<16x64xf32> to vector<16xf32>
    %72 = vector.shape_cast %71 : vector<16xf32> to vector<16x1xf32>
    %cst_25 = arith.constant 6.400000e+01 : f32
    %73 = vector.broadcast %cst_25 : f32 to vector<16x1xf32>
    %74 = arith.divf %72, %73 : vector<16x1xf32>
    %75 = vector.broadcast %74 : vector<16x1xf32> to vector<16x64xf32>
    %76 = arith.subf %68, %75 : vector<16x64xf32>
    %77 = arith.mulf %76, %76 : vector<16x64xf32>
    %cst_26 = arith.constant dense<0.000000e+00> : vector<16xf32>
    %78 = vector.multi_reduction <add>, %77, %cst_26 [1] : vector<16x64xf32> to vector<16xf32>
    %79 = vector.shape_cast %78 : vector<16xf32> to vector<16x1xf32>
    %cst_27 = arith.constant 6.400000e+01 : f32
    %80 = vector.broadcast %cst_27 : f32 to vector<16x1xf32>
    %81 = arith.divf %79, %80 : vector<16x1xf32>
    %82 = vector.broadcast %74 : vector<16x1xf32> to vector<16x64xf32>
    %83 = arith.subf %68, %82 : vector<16x64xf32>
    %cst_28 = arith.constant 9.99999974E-6 : f32
    %84 = vector.broadcast %cst_28 : f32 to vector<16x1xf32>
    %85 = arith.addf %81, %84 : vector<16x1xf32>
    %86 = math.rsqrt %85 : vector<16x1xf32>
    %87 = vector.broadcast %86 : vector<16x1xf32> to vector<16x64xf32>
    %88 = arith.mulf %83, %87 : vector<16x64xf32>
    %89 = vector.broadcast %69 : vector<1x64xf32> to vector<16x64xf32>
    %90 = arith.mulf %88, %89 : vector<16x64xf32>
    %91 = vector.broadcast %70 : vector<1x64xf32> to vector<16x64xf32>
    %92 = arith.addf %90, %91 : vector<16x64xf32>
    %93 = arith.truncf %92 : vector<16x64xf32> to vector<16x64xbf16>
    %c0_29 = arith.constant 0 : index
    %c0_30 = arith.constant 0 : index
    %94 = vector.load %arg6[%c0_29, %c0_30] : memref<64x128xbf16, #tpu.memory_space<vmem>>, vector<64x128xbf16>
    %cst_31 = arith.constant dense<0.000000e+00> : vector<16x128xf32>
    %95 = tpu.matmul %93, %94, %cst_31 {dimension_numbers = #tpu.dot_dimension_numbers<[1], [0], [0], [1], [0, 0, 1, 1], [], []>} : vector<16x64xbf16>, vector<64x128xbf16>, vector<16x128xf32> -> vector<16x128xf32>
    %c0_32 = arith.constant 0 : index
    %c0_33 = arith.constant 0 : index
    %96 = vector.load %arg7[%c0_32, %c0_33] : memref<1x128xf32, #tpu.memory_space<vmem>>, vector<1x128xf32>
    %97 = vector.broadcast %96 : vector<1x128xf32> to vector<16x128xf32>
    %98 = arith.addf %95, %97 : vector<16x128xf32>
    %cst_34 = arith.constant 0.000000e+00 : f32
    %99 = vector.broadcast %cst_34 : f32 to vector<16x128xf32>
    %100 = arith.maximumf %98, %99 : vector<16x128xf32>
    %101 = arith.truncf %100 : vector<16x128xf32> to vector<16x128xbf16>
    %c0_35 = arith.constant 0 : index
    %c0_36 = arith.constant 0 : index
    %102 = vector.load %arg8[%c0_35, %c0_36] : memref<128x64xbf16, #tpu.memory_space<vmem>>, vector<128x64xbf16>
    %cst_37 = arith.constant dense<0.000000e+00> : vector<16x64xf32>
    %103 = tpu.matmul %101, %102, %cst_37 {dimension_numbers = #tpu.dot_dimension_numbers<[1], [0], [0], [1], [0, 0, 1, 1], [], []>} : vector<16x128xbf16>, vector<128x64xbf16>, vector<16x64xf32> -> vector<16x64xf32>
    %c0_38 = arith.constant 0 : index
    %c0_39 = arith.constant 0 : index
    %104 = vector.load %arg9[%c0_38, %c0_39] : memref<1x64xf32, #tpu.memory_space<vmem>>, vector<1x64xf32>
    %105 = vector.broadcast %104 : vector<1x64xf32> to vector<16x64xf32>
    %106 = arith.addf %103, %105 : vector<16x64xf32>
    %107 = arith.addf %92, %106 : vector<16x64xf32>
    %c0_40 = arith.constant 0 : index
    %c0_41 = arith.constant 0 : index
    %108 = vector.load %arg12[%c0_40, %c0_41] : memref<1x64xf32, #tpu.memory_space<vmem>>, vector<1x64xf32>
    %c0_42 = arith.constant 0 : index
    %c0_43 = arith.constant 0 : index
    %109 = vector.load %arg13[%c0_42, %c0_43] : memref<1x64xf32, #tpu.memory_space<vmem>>, vector<1x64xf32>
    %cst_44 = arith.constant dense<0.000000e+00> : vector<16xf32>
    %110 = vector.multi_reduction <add>, %107, %cst_44 [1] : vector<16x64xf32> to vector<16xf32>
    %111 = vector.shape_cast %110 : vector<16xf32> to vector<16x1xf32>
    %cst_45 = arith.constant 6.400000e+01 : f32
    %112 = vector.broadcast %cst_45 : f32 to vector<16x1xf32>
    %113 = arith.divf %111, %112 : vector<16x1xf32>
    %114 = vector.broadcast %113 : vector<16x1xf32> to vector<16x64xf32>
    %115 = arith.subf %107, %114 : vector<16x64xf32>
    %116 = arith.mulf %115, %115 : vector<16x64xf32>
    %cst_46 = arith.constant dense<0.000000e+00> : vector<16xf32>
    %117 = vector.multi_reduction <add>, %116, %cst_46 [1] : vector<16x64xf32> to vector<16xf32>
    %118 = vector.shape_cast %117 : vector<16xf32> to vector<16x1xf32>
    %cst_47 = arith.constant 6.400000e+01 : f32
    %119 = vector.broadcast %cst_47 : f32 to vector<16x1xf32>
    %120 = arith.divf %118, %119 : vector<16x1xf32>
    %121 = vector.broadcast %113 : vector<16x1xf32> to vector<16x64xf32>
    %122 = arith.subf %107, %121 : vector<16x64xf32>
    %cst_48 = arith.constant 9.99999974E-6 : f32
    %123 = vector.broadcast %cst_48 : f32 to vector<16x1xf32>
    %124 = arith.addf %120, %123 : vector<16x1xf32>
    %125 = math.rsqrt %124 : vector<16x1xf32>
    %126 = vector.broadcast %125 : vector<16x1xf32> to vector<16x64xf32>
    %127 = arith.mulf %122, %126 : vector<16x64xf32>
    %128 = vector.broadcast %108 : vector<1x64xf32> to vector<16x64xf32>
    %129 = arith.mulf %127, %128 : vector<16x64xf32>
    %130 = vector.broadcast %109 : vector<1x64xf32> to vector<16x64xf32>
    %131 = arith.addf %129, %130 : vector<16x64xf32>
    %c0_49 = arith.constant 0 : index
    %c0_50 = arith.constant 0 : index
    %132 = vector.load %arg14[%c0_49, %c0_50] : memref<16x64xf32, #tpu.memory_space<vmem>>, vector<16x64xf32>
    tpu.vector_store %arg14[%c0_49, %c0_50], %131 {strides = array<i32>} : memref<16x64xf32, #tpu.memory_space<vmem>>, vector<16x64xf32>,
    return
  }
  func.func @transform_0(%arg0: i32) -> (i32, i32) {
    %c0_i32 = arith.constant 0 : i32
    %c0_i32_0 = arith.constant 0 : i32
    %c0_i32_1 = arith.constant 0 : i32
    return %c0_i32, %c0_i32_0 : i32, i32
  }
  func.func @transform_1(%arg0: i32) -> (i32, i32) {
    %c0_i32 = arith.constant 0 : i32
    %c0_i32_0 = arith.constant 0 : i32
    %c0_i32_1 = arith.constant 0 : i32
    return %c0_i32, %c0_i32_0 : i32, i32
  }
  func.func @transform_2(%arg0: i32) -> (i32, i32) {
    %c0_i32 = arith.constant 0 : i32
    %c0_i32_0 = arith.constant 0 : i32
    %c0_i32_1 = arith.constant 0 : i32
    return %c0_i32, %c0_i32_0 : i32, i32
  }
  func.func @transform_3(%arg0: i32) -> (i32, i32) {
    %c0_i32 = arith.constant 0 : i32
    %c0_i32_0 = arith.constant 0 : i32
    %c0_i32_1 = arith.constant 0 : i32
    return %c0_i32, %c0_i32_0 : i32, i32
  }
  func.func @transform_4(%arg0: i32) -> (i32, i32) {
    %c0_i32 = arith.constant 0 : i32
    %c0_i32_0 = arith.constant 0 : i32
    %c0_i32_1 = arith.constant 0 : i32
    return %c0_i32, %c0_i32_0 : i32, i32
  }
  func.func @transform_5(%arg0: i32) -> (i32, i32) {
    %c0_i32 = arith.constant 0 : i32
    %c0_i32_0 = arith.constant 0 : i32
    %c0_i32_1 = arith.constant 0 : i32
    return %c0_i32, %c0_i32_0 : i32, i32
  }
  func.func @transform_6(%arg0: i32) -> (i32, i32) {
    %c0_i32 = arith.constant 0 : i32
    %c0_i32_0 = arith.constant 0 : i32
    %c0_i32_1 = arith.constant 0 : i32
    return %c0_i32, %c0_i32_0 : i32, i32
  }
  func.func @transform_7(%arg0: i32) -> (i32, i32) {
    %c0_i32 = arith.constant 0 : i32
    %c0_i32_0 = arith.constant 0 : i32
    %c0_i32_1 = arith.constant 0 : i32
    return %c0_i32, %c0_i32_0 : i32, i32
  }
  func.func @transform_8(%arg0: i32) -> (i32, i32) {
    %c0_i32 = arith.constant 0 : i32
    %c0_i32_0 = arith.constant 0 : i32
    %c0_i32_1 = arith.constant 0 : i32
    return %c0_i32, %c0_i32_0 : i32, i32
  }
  func.func @transform_9(%arg0: i32) -> (i32, i32) {
    %c0_i32 = arith.constant 0 : i32
    %c0_i32_0 = arith.constant 0 : i32
    %c0_i32_1 = arith.constant 0 : i32
    return %c0_i32, %c0_i32_0 : i32, i32
  }
  func.func @transform_10(%arg0: i32) -> (i32, i32) {
    %c0_i32 = arith.constant 0 : i32
    %c0_i32_0 = arith.constant 0 : i32
    %c0_i32_1 = arith.constant 0 : i32
    return %c0_i32, %c0_i32_0 : i32, i32
  }
  func.func @transform_11(%arg0: i32) -> (i32, i32) {
    %c0_i32 = arith.constant 0 : i32
    %c0_i32_0 = arith.constant 0 : i32
    %c0_i32_1 = arith.constant 0 : i32
    return %c0_i32, %c0_i32_0 : i32, i32
  }
  func.func @transform_12(%arg0: i32) -> (i32, i32) {
    %c0_i32 = arith.constant 0 : i32
    %c0_i32_0 = arith.constant 0 : i32
    %c0_i32_1 = arith.constant 0 : i32
    return %c0_i32, %c0_i32_0 : i32, i32
  }
  func.func @transform_13(%arg0: i32) -> (i32, i32) {
    %c0_i32 = arith.constant 0 : i32
    %c0_i32_0 = arith.constant 0 : i32
    %c0_i32_1 = arith.constant 0 : i32
    return %c0_i32, %c0_i32_0 : i32, i32
  }
}

</mosaic_0001>

<bundles_post_ra>
// kernel: _lambda_.4
= control target key start
LH: loop header
LB: loop body
LE: loop exit
PB: predicated region body
PF: predicated region fallthrough
CT: control target
= control target key end

     0   :  { %v1224_v1 = vmov 0   ;;  %vm45_vm0 = vcmask 130048   ;;  %v1225_v14 = vmov 0.0|0.0   ;;  %v25_v15 = vlaneseq  ;;  %s1227_s12 = smov 64   ;;  %s1228_s13 = smov 96   ;;  %s1558_s2 = inlined_call_operand.vmem [shape: bf16[64,256], index: 2, kind: input, shape index: {}]   ;;  %s1559_s1 = inlined_call_operand.vmem [shape: bf16[16,256], index: 1, kind: input, shape index: {}]   ;;  %s1560_s0 = inlined_call_operand.vmem [shape: f32[16,16], index: 0, kind: input, shape index: {}]   ;;  %s1561_s3 = inlined_call_operand.vmem [shape: f32[1,256], index: 3, kind: input, shape index: {}]   ;;  %s1562_s4 = inlined_call_operand.vmem [shape: f32[16,64], index: 4, kind: output, shape index: {}]  }
   0x1   :  { %v1257_v0 = vld [vmem:[%s1558_s2 + $0x4] ss:$8 sps:$4 sm:$0xff]   ;;  %81 = vmatprep.mubr.bf16.mxu0 %v1224_v1  ;;  %177 = vmatprep.mubr.bf16.mxu1 %v1224_v1  ;;  %v1264_v2 = vld [vmem:[%s1558_s2] ss:$8 sps:$4 sm:$0xff]   ;;  %v1270_v3 = vld [vmem:[%s1558_s2 + $0x14] ss:$8 sps:$4 sm:$0xff]  }
   0x2   :  { %145 = vmatprep.subr.bf16.mxu1 %v1257_v0  ;;  %v1275_v4 = vld [vmem:[%s1558_s2 + $0x10] ss:$8 sps:$4 sm:$0xff]   ;;  %v1087_v5 = vld [vmem:[%s1559_s1 + $0x4] ss:$8 sps:$4 sm:$0xff]   ;;  %v1089_v6 = vld [vmem:[%s1559_s1] ss:$8 sps:$4 sm:$0xff]  }
   0x3   :  { %146 = vmatpush1.bf16.msra.mxu1 %v1264_v2  ;;  %v1288_v7 = vld [vmem:[%s1558_s2 + $0x24] ss:$8 sps:$4 sm:$0xff]   ;;  %49 = vmatprep.subr.bf16.mxu0 %v1087_v5  ;;  %v1300_v11 = vld [vmem:[%s1558_s2 + $0x20] ss:$8 sps:$4 sm:$0xff]   ;;  %v1307_v12 = vld [vmem:[%s1558_s2 + $0x34] ss:$8 sps:$4 sm:$0xff]  }
   0x4   :  { %147 = vmatprep.subr.bf16.mxu1 %v1270_v3  ;;  %v18_v8 = vld [vmem:[%s1560_s0] sm:$0xff]  ;;  %v19_v9 = vld [vmem:[%s1560_s0 + $0x8] sm:$0xff]  ;;  %50 = vmatpush1.bf16.msra.mxu0 %v1089_v6  ;;  %v1315_v13 = vld [vmem:[%s1558_s2 + $0x30] ss:$8 sps:$4 sm:$0xff]   ;;  %v26_v16 = vshrl.u32 %v25_v15, 7  ;;  %vm247_vm1 = vcmask 261120  }
   0x5   :  { %v20_v10 = vpack.c.bf16 %v19_v9, %v18_v8  ;;  %253 = vmatprep.subr.bf16.mxu0 %v1257_v0  ;;  %v23_v18 = vld [vmem:[%s1561_s3] sm:$0x3]  ;;  %s1226_s3 = smov 32   ;;  %vm141_vm2 = vcmask 523264   ;;  %vm1027_vm3 = vcmask 1041408   ;;  %vm1029_vm4 = vcmask 1043456  }
   0x6   :  { %v31_v17 = vsub.s32 1, %v26_v16  ;;  %v27_v19 = vsub.s32 0, %v26_v16  ;;  %vm1031_vm5 = vcmask 1045504  }
   0x7   :  { %148 = vmatpush1.bf16.msra.mxu1 %v1275_v4  ;;  %1044 = vmatmul.mubr.msk.bf16.vlgmr.msra.gmra.mrb[0].mxu0 %vm45_vm0, %v20_v10 }
   0x8   :  { %149 = vmatprep.subr.bf16.mxu1 %v1288_v7  ;;  %254 = vmatpush1.bf16.msra.mxu0 %v1264_v2  ;;  %v32_v20 = vrot.slane %v23_v18, %v31_v17  ;;  %v28_v21 = vrot.slane %v23_v18, %v27_v19 }
   0x9   :  { %285 = vmatprep.mubr.bf16.mxu0 %v1224_v1  ;;  %255 = vmatprep.subr.bf16.mxu0 %v1270_v3 }
   0xb   :  { %150 = vmatpush1.bf16.msra.mxu1 %v1300_v11 }
   0xc   :  { %151 = vmatprep.subr.bf16.mxu1 %v1307_v12  ;;  %256 = vmatpush1.bf16.msra.mxu0 %v1275_v4 }
   0xd   :  { %257 = vmatprep.subr.bf16.mxu0 %v1288_v7 }
   0xf   :  { %152 = vmatpush1.bf16.msra.mxu1 %v1315_v13 }
  0x10   :  { %362 = vmatprep.subr.bf16.mxu1 %v1257_v0  ;;  %258 = vmatpush1.bf16.msra.mxu0 %v1300_v11 }
  0x11   :  { %259 = vmatprep.subr.bf16.mxu0 %v1307_v12 }
  0x12   :  { %178 = vmatmul.mubr.bf16.vlgmr.msra.gmra.mrb[0].mxu1 %v1225_v14 }
  0x13   :  { %363 = vmatpush1.bf16.msra.mxu1 %v1264_v2  ;;  %394 = vmatprep.mubr.bf16.mxu1 %v1224_v1 }
  0x14   :  { %364 = vmatprep.subr.bf16.mxu1 %v1270_v3  ;;  %260 = vmatpush1.bf16.msra.mxu0 %v1315_v13 }
  0x15   :  { %470 = vmatprep.subr.bf16.mxu0 %v1257_v0 }
  0x17   :  { %365 = vmatpush1.bf16.msra.mxu1 %v1275_v4 }
  0x18   :  { %366 = vmatprep.subr.bf16.mxu1 %v1288_v7 }
  0x1b   :  { %367 = vmatpush1.bf16.msra.mxu1 %v1300_v11 }
  0x1c   :  { %368 = vmatprep.subr.bf16.mxu1 %v1307_v12 }
  0x1f   :  { %369 = vmatpush1.bf16.msra.mxu1 %v1315_v13 }
  0x20   :  { %576 = vmatprep.subr.bf16.mxu1 %v1257_v0 }
  0xda   :  { %v83_v22 = vpop.f32.mrb[0].mxu0 }
  0xdb   :  { %v85_v23 = vpop.f32.mrb[1].mxu0  ;;  %v1345_v29 = vadd.f32 %v83_v22, %v28_v21 }
  0xdc   :  { %v1339_v24 = vadd.f32 %v85_v23, %v32_v20  ;;  %v87_v25 = vpop.f32.mrb[2].mxu0 }
  0xdd   :  { %v1341_v26 = vadd.f32 %v87_v25, %v28_v21  ;;  %v89_v27 = vpop.f32.mrb[3].mxu0  ;;  %v295_v9 = vrot.slane %v1345_v29, 2 }
  0xde   :  { %v1343_v28 = vadd.f32 %v89_v27, %v32_v20 }
  0xe0   :  { %v188_v30 = vrot.slane %v1343_v28, 6  ;;  %v298_v14 = vrot.slane %v1343_v28, 4 }
  0xe5   :  { %v179_v31 = vpop.f32.mrb[0].mxu1 }
  0xe6   :  { %v186_v32 = vadd.f32 %v179_v31, %v1345_v29  ;;  %v181_v33 = vpop.f32.mrb[1].mxu1 }
  0xe7   :  { %v183_v34 = vpop.f32.mrb[2].mxu1  ;;  %v190_v35 = vadd.f32 %v188_v30, %v181_v33 }
  0xe8   :  { %1096 = vtanh.f32 %v186_v32  ;;  %v184_v36 = vpop.f32.mrb[3].mxu1  ;;  %v1053_v39 = vmul.f32 -1.442695, %v186_v32 }
  0xe9   :  { %1098 = vtanh.f32 %v190_v35  ;;  %v1054_v40 = vmul.f32 -1.442695, %v190_v35 }
  0xea   :  { %1100 = vpow2.f32 %v1053_v39 }
  0xeb   :  { %1102 = vpow2.f32 %v1054_v40 }
  0xf2   :  { %v1097_v37 = vpop.eup %1096 }
  0xf3   :  { %206 = vrot.lane.b32.xlu0 %v1097_v37, %s1226_s3  ;;  %v1099_v38 = vpop.eup %1098 }
  0xf4   :  { %v1101_v41 = vpop.eup %1100 }
  0xf5   :  { %v194_v42 = vadd.f32 1.0, %v1101_v41  ;;  %v1103_v43 = vpop.eup %1102 }
  0xf6   :  { %v200_v44 = vadd.f32 1.0, %v1103_v43 }
  0xf7   :  { %218 = vrot.lane.b32.xlu0 %v1099_v38, %s1226_s3  ;;  %1104 = vrcp.f32 %v194_v42 }
  0xf8   :  { %1106 = vrcp.f32 %v200_v44 }
 0x101   :  { %v1105_v45 = vpop.eup %1104 }
 0x102   :  { %v1107_v48 = vpop.eup %1106  ;;  %v203_v51 = vmul.f32 0.0, %v1105_v45 }
 0x103   :  { %v215_v54 = vmul.f32 0.0, %v1107_v48 }
 0x165   :  { %v207_v46 = vpop.permute.xlu0 %206 }
 0x166   :  { %v209_v47 = vmul.f32 %v1105_v45, %v207_v46 }
 0x168   :  { %211 = vrot.lane.b32.xlu1 %v209_v47, %s1226_s3 }
 0x169   :  { %v219_v49 = vpop.permute.xlu0 %218 }
 0x16a   :  { %v221_v50 = vmul.f32 %v1107_v48, %v219_v49 }
 0x16c   :  { %223 = vrot.lane.b32.xlu1 %v221_v50, %s1226_s3 }
 0x1da   :  { %v212_v52 = vpop.permute.xlu1 %211 }
 0x1db   :  { %v1353_v53 = vadd.f32 %v212_v52, %v203_v51 }
 0x1dd   :  { %1108 = vtanh.f32 %v1353_v53 }
 0x1de   :  { %v224_v55 = vpop.permute.xlu1 %223 }
 0x1df   :  { %v1356_v56 = vadd.f32 %v224_v55, %v215_v54  ;;  %v403_v54 = vrot.slane %v1345_v29, 4 }
 0x1e1   :  { %1110 = vtanh.f32 %v1356_v56 }
 0x1e7   :  { %v1109_v57 = vpop.eup %1108 }
 0x1e8   :  { %229 = vrot.lane.b32.xlu0 %v1109_v57, %s1226_s3 }
 0x1eb   :  { %v1111_v58 = vpop.eup %1110 }
 0x1ec   :  { %235 = vrot.lane.b32.xlu1 %v1111_v58, %s1226_s3 }
 0x25a   :  { %v230_v59 = vpop.permute.xlu0 %229 }
 0x25b   :  { %v232_v60 = vmul.f32 %v1105_v45, %v230_v59 }
 0x25d   :  { %240 = vrot.lane.b32.xlu0 %v232_v60, %s1227_s12 }
 0x25e   :  { %v236_v61 = vpop.permute.xlu1 %235 }
 0x25f   :  { %v238_v62 = vmul.f32 %v1107_v48, %v236_v61 }
 0x261   :  { %244 = vrot.lane.b32.xlu1 %v238_v62, %s1228_s13 }
 0x2cf   :  { %v1363_v63 = vpop.permute.xlu0 %240 }
 0x2d3   :  { %v1365_v5 = vpop.permute.xlu1 %244 }
 0x2d4   :  { %v248_v6 = vsel %vm247_vm1, %v1363_v63, %v1365_v5 }
 0x2d5   :  { %v249_v8 = vpack.c.bf16 %v248_v6, %v248_v6 }
 0x2d7   :  { %1055 = vmatmul.mubr.msk.bf16.vlgmr.msra.gmra.mrb[4].mxu0 %vm141_vm2, %v249_v8 }
 0x2d8   :  { %471 = vmatpush1.bf16.msra.mxu0 %v1264_v2  ;;  %502 = vmatprep.mubr.bf16.mxu0 %v1224_v1 }
 0x2d9   :  { %472 = vmatprep.subr.bf16.mxu0 %v1270_v3 }
 0x2dc   :  { %473 = vmatpush1.bf16.msra.mxu0 %v1275_v4 }
 0x2dd   :  { %474 = vmatprep.subr.bf16.mxu0 %v1288_v7 }
 0x2e0   :  { %475 = vmatpush1.bf16.msra.mxu0 %v1300_v11 }
 0x2e1   :  { %476 = vmatprep.subr.bf16.mxu0 %v1307_v12 }
 0x2e4   :  { %477 = vmatpush1.bf16.msra.mxu0 %v1315_v13 }
 0x2e5   :  { %683 = vmatprep.subr.bf16.mxu0 %v1257_v0 }
 0x3aa   :  { %v287_v10 = vpop.f32.mrb[4].mxu0 }
 0x3ab   :  { %v297_v15 = vadd.f32 %v295_v9, %v287_v10  ;;  %v289_v16 = vpop.f32.mrb[5].mxu0 }
 0x3ac   :  { %v300_v17 = vadd.f32 %v298_v14, %v289_v16  ;;  %v291_v18 = vpop.f32.mrb[6].mxu0 }
 0x3ad   :  { %1112 = vtanh.f32 %v297_v15  ;;  %v292_v19 = vpop.f32.mrb[7].mxu0  ;;  %v1056_v22 = vmul.f32 -1.442695, %v297_v15 }
 0x3ae   :  { %1114 = vtanh.f32 %v300_v17  ;;  %v1057_v23 = vmul.f32 -1.442695, %v300_v17 }
 0x3af   :  { %1116 = vpow2.f32 %v1056_v22 }
 0x3b0   :  { %1118 = vpow2.f32 %v1057_v23 }
 0x3b7   :  { %v1113_v20 = vpop.eup %1112 }
 0x3b8   :  { %v1115_v21 = vpop.eup %1114  ;;  %316 = vrot.lane.b32.xlu0 %v1113_v20, %s1226_s3 }
 0x3b9   :  { %328 = vrot.lane.b32.xlu1 %v1115_v21, %s1226_s3  ;;  %v1117_v25 = vpop.eup %1116 }
 0x3ba   :  { %v1119_v27 = vpop.eup %1118  ;;  %v304_v30 = vadd.f32 1.0, %v1117_v25 }
 0x3bb   :  { %v310_v31 = vadd.f32 1.0, %v1119_v27 }
 0x3bc   :  { %1120 = vrcp.f32 %v304_v30 }
 0x3bd   :  { %1122 = vrcp.f32 %v310_v31 }
 0x3c6   :  { %v1121_v32 = vpop.eup %1120 }
 0x3c7   :  { %v1123_v34 = vpop.eup %1122  ;;  %v313_v38 = vmul.f32 %v1121_v32, %v1353_v53 }
 0x3c8   :  { %v325_v40 = vmul.f32 %v1123_v34, %v1356_v56  ;;  %v406_v56 = vrot.slane %v1343_v28, 2 }
 0x42a   :  { %v317_v33 = vpop.permute.xlu0 %316 }
 0x42b   :  { %v319_v35 = vmul.f32 %v1121_v32, %v317_v33  ;;  %v329_v36 = vpop.permute.xlu1 %328 }
 0x42c   :  { %v331_v37 = vmul.f32 %v1123_v34, %v329_v36 }
 0x42d   :  { %321 = vrot.lane.b32.xlu0 %v319_v35, %s1226_s3 }
 0x42e   :  { %333 = vrot.lane.b32.xlu1 %v331_v37, %s1226_s3 }
 0x49f   :  { %v322_v39 = vpop.permute.xlu0 %321 }
 0x4a0   :  { %v324_v41 = vadd.f32 %v322_v39, %v313_v38  ;;  %v334_v42 = vpop.permute.xlu1 %333 }
 0x4a1   :  { %v336_v43 = vadd.f32 %v334_v42, %v325_v40 }
 0x4a2   :  { %1124 = vtanh.f32 %v324_v41 }
 0x4a3   :  { %1126 = vtanh.f32 %v336_v43 }
 0x4ac   :  { %v1125_v44 = vpop.eup %1124 }
 0x4ad   :  { %v1127_v45 = vpop.eup %1126  ;;  %339 = vrot.lane.b32.xlu0 %v1125_v44, %s1226_s3 }
 0x4ae   :  { %345 = vrot.lane.b32.xlu1 %v1127_v45, %s1226_s3 }
 0x51f   :  { %v340_v46 = vpop.permute.xlu0 %339 }
 0x520   :  { %v342_v47 = vmul.f32 %v1121_v32, %v340_v46  ;;  %v346_v48 = vpop.permute.xlu1 %345 }
 0x521   :  { %v348_v49 = vmul.f32 %v1123_v34, %v346_v48 }
 0x522   :  { %350 = vrot.lane.b32.xlu0 %v342_v47, %s1227_s12 }
 0x523   :  { %354 = vrot.lane.b32.xlu1 %v348_v49, %s1228_s13 }
 0x594   :  { %v1392_v50 = vpop.permute.xlu0 %350 }
 0x595   :  { %v1394_v51 = vpop.permute.xlu1 %354 }
 0x596   :  { %v357_v52 = vsel %vm247_vm1, %v1392_v50, %v1394_v51 }
 0x597   :  { %v358_v53 = vpack.c.bf16 %v357_v52, %v357_v52 }
 0x599   :  { %1058 = vmatmul.mubr.msk.bf16.vlgmr.msra.gmra.mrb[4].mxu1 %vm141_vm2, %v358_v53 }
 0x59a   :  { %577 = vmatpush1.bf16.msra.mxu1 %v1264_v2  ;;  %608 = vmatprep.mubr.bf16.mxu1 %v1224_v1 }
 0x59b   :  { %578 = vmatprep.subr.bf16.mxu1 %v1270_v3 }
 0x59e   :  { %579 = vmatpush1.bf16.msra.mxu1 %v1275_v4 }
 0x59f   :  { %580 = vmatprep.subr.bf16.mxu1 %v1288_v7 }
 0x5a2   :  { %581 = vmatpush1.bf16.msra.mxu1 %v1300_v11 }
 0x5a3   :  { %582 = vmatprep.subr.bf16.mxu1 %v1307_v12 }
 0x5a6   :  { %583 = vmatpush1.bf16.msra.mxu1 %v1315_v13 }
 0x5a7   :  { %792 = vmatprep.subr.bf16.mxu1 %v1257_v0 }
 0x66c   :  { %v396_v55 = vpop.f32.mrb[4].mxu1 }
 0x66d   :  { %v405_v57 = vadd.f32 %v403_v54, %v396_v55  ;;  %v398_v58 = vpop.f32.mrb[5].mxu1 }
 0x66e   :  { %v408_v59 = vadd.f32 %v406_v56, %v398_v58  ;;  %v400_v60 = vpop.f32.mrb[6].mxu1 }
 0x66f   :  { %1128 = vtanh.f32 %v405_v57  ;;  %v401_v61 = vpop.f32.mrb[7].mxu1  ;;  %v1059_v8 = vmul.f32 -1.442695, %v405_v57 }
 0x670   :  { %1130 = vtanh.f32 %v408_v59  ;;  %v1060_v9 = vmul.f32 -1.442695, %v408_v59 }
 0x671   :  { %1132 = vpow2.f32 %v1059_v8 }
 0x672   :  { %1134 = vpow2.f32 %v1060_v9 }
 0x679   :  { %v1129_v62 = vpop.eup %1128 }
 0x67a   :  { %v1131_v6 = vpop.eup %1130  ;;  %424 = vrot.lane.b32.xlu0 %v1129_v62, %s1226_s3 }
 0x67b   :  { %436 = vrot.lane.b32.xlu1 %v1131_v6, %s1226_s3  ;;  %v1133_v10 = vpop.eup %1132 }
 0x67c   :  { %v1135_v14 = vpop.eup %1134  ;;  %v412_v15 = vadd.f32 1.0, %v1133_v10 }
 0x67d   :  { %v418_v16 = vadd.f32 1.0, %v1135_v14 }
 0x67e   :  { %1136 = vrcp.f32 %v412_v15 }
 0x67f   :  { %1138 = vrcp.f32 %v418_v16 }
 0x688   :  { %v1137_v17 = vpop.eup %1136 }
 0x689   :  { %v1139_v19 = vpop.eup %1138  ;;  %v421_v23 = vmul.f32 %v1137_v17, %v324_v41 }
 0x68a   :  { %v433_v27 = vmul.f32 %v1139_v19, %v336_v43  ;;  %v511_v43 = vrot.slane %v1345_v29, 6 }
 0x6ec   :  { %v425_v18 = vpop.permute.xlu0 %424 }
 0x6ed   :  { %v427_v20 = vmul.f32 %v1137_v17, %v425_v18  ;;  %v437_v21 = vpop.permute.xlu1 %436 }
 0x6ee   :  { %v439_v22 = vmul.f32 %v1139_v19, %v437_v21 }
 0x6ef   :  { %429 = vrot.lane.b32.xlu0 %v427_v20, %s1226_s3 }
 0x6f0   :  { %441 = vrot.lane.b32.xlu1 %v439_v22, %s1226_s3 }
 0x761   :  { %v430_v25 = vpop.permute.xlu0 %429 }
 0x762   :  { %v432_v30 = vadd.f32 %v430_v25, %v421_v23  ;;  %v442_v31 = vpop.permute.xlu1 %441 }
 0x763   :  { %v444_v32 = vadd.f32 %v442_v31, %v433_v27  ;;  %v619_v31 = vrot.slane %v1339_v24, 6 }
 0x764   :  { %1140 = vtanh.f32 %v432_v30 }
 0x765   :  { %1142 = vtanh.f32 %v444_v32 }
 0x76e   :  { %v1141_v33 = vpop.eup %1140 }
 0x76f   :  { %v1143_v34 = vpop.eup %1142  ;;  %447 = vrot.lane.b32.xlu0 %v1141_v33, %s1226_s3 }
 0x770   :  { %453 = vrot.lane.b32.xlu1 %v1143_v34, %s1226_s3 }
 0x7e1   :  { %v448_v35 = vpop.permute.xlu0 %447 }
 0x7e2   :  { %v450_v36 = vmul.f32 %v1137_v17, %v448_v35  ;;  %v454_v37 = vpop.permute.xlu1 %453 }
 0x7e3   :  { %v456_v38 = vmul.f32 %v1139_v19, %v454_v37 }
 0x7e4   :  { %458 = vrot.lane.b32.xlu0 %v450_v36, %s1227_s12 }
 0x7e5   :  { %462 = vrot.lane.b32.xlu1 %v456_v38, %s1228_s13 }
 0x856   :  { %v1419_v39 = vpop.permute.xlu0 %458 }
 0x857   :  { %v1421_v40 = vpop.permute.xlu1 %462 }
 0x858   :  { %v465_v41 = vsel %vm247_vm1, %v1419_v39, %v1421_v40 }
 0x859   :  { %v466_v42 = vpack.c.bf16 %v465_v41, %v465_v41 }
 0x85b   :  { %1061 = vmatmul.mubr.msk.bf16.vlgmr.msra.gmra.mrb[8].mxu0 %vm141_vm2, %v466_v42 }
 0x85c   :  { %684 = vmatpush1.bf16.msra.mxu0 %v1264_v2  ;;  %715 = vmatprep.mubr.bf16.mxu0 %v1224_v1 }
 0x85d   :  { %685 = vmatprep.subr.bf16.mxu0 %v1270_v3 }
 0x860   :  { %686 = vmatpush1.bf16.msra.mxu0 %v1275_v4 }
 0x861   :  { %687 = vmatprep.subr.bf16.mxu0 %v1288_v7 }
 0x864   :  { %688 = vmatpush1.bf16.msra.mxu0 %v1300_v11 }
 0x865   :  { %689 = vmatprep.subr.bf16.mxu0 %v1307_v12 }
 0x868   :  { %690 = vmatpush1.bf16.msra.mxu0 %v1315_v13 }
 0x869   :  { %900 = vmatprep.subr.bf16.mxu0 %v1257_v0 }
 0x92e   :  { %v504_v44 = vpop.f32.mrb[8].mxu0 }
 0x92f   :  { %v513_v45 = vadd.f32 %v511_v43, %v504_v44  ;;  %v506_v46 = vpop.f32.mrb[9].mxu0 }
 0x930   :  { %v514_v47 = vadd.f32 %v506_v46, %v1343_v28  ;;  %v508_v48 = vpop.f32.mrb[10].mxu0 }
 0x931   :  { %1144 = vtanh.f32 %v513_v45  ;;  %v509_v49 = vpop.f32.mrb[11].mxu0  ;;  %v1062_v54 = vmul.f32 -1.442695, %v513_v45 }
 0x932   :  { %1146 = vtanh.f32 %v514_v47  ;;  %v1063_v55 = vmul.f32 -1.442695, %v514_v47 }
 0x933   :  { %1148 = vpow2.f32 %v1062_v54 }
 0x934   :  { %1150 = vpow2.f32 %v1063_v55 }
 0x93b   :  { %v1145_v52 = vpop.eup %1144 }
 0x93c   :  { %v1147_v53 = vpop.eup %1146  ;;  %530 = vrot.lane.b32.xlu0 %v1145_v52, %s1226_s3 }
 0x93d   :  { %542 = vrot.lane.b32.xlu1 %v1147_v53, %s1226_s3  ;;  %v1149_v0 = vpop.eup %1148 }
 0x93e   :  { %v1151_v29 = vpop.eup %1150  ;;  %v518_v56 = vadd.f32 1.0, %v1149_v0 }
 0x93f   :  { %v524_v57 = vadd.f32 1.0, %v1151_v29 }
 0x940   :  { %1152 = vrcp.f32 %v518_v56 }
 0x941   :  { %1154 = vrcp.f32 %v524_v57 }
 0x94a   :  { %v1153_v28 = vpop.eup %1152 }
 0x94b   :  { %v1155_v59 = vpop.eup %1154  ;;  %v527_v6 = vmul.f32 %v1153_v28, %v432_v30 }
 0x94c   :  { %v539_v9 = vmul.f32 %v1155_v59, %v444_v32 }
 0x9ae   :  { %v531_v58 = vpop.permute.xlu0 %530 }
 0x9af   :  { %v533_v60 = vmul.f32 %v1153_v28, %v531_v58  ;;  %v543_v61 = vpop.permute.xlu1 %542 }
 0x9b0   :  { %v545_v62 = vmul.f32 %v1155_v59, %v543_v61 }
 0x9b1   :  { %535 = vrot.lane.b32.xlu0 %v533_v60, %s1226_s3 }
 0x9b2   :  { %547 = vrot.lane.b32.xlu1 %v545_v62, %s1226_s3 }
 0xa23   :  { %v536_v8 = vpop.permute.xlu0 %535 }
 0xa24   :  { %v538_v10 = vadd.f32 %v536_v8, %v527_v6  ;;  %v548_v14 = vpop.permute.xlu1 %547 }
 0xa25   :  { %v550_v15 = vadd.f32 %v548_v14, %v539_v9 }
 0xa26   :  { %1156 = vtanh.f32 %v538_v10 }
 0xa27   :  { %1158 = vtanh.f32 %v550_v15 }
 0xa30   :  { %v1157_v16 = vpop.eup %1156 }
 0xa31   :  { %v1159_v17 = vpop.eup %1158  ;;  %553 = vrot.lane.b32.xlu0 %v1157_v16, %s1226_s3 }
 0xa32   :  { %559 = vrot.lane.b32.xlu1 %v1159_v17, %s1226_s3  ;;  %v728_v17 = vrot.slane %v1339_v24, 4 }
 0xaa3   :  { %v554_v18 = vpop.permute.xlu0 %553 }
 0xaa4   :  { %v556_v19 = vmul.f32 %v1153_v28, %v554_v18  ;;  %v560_v20 = vpop.permute.xlu1 %559 }
 0xaa5   :  { %v562_v21 = vmul.f32 %v1155_v59, %v560_v20 }
 0xaa6   :  { %564 = vrot.lane.b32.xlu0 %v556_v19, %s1227_s12 }
 0xaa7   :  { %568 = vrot.lane.b32.xlu1 %v562_v21, %s1228_s13 }
 0xb18   :  { %v1446_v22 = vpop.permute.xlu0 %564 }
 0xb19   :  { %v1448_v23 = vpop.permute.xlu1 %568 }
 0xb1a   :  { %v571_v25 = vsel %vm247_vm1, %v1446_v22, %v1448_v23 }
 0xb1b   :  { %v572_v27 = vpack.c.bf16 %v571_v25, %v571_v25 }
 0xb1d   :  { %1064 = vmatmul.mubr.msk.bf16.vlgmr.msra.gmra.mrb[8].mxu1 %vm141_vm2, %v572_v27 }
 0xb1e   :  { %793 = vmatpush1.bf16.msra.mxu1 %v1264_v2  ;;  %824 = vmatprep.mubr.bf16.mxu1 %v1224_v1 }
 0xb1f   :  { %794 = vmatprep.subr.bf16.mxu1 %v1270_v3 }
 0xb22   :  { %795 = vmatpush1.bf16.msra.mxu1 %v1275_v4 }
 0xb23   :  { %796 = vmatprep.subr.bf16.mxu1 %v1288_v7 }
 0xb26   :  { %797 = vmatpush1.bf16.msra.mxu1 %v1300_v11 }
 0xb27   :  { %798 = vmatprep.subr.bf16.mxu1 %v1307_v12 }
 0xb2a   :  { %799 = vmatpush1.bf16.msra.mxu1 %v1315_v13 }
 0xbf0   :  { %v610_v30 = vpop.f32.mrb[8].mxu1 }
 0xbf1   :  { %v617_v32 = vadd.f32 %v610_v30, %v1341_v26  ;;  %v612_v33 = vpop.f32.mrb[9].mxu1 }
 0xbf2   :  { %v621_v34 = vadd.f32 %v619_v31, %v612_v33  ;;  %v614_v35 = vpop.f32.mrb[10].mxu1 }
 0xbf3   :  { %1160 = vtanh.f32 %v617_v32  ;;  %v615_v36 = vpop.f32.mrb[11].mxu1  ;;  %v1065_v41 = vmul.f32 -1.442695, %v617_v32 }
 0xbf4   :  { %1162 = vtanh.f32 %v621_v34  ;;  %v1066_v42 = vmul.f32 -1.442695, %v621_v34 }
 0xbf5   :  { %1164 = vpow2.f32 %v1065_v41 }
 0xbf6   :  { %1166 = vpow2.f32 %v1066_v42 }
 0xbfd   :  { %v1161_v37 = vpop.eup %1160 }
 0xbfe   :  { %v1163_v38 = vpop.eup %1162  ;;  %637 = vrot.lane.b32.xlu0 %v1161_v37, %s1226_s3 }
 0xbff   :  { %649 = vrot.lane.b32.xlu1 %v1163_v38, %s1226_s3  ;;  %v1165_v43 = vpop.eup %1164 }
 0xc00   :  { %v1167_v44 = vpop.eup %1166  ;;  %v625_v45 = vadd.f32 1.0, %v1165_v43 }
 0xc01   :  { %v631_v46 = vadd.f32 1.0, %v1167_v44 }
 0xc02   :  { %1168 = vrcp.f32 %v625_v45 }
 0xc03   :  { %1170 = vrcp.f32 %v631_v46 }
 0xc0c   :  { %v1169_v47 = vpop.eup %1168 }
 0xc0d   :  { %v1171_v49 = vpop.eup %1170  ;;  %v634_v55 = vmul.f32 %v1169_v47, %v538_v10 }
 0xc0e   :  { %v646_v29 = vmul.f32 %v1171_v49, %v550_v15  ;;  %v725_v15 = vrot.slane %v1341_v26, 2 }
 0xc70   :  { %v638_v48 = vpop.permute.xlu0 %637 }
 0xc71   :  { %v640_v52 = vmul.f32 %v1169_v47, %v638_v48  ;;  %v650_v53 = vpop.permute.xlu1 %649 }
 0xc72   :  { %v652_v54 = vmul.f32 %v1171_v49, %v650_v53 }
 0xc73   :  { %642 = vrot.lane.b32.xlu0 %v640_v52, %s1226_s3 }
 0xc74   :  { %654 = vrot.lane.b32.xlu1 %v652_v54, %s1226_s3 }
 0xce5   :  { %v643_v0 = vpop.permute.xlu0 %642 }
 0xce6   :  { %v645_v56 = vadd.f32 %v643_v0, %v634_v55  ;;  %v655_v57 = vpop.permute.xlu1 %654  ;;  %v833_v55 = vrot.slane %v1341_v26, 4 }
 0xce7   :  { %v657_v28 = vadd.f32 %v655_v57, %v646_v29  ;;  %v836_v29 = vrot.slane %v1339_v24, 2 }
 0xce8   :  { %1172 = vtanh.f32 %v645_v56 }
 0xce9   :  { %1174 = vtanh.f32 %v657_v28 }
 0xcf2   :  { %v1173_v58 = vpop.eup %1172 }
 0xcf3   :  { %v1175_v59 = vpop.eup %1174  ;;  %660 = vrot.lane.b32.xlu0 %v1173_v58, %s1226_s3 }
 0xcf4   :  { %666 = vrot.lane.b32.xlu1 %v1175_v59, %s1226_s3 }
 0xd65   :  { %v661_v60 = vpop.permute.xlu0 %660 }
 0xd66   :  { %v663_v61 = vmul.f32 %v1169_v47, %v661_v60  ;;  %v667_v62 = vpop.permute.xlu1 %666 }
 0xd67   :  { %v669_v6 = vmul.f32 %v1171_v49, %v667_v62 }
 0xd68   :  { %671 = vrot.lane.b32.xlu0 %v663_v61, %s1227_s12 }
 0xd69   :  { %675 = vrot.lane.b32.xlu1 %v669_v6, %s1228_s13 }
 0xdda   :  { %v1472_v8 = vpop.permute.xlu0 %671 }
 0xddb   :  { %v1474_v9 = vpop.permute.xlu1 %675 }
 0xddc   :  { %v678_v10 = vsel %vm247_vm1, %v1472_v8, %v1474_v9 }
 0xddd   :  { %v679_v14 = vpack.c.bf16 %v678_v10, %v678_v10 }
 0xddf   :  { %1067 = vmatmul.mubr.msk.bf16.vlgmr.msra.gmra.mrb[12].mxu0 %vm141_vm2, %v679_v14 }
 0xde0   :  { %901 = vmatpush1.bf16.msra.mxu0 %v1264_v2  ;;  %932 = vmatprep.mubr.bf16.mxu0 %v1224_v1 }
 0xde1   :  { %902 = vmatprep.subr.bf16.mxu0 %v1270_v3 }
 0xde4   :  { %903 = vmatpush1.bf16.msra.mxu0 %v1275_v4 }
 0xde5   :  { %904 = vmatprep.subr.bf16.mxu0 %v1288_v7 }
 0xde8   :  { %905 = vmatpush1.bf16.msra.mxu0 %v1300_v11 }
 0xde9   :  { %906 = vmatprep.subr.bf16.mxu0 %v1307_v12 }
 0xdec   :  { %907 = vmatpush1.bf16.msra.mxu0 %v1315_v13 }
 0xeb2   :  { %v717_v16 = vpop.f32.mrb[12].mxu0 }
 0xeb3   :  { %v727_v2 = vadd.f32 %v725_v15, %v717_v16  ;;  %v719_v18 = vpop.f32.mrb[13].mxu0 }
 0xeb4   :  { %v730_v1 = vadd.f32 %v728_v17, %v719_v18  ;;  %v721_v19 = vpop.f32.mrb[14].mxu0 }
 0xeb5   :  { %1176 = vtanh.f32 %v727_v2  ;;  %v722_v3 = vpop.f32.mrb[15].mxu0  ;;  %v1068_v11 = vmul.f32 -1.442695, %v727_v2 }
 0xeb6   :  { %1178 = vtanh.f32 %v730_v1  ;;  %v1069_v12 = vmul.f32 -1.442695, %v730_v1 }
 0xeb7   :  { %1180 = vpow2.f32 %v1068_v11 }
 0xeb8   :  { %1182 = vpow2.f32 %v1069_v12 }
 0xebf   :  { %v1177_v4 = vpop.eup %1176 }
 0xec0   :  { %v1179_v7 = vpop.eup %1178  ;;  %746 = vrot.lane.b32.xlu0 %v1177_v4, %s1226_s3 }
 0xec1   :  { %758 = vrot.lane.b32.xlu1 %v1179_v7, %s1226_s3  ;;  %v1181_v13 = vpop.eup %1180 }
 0xec2   :  { %v1183_v20 = vpop.eup %1182  ;;  %v734_v21 = vadd.f32 1.0, %v1181_v13 }
 0xec3   :  { %v740_v25 = vadd.f32 1.0, %v1183_v20 }
 0xec4   :  { %1184 = vrcp.f32 %v734_v21 }
 0xec5   :  { %1186 = vrcp.f32 %v740_v25 }
 0xece   :  { %v1185_v27 = vpop.eup %1184 }
 0xecf   :  { %v1187_v31 = vpop.eup %1186  ;;  %v743_v35 = vmul.f32 %v1185_v27, %v645_v56 }
 0xed0   :  { %v755_v37 = vmul.f32 %v1187_v31, %v657_v28 }
 0xf32   :  { %v747_v30 = vpop.permute.xlu0 %746 }
 0xf33   :  { %v749_v32 = vmul.f32 %v1185_v27, %v747_v30  ;;  %v759_v33 = vpop.permute.xlu1 %758 }
 0xf34   :  { %v761_v34 = vmul.f32 %v1187_v31, %v759_v33 }
 0xf35   :  { %751 = vrot.lane.b32.xlu0 %v749_v32, %s1226_s3 }
 0xf36   :  { %763 = vrot.lane.b32.xlu1 %v761_v34, %s1226_s3 }
 0xfa7   :  { %v752_v36 = vpop.permute.xlu0 %751 }
 0xfa8   :  { %v754_v38 = vadd.f32 %v752_v36, %v743_v35  ;;  %v764_v41 = vpop.permute.xlu1 %763 }
 0xfa9   :  { %v766_v42 = vadd.f32 %v764_v41, %v755_v37  ;;  %v941_v37 = vrot.slane %v1341_v26, 6 }
 0xfaa   :  { %1188 = vtanh.f32 %v754_v38 }
 0xfab   :  { %1190 = vtanh.f32 %v766_v42 }
 0xfb4   :  { %v1189_v43 = vpop.eup %1188 }
 0xfb5   :  { %v1191_v44 = vpop.eup %1190  ;;  %769 = vrot.lane.b32.xlu0 %v1189_v43, %s1226_s3 }
 0xfb6   :  { %775 = vrot.lane.b32.xlu1 %v1191_v44, %s1226_s3 }
0x1027   :  { %v770_v45 = vpop.permute.xlu0 %769 }
0x1028   :  { %v772_v46 = vmul.f32 %v1185_v27, %v770_v45  ;;  %v776_v47 = vpop.permute.xlu1 %775 }
0x1029   :  { %v778_v48 = vmul.f32 %v1187_v31, %v776_v47 }
0x102a   :  { %780 = vrot.lane.b32.xlu0 %v772_v46, %s1227_s12 }
0x102b   :  { %784 = vrot.lane.b32.xlu1 %v778_v48, %s1228_s13 }
0x109c   :  { %v1498_v49 = vpop.permute.xlu0 %780 }
0x109d   :  { %v1500_v52 = vpop.permute.xlu1 %784 }
0x109e   :  { %v787_v53 = vsel %vm247_vm1, %v1498_v49, %v1500_v52 }
0x109f   :  { %v788_v54 = vpack.c.bf16 %v787_v53, %v787_v53 }
0x10a1   :  { %1070 = vmatmul.mubr.msk.bf16.vlgmr.msra.gmra.mrb[12].mxu1 %vm141_vm2, %v788_v54 }
0x1174   :  { %v826_v0 = vpop.f32.mrb[12].mxu1 }
0x1175   :  { %v835_v56 = vadd.f32 %v833_v55, %v826_v0  ;;  %v828_v57 = vpop.f32.mrb[13].mxu1 }
0x1176   :  { %v838_v28 = vadd.f32 %v836_v29, %v828_v57  ;;  %v830_v58 = vpop.f32.mrb[14].mxu1 }
0x1177   :  { %1192 = vtanh.f32 %v835_v56  ;;  %v831_v59 = vpop.f32.mrb[15].mxu1  ;;  %v1071_v62 = vmul.f32 -1.442695, %v835_v56 }
0x1178   :  { %1194 = vtanh.f32 %v838_v28  ;;  %v1072_v6 = vmul.f32 -1.442695, %v838_v28 }
0x1179   :  { %1196 = vpow2.f32 %v1071_v62 }
0x117a   :  { %1198 = vpow2.f32 %v1072_v6 }
0x1181   :  { %v1193_v60 = vpop.eup %1192 }
0x1182   :  { %v1195_v61 = vpop.eup %1194  ;;  %854 = vrot.lane.b32.xlu0 %v1193_v60, %s1226_s3 }
0x1183   :  { %866 = vrot.lane.b32.xlu1 %v1195_v61, %s1226_s3  ;;  %v1197_v10 = vpop.eup %1196 }
0x1184   :  { %v1199_v14 = vpop.eup %1198  ;;  %v842_v15 = vadd.f32 1.0, %v1197_v10 }
0x1185   :  { %v848_v16 = vadd.f32 1.0, %v1199_v14 }
0x1186   :  { %1200 = vrcp.f32 %v842_v15 }
0x1187   :  { %1202 = vrcp.f32 %v848_v16 }
0x1190   :  { %v1201_v17 = vpop.eup %1200 }
0x1191   :  { %v1203_v18 = vpop.eup %1202  ;;  %v851_v4 = vmul.f32 %v1201_v17, %v754_v38 }
0x1192   :  { %v863_v11 = vmul.f32 %v1203_v18, %v766_v42 }
0x11f4   :  { %v855_v2 = vpop.permute.xlu0 %854 }
0x11f5   :  { %v857_v1 = vmul.f32 %v1201_v17, %v855_v2  ;;  %v867_v19 = vpop.permute.xlu1 %866 }
0x11f6   :  { %v869_v3 = vmul.f32 %v1203_v18, %v867_v19 }
0x11f7   :  { %859 = vrot.lane.b32.xlu0 %v857_v1, %s1226_s3  ;;  %v1002_v1 = vsel %vm247_vm1, %v1498_v49, %v1421_v40 }
0x11f8   :  { %871 = vrot.lane.b32.xlu1 %v869_v3, %s1226_s3  ;;  %v1019_v3 = vrot.slane %v1002_v1, 6 }
0x1269   :  { %v860_v7 = vpop.permute.xlu0 %859 }
0x126a   :  { %v862_v12 = vadd.f32 %v860_v7, %v851_v4  ;;  %v872_v13 = vpop.permute.xlu1 %871  ;;  %v999_v7 = vsel %vm247_vm1, %v1419_v39, %v1500_v52 }
0x126b   :  { %v874_v20 = vadd.f32 %v872_v13, %v863_v11 }
0x126c   :  { %1204 = vtanh.f32 %v862_v12 }
0x126d   :  { %1206 = vtanh.f32 %v874_v20 }
0x1276   :  { %v1205_v21 = vpop.eup %1204 }
0x1277   :  { %v1207_v25 = vpop.eup %1206  ;;  %877 = vrot.lane.b32.xlu0 %v1205_v21, %s1226_s3 }
0x1278   :  { %883 = vrot.lane.b32.xlu1 %v1207_v25, %s1226_s3 }
0x12e9   :  { %v878_v27 = vpop.permute.xlu0 %877 }
0x12ea   :  { %v880_v30 = vmul.f32 %v1201_v17, %v878_v27  ;;  %v884_v31 = vpop.permute.xlu1 %883 }
0x12eb   :  { %v886_v32 = vmul.f32 %v1203_v18, %v884_v31 }
0x12ec   :  { %888 = vrot.lane.b32.xlu0 %v880_v30, %s1227_s12 }
0x12ed   :  { %892 = vrot.lane.b32.xlu1 %v886_v32, %s1228_s13 }
0x135e   :  { %v889_v33 = vpop.permute.xlu0 %888 }
0x135f   :  { %v893_v34 = vpop.permute.xlu1 %892  ;;  %v1003_v19 = vsel %vm247_vm1, %v889_v33, %v1394_v51  ;;  %v1001_v51 = vsel %vm247_vm1, %v1472_v8, %v1448_v23 }
0x1360   :  { %v895_v35 = vsel %vm247_vm1, %v889_v33, %v893_v34  ;;  %v998_v4 = vsel %vm247_vm1, %v1392_v50, %v893_v34  ;;  %v1022_v11 = vrot.slane %v1003_v19, 4  ;;  %v1033_v52 = vsel %vm1027_vm3, %v1001_v51, %v1019_v3 }
0x1361   :  { %v896_v36 = vpack.c.bf16 %v895_v35, %v895_v35  ;;  %v1010_v40 = vrot.slane %v998_v4, 6 }
0x1363   :  { %1073 = vmatmul.mubr.msk.bf16.vlgmr.msra.gmra.mrb[16].mxu0 %vm141_vm2, %v896_v36 }
0x1436   :  { %v934_v38 = vpop.f32.mrb[16].mxu0 }
0x1437   :  { %v943_v41 = vadd.f32 %v941_v37, %v934_v38  ;;  %v936_v42 = vpop.f32.mrb[17].mxu0 }
0x1438   :  { %v944_v43 = vadd.f32 %v936_v42, %v1339_v24  ;;  %v938_v44 = vpop.f32.mrb[18].mxu0 }
0x1439   :  { %1208 = vtanh.f32 %v943_v41  ;;  %v939_v45 = vpop.f32.mrb[19].mxu0  ;;  %v1074_v48 = vmul.f32 -1.442695, %v943_v41 }
0x143a   :  { %1210 = vtanh.f32 %v944_v43  ;;  %v1075_v53 = vmul.f32 -1.442695, %v944_v43 }
0x143b   :  { %1212 = vpow2.f32 %v1074_v48 }
0x143c   :  { %1214 = vpow2.f32 %v1075_v53 }
0x1443   :  { %v1209_v46 = vpop.eup %1208 }
0x1444   :  { %v1211_v47 = vpop.eup %1210  ;;  %960 = vrot.lane.b32.xlu0 %v1209_v46, %s1226_s3 }
0x1445   :  { %972 = vrot.lane.b32.xlu1 %v1211_v47, %s1226_s3  ;;  %v1213_v26 = vpop.eup %1212 }
0x1446   :  { %v1215_v54 = vpop.eup %1214  ;;  %v948_v55 = vadd.f32 1.0, %v1213_v26 }
0x1447   :  { %v954_v0 = vadd.f32 1.0, %v1215_v54 }
0x1448   :  { %1216 = vrcp.f32 %v948_v55 }
0x1449   :  { %1218 = vrcp.f32 %v954_v0 }
0x1452   :  { %v1217_v24 = vpop.eup %1216 }
0x1453   :  { %v1219_v56 = vpop.eup %1218  ;;  %v957_v59 = vmul.f32 %v1217_v24, %v862_v12  ;;  %v1000_v12 = vsel %vm247_vm1, %v1446_v22, %v1474_v9  ;;  %v1034_v9 = vsel %vm1029_vm4, %v1033_v52, %v1022_v11 }
0x1454   :  { %v969_v61 = vmul.f32 %v1219_v56, %v874_v20  ;;  %v1013_v20 = vrot.slane %v999_v7, 4  ;;  %v1016_v22 = vrot.slane %v1000_v12, 2 }
0x14b6   :  { %v961_v29 = vpop.permute.xlu0 %960 }
0x14b7   :  { %v963_v57 = vmul.f32 %v1217_v24, %v961_v29  ;;  %v973_v28 = vpop.permute.xlu1 %972 }
0x14b8   :  { %v975_v58 = vmul.f32 %v1219_v56, %v973_v28 }
0x14b9   :  { %965 = vrot.lane.b32.xlu0 %v963_v57, %s1226_s3 }
0x14ba   :  { %977 = vrot.lane.b32.xlu1 %v975_v58, %s1226_s3 }
0x152b   :  { %v966_v60 = vpop.permute.xlu0 %965 }
0x152c   :  { %v968_v62 = vadd.f32 %v966_v60, %v957_v59  ;;  %v978_v6 = vpop.permute.xlu1 %977 }
0x152d   :  { %v980_v10 = vadd.f32 %v978_v6, %v969_v61 }
0x152e   :  { %1220 = vtanh.f32 %v968_v62 }
0x152f   :  { %1222 = vtanh.f32 %v980_v10 }
0x1538   :  { %v1221_v14 = vpop.eup %1220 }
0x1539   :  { %v1223_v15 = vpop.eup %1222  ;;  %983 = vrot.lane.b32.xlu0 %v1221_v14, %s1226_s3 }
0x153a   :  { %989 = vrot.lane.b32.xlu1 %v1223_v15, %s1226_s3 }
0x15ab   :  { %v984_v16 = vpop.permute.xlu0 %983 }
0x15ac   :  { %v986_v17 = vmul.f32 %v1217_v24, %v984_v16  ;;  %v990_v2 = vpop.permute.xlu1 %989 }
0x15ad   :  { %v992_v18 = vmul.f32 %v1219_v56, %v990_v2 }
0x15ae   :  { %1005 = vrot.lane.b32.xlu1 %v986_v17, %s1227_s12 }
0x15af   :  { %994 = vrot.lane.b32.xlu0 %v992_v18, %s1228_s13 }
0x1620   :  { %v1006_v13 = vpop.permute.xlu1 %1005 }
0x1621   :  { %v1008_v50 = vsel %vm247_vm1, %v1006_v13, %v1365_v5  ;;  %v995_v49 = vpop.permute.xlu0 %994 }
0x1622   :  { %v1025_v39 = vrot.slane %v1008_v50, 2  ;;  %v997_v21 = vsel %vm247_vm1, %v1363_v63, %v995_v49 }
0x1623   :  { %v1028_v25 = vsel %vm1027_vm3, %v997_v21, %v1010_v40 }
0x1624   :  { %v1030_v27 = vsel %vm1029_vm4, %v1028_v25, %v1013_v20  ;;  %v1035_v30 = vsel %vm1031_vm5, %v1034_v9, %v1025_v39 }
0x1625   :  { %v1032_v23 = vsel %vm1031_vm5, %v1030_v27, %v1016_v22  ;;  %1037 = vst.msk [vmem:[%s1562_s4 + $0x8] sm:$0xff] %vm141_vm2, %v1035_v30 }
0x1626   :  { %1036 = vst.msk [vmem:[%s1562_s4] sm:$0xff] %vm141_vm2, %v1032_v23 }

// kernel: _lambda_.5
= control target key start
LH: loop header
LB: loop body
LE: loop exit
PB: predicated region body
PF: predicated region fallthrough
CT: control target
= control target key end

     0   :  { %v1274_v1 = vmov 0   ;;  %vm81_vm0 = vcmask 523264   ;;  %v1275_v20 = vmov 0.0|0.0   ;;  %v31_v21 = vlaneseq  ;;  %s1278_s25 = smov 96   ;;  %s1627_s1 = inlined_call_operand.vmem [shape: bf16[64,256], index: 1, kind: input, shape index: {}]   ;;  %s1628_s2 = inlined_call_operand.vmem [shape: bf16[64,256], index: 2, kind: input, shape index: {}]   ;;  %s1629_s0 = inlined_call_operand.vmem [shape: f32[16,64], index: 0, kind: input, shape index: {}]   ;;  %s1630_s3 = inlined_call_operand.vmem [shape: f32[1,256], index: 3, kind: input, shape index: {}]   ;;  %s1631_s4 = inlined_call_operand.vmem [shape: f32[16,64], index: 4, kind: output, shape index: {}]  }
   0x1   :  { %v1122_v0 = vld [vmem:[%s1627_s1 + $0x4] ss:$8 sps:$4 sm:$0xff]   ;;  %117 = vmatprep.mubr.bf16.mxu0 %v1274_v1  ;;  %212 = vmatprep.mubr.bf16.mxu1 %v1274_v1  ;;  %v1126_v3 = vld [vmem:[%s1627_s1] ss:$8 sps:$4 sm:$0xff]   ;;  %v1128_v5 = vld [vmem:[%s1627_s1 + $0x14] ss:$8 sps:$4 sm:$0xff]  }
   0x2   :  { %v1312_v2 = vld [vmem:[%s1628_s2 + $0x4] ss:$8 sps:$4 sm:$0xff]   ;;  %85 = vmatprep.subr.bf16.mxu0 %v1122_v0  ;;  %v1320_v4 = vld [vmem:[%s1628_s2] ss:$8 sps:$4 sm:$0xff]   ;;  %v1330_v6 = vld [vmem:[%s1628_s2 + $0x14] ss:$8 sps:$4 sm:$0xff]  }
   0x3   :  { %180 = vmatprep.subr.bf16.mxu1 %v1312_v2  ;;  %86 = vmatpush1.bf16.msra.mxu0 %v1126_v3  ;;  %v1132_v7 = vld [vmem:[%s1627_s1 + $0x10] ss:$8 sps:$4 sm:$0xff]   ;;  %v1134_v9 = vld [vmem:[%s1627_s1 + $0x24] ss:$8 sps:$4 sm:$0xff]   ;;  %v1138_v11 = vld [vmem:[%s1627_s1 + $0x20] ss:$8 sps:$4 sm:$0xff]  }
   0x4   :  { %181 = vmatpush1.bf16.msra.mxu1 %v1320_v4  ;;  %87 = vmatprep.subr.bf16.mxu0 %v1128_v5  ;;  %v1338_v8 = vld [vmem:[%s1628_s2 + $0x10] ss:$8 sps:$4 sm:$0xff]   ;;  %v1347_v10 = vld [vmem:[%s1628_s2 + $0x24] ss:$8 sps:$4 sm:$0xff]   ;;  %v1355_v12 = vld [vmem:[%s1628_s2 + $0x20] ss:$8 sps:$4 sm:$0xff]  }
   0x5   :  { %182 = vmatprep.subr.bf16.mxu1 %v1330_v6  ;;  %v1140_v13 = vld [vmem:[%s1627_s1 + $0x34] ss:$8 sps:$4 sm:$0xff]   ;;  %v1144_v15 = vld [vmem:[%s1627_s1 + $0x30] ss:$8 sps:$4 sm:$0xff]   ;;  %v18_v17 = vld [vmem:[%s1629_s0] sm:$0xff]  ;;  %v32_v22 = vshrl.u32 %v31_v21, 7 }
   0x6   :  { %v1365_v14 = vld [vmem:[%s1628_s2 + $0x34] ss:$8 sps:$4 sm:$0xff]   ;;  %v1374_v16 = vld [vmem:[%s1628_s2 + $0x30] ss:$8 sps:$4 sm:$0xff]   ;;  %v19_v18 = vld [vmem:[%s1629_s0 + $0x8] sm:$0xff]  ;;  %s1276_s2 = smov 32  }
   0x7   :  { %88 = vmatpush1.bf16.msra.mxu0 %v1132_v7  ;;  %v20_v19 = vpack.c.bf16 %v19_v18, %v18_v17  ;;  %v33_v23 = vsub.s32 0, %v32_v22  ;;  %v29_v24 = vld [vmem:[%s1630_s3] sm:$0x3]  ;;  %v37_v25 = vsub.s32 1, %v32_v22  ;;  %s1277_s3 = smov 64   ;;  %vm282_vm1 = vcmask 261120  }
   0x8   :  { %183 = vmatpush1.bf16.msra.mxu1 %v1338_v8  ;;  %89 = vmatprep.subr.bf16.mxu0 %v1134_v9  ;;  %vm1062_vm2 = vcmask 1041408   ;;  %vm1064_vm3 = vcmask 1043456   ;;  %vm1066_vm4 = vcmask 1045504  }
   0x9   :  { %184 = vmatprep.subr.bf16.mxu1 %v1347_v10  ;;  %v34_v26 = vrot.slane %v29_v24, %v33_v23  ;;  %v38_v27 = vrot.slane %v29_v24, %v37_v25 }
   0xb   :  { %90 = vmatpush1.bf16.msra.mxu0 %v1138_v11 }
   0xc   :  { %185 = vmatpush1.bf16.msra.mxu1 %v1355_v12  ;;  %91 = vmatprep.subr.bf16.mxu0 %v1140_v13 }
   0xd   :  { %186 = vmatprep.subr.bf16.mxu1 %v1365_v14 }
   0xf   :  { %92 = vmatpush1.bf16.msra.mxu0 %v1144_v15 }
  0x10   :  { %187 = vmatpush1.bf16.msra.mxu1 %v1374_v16  ;;  %288 = vmatprep.subr.bf16.mxu0 %v1312_v2 }
  0x11   :  { %397 = vmatprep.subr.bf16.mxu1 %v1312_v2 }
  0x12   :  { %1085 = vmatmul.mubr.msk.bf16.vlgmr.msra.gmra.mrb[0].mxu0 %vm81_vm0, %v20_v19 }
  0x13   :  { %213 = vmatmul.mubr.bf16.vlgmr.msra.gmra.mrb[0].mxu1 %v1275_v20  ;;  %289 = vmatpush1.bf16.msra.mxu0 %v1320_v4 }
  0x14   :  { %320 = vmatprep.mubr.bf16.mxu0 %v1274_v1  ;;  %290 = vmatprep.subr.bf16.mxu0 %v1330_v6 }
  0x15   :  { %398 = vmatpush1.bf16.msra.mxu1 %v1320_v4  ;;  %429 = vmatprep.mubr.bf16.mxu1 %v1274_v1 }
  0x16   :  { %399 = vmatprep.subr.bf16.mxu1 %v1330_v6 }
  0x17   :  { %291 = vmatpush1.bf16.msra.mxu0 %v1338_v8 }
  0x18   :  { %292 = vmatprep.subr.bf16.mxu0 %v1347_v10 }
  0x19   :  { %400 = vmatpush1.bf16.msra.mxu1 %v1338_v8 }
  0x1a   :  { %401 = vmatprep.subr.bf16.mxu1 %v1347_v10 }
  0x1b   :  { %293 = vmatpush1.bf16.msra.mxu0 %v1355_v12 }
  0x1c   :  { %294 = vmatprep.subr.bf16.mxu0 %v1365_v14 }
  0x1d   :  { %402 = vmatpush1.bf16.msra.mxu1 %v1355_v12 }
  0x1e   :  { %403 = vmatprep.subr.bf16.mxu1 %v1365_v14 }
  0x1f   :  { %295 = vmatpush1.bf16.msra.mxu0 %v1374_v16 }
  0x20   :  { %505 = vmatprep.subr.bf16.mxu0 %v1312_v2 }
  0x21   :  { %404 = vmatpush1.bf16.msra.mxu1 %v1374_v16 }
  0x22   :  { %611 = vmatprep.subr.bf16.mxu1 %v1312_v2 }
  0xe5   :  { %v119_v28 = vpop.f32.mrb[0].mxu0 }
  0xe6   :  { %v214_v29 = vpop.f32.mrb[0].mxu1  ;;  %v1408_v30 = vadd.f32 %v119_v28, %v34_v26  ;;  %v121_v31 = vpop.f32.mrb[1].mxu0 }
  0xe7   :  { %v216_v32 = vpop.f32.mrb[1].mxu1  ;;  %v1410_v33 = vadd.f32 %v121_v31, %v38_v27  ;;  %v123_v34 = vpop.f32.mrb[2].mxu0 }
  0xe8   :  { %v218_v35 = vpop.f32.mrb[2].mxu1  ;;  %v221_v36 = vadd.f32 %v214_v29, %v1408_v30  ;;  %v1413_v37 = vadd.f32 %v123_v34, %v34_v26  ;;  %v125_v38 = vpop.f32.mrb[3].mxu0  ;;  %v330_v18 = vrot.slane %v1408_v30, 2 }
  0xe9   :  { %v219_v39 = vpop.f32.mrb[3].mxu1  ;;  %v1415_v40 = vadd.f32 %v125_v38, %v38_v27 }
  0xea   :  { %1146 = vtanh.f32 %v221_v36  ;;  %v1094_v45 = vmul.f32 -1.442695, %v221_v36 }
  0xeb   :  { %v223_v41 = vrot.slane %v1415_v40, 6  ;;  %v333_v20 = vrot.slane %v1415_v40, 4 }
  0xed   :  { %v225_v42 = vadd.f32 %v223_v41, %v216_v32 }
  0xef   :  { %1148 = vtanh.f32 %v225_v42  ;;  %v1095_v46 = vmul.f32 -1.442695, %v225_v42 }
  0xf0   :  { %1150 = vpow2.f32 %v1094_v45 }
  0xf1   :  { %1152 = vpow2.f32 %v1095_v46 }
  0xf4   :  { %v1147_v43 = vpop.eup %1146 }
  0xf5   :  { %241 = vrot.lane.b32.xlu0 %v1147_v43, %s1276_s2 }
  0xf9   :  { %v1149_v44 = vpop.eup %1148 }
  0xfa   :  { %253 = vrot.lane.b32.xlu0 %v1149_v44, %s1276_s2  ;;  %v1151_v47 = vpop.eup %1150 }
  0xfb   :  { %v229_v48 = vadd.f32 1.0, %v1151_v47  ;;  %v1153_v49 = vpop.eup %1152 }
  0xfc   :  { %v235_v50 = vadd.f32 1.0, %v1153_v49 }
  0xfd   :  { %1154 = vrcp.f32 %v229_v48 }
  0xfe   :  { %1156 = vrcp.f32 %v235_v50 }
 0x107   :  { %v1155_v51 = vpop.eup %1154 }
 0x108   :  { %v1157_v54 = vpop.eup %1156  ;;  %v238_v57 = vmul.f32 0.0, %v1155_v51 }
 0x109   :  { %v250_v60 = vmul.f32 0.0, %v1157_v54 }
 0x167   :  { %v242_v52 = vpop.permute.xlu0 %241 }
 0x168   :  { %v244_v53 = vmul.f32 %v1155_v51, %v242_v52 }
 0x16a   :  { %246 = vrot.lane.b32.xlu1 %v244_v53, %s1276_s2 }
 0x16c   :  { %v254_v55 = vpop.permute.xlu0 %253 }
 0x16d   :  { %v256_v56 = vmul.f32 %v1157_v54, %v254_v55 }
 0x16f   :  { %258 = vrot.lane.b32.xlu1 %v256_v56, %s1276_s2 }
 0x1dc   :  { %v247_v58 = vpop.permute.xlu1 %246 }
 0x1dd   :  { %v1422_v59 = vadd.f32 %v247_v58, %v238_v57 }
 0x1df   :  { %1158 = vtanh.f32 %v1422_v59 }
 0x1e1   :  { %v259_v61 = vpop.permute.xlu1 %258 }
 0x1e2   :  { %v1425_v62 = vadd.f32 %v259_v61, %v250_v60  ;;  %v438_v60 = vrot.slane %v1408_v30, 4 }
 0x1e4   :  { %1160 = vtanh.f32 %v1425_v62 }
 0x1e9   :  { %v1159_v63 = vpop.eup %1158 }
 0x1ea   :  { %264 = vrot.lane.b32.xlu0 %v1159_v63, %s1276_s2 }
 0x1ee   :  { %v1161_v0 = vpop.eup %1160 }
 0x1ef   :  { %270 = vrot.lane.b32.xlu1 %v1161_v0, %s1276_s2 }
 0x25c   :  { %v265_v3 = vpop.permute.xlu0 %264 }
 0x25d   :  { %v267_v5 = vmul.f32 %v1155_v51, %v265_v3 }
 0x25f   :  { %275 = vrot.lane.b32.xlu0 %v267_v5, %s1277_s3 }
 0x261   :  { %v271_v7 = vpop.permute.xlu1 %270 }
 0x262   :  { %v273_v9 = vmul.f32 %v1157_v54, %v271_v7 }
 0x264   :  { %279 = vrot.lane.b32.xlu1 %v273_v9, %s1278_s25 }
 0x2d1   :  { %v1432_v11 = vpop.permute.xlu0 %275 }
 0x2d6   :  { %v1434_v13 = vpop.permute.xlu1 %279 }
 0x2d7   :  { %v283_v15 = vsel %vm282_vm1, %v1432_v11, %v1434_v13 }
 0x2d8   :  { %v284_v17 = vpack.c.bf16 %v283_v15, %v283_v15 }
 0x2da   :  { %1096 = vmatmul.mubr.msk.bf16.vlgmr.msra.gmra.mrb[4].mxu0 %vm81_vm0, %v284_v17 }
 0x2db   :  { %506 = vmatpush1.bf16.msra.mxu0 %v1320_v4  ;;  %537 = vmatprep.mubr.bf16.mxu0 %v1274_v1 }
 0x2dc   :  { %507 = vmatprep.subr.bf16.mxu0 %v1330_v6 }
 0x2df   :  { %508 = vmatpush1.bf16.msra.mxu0 %v1338_v8 }
 0x2e0   :  { %509 = vmatprep.subr.bf16.mxu0 %v1347_v10 }
 0x2e3   :  { %510 = vmatpush1.bf16.msra.mxu0 %v1355_v12 }
 0x2e4   :  { %511 = vmatprep.subr.bf16.mxu0 %v1365_v14 }
 0x2e7   :  { %512 = vmatpush1.bf16.msra.mxu0 %v1374_v16 }
 0x2e8   :  { %718 = vmatprep.subr.bf16.mxu0 %v1312_v2 }
 0x3ad   :  { %v322_v19 = vpop.f32.mrb[4].mxu0 }
 0x3ae   :  { %v332_v21 = vadd.f32 %v330_v18, %v322_v19  ;;  %v324_v22 = vpop.f32.mrb[5].mxu0 }
 0x3af   :  { %v335_v23 = vadd.f32 %v333_v20, %v324_v22  ;;  %v326_v24 = vpop.f32.mrb[6].mxu0 }
 0x3b0   :  { %1162 = vtanh.f32 %v332_v21  ;;  %v327_v25 = vpop.f32.mrb[7].mxu0  ;;  %v1097_v28 = vmul.f32 -1.442695, %v332_v21 }
 0x3b1   :  { %1164 = vtanh.f32 %v335_v23  ;;  %v1098_v29 = vmul.f32 -1.442695, %v335_v23 }
 0x3b2   :  { %1166 = vpow2.f32 %v1097_v28 }
 0x3b3   :  { %1168 = vpow2.f32 %v1098_v29 }
 0x3ba   :  { %v1163_v26 = vpop.eup %1162 }
 0x3bb   :  { %v1165_v27 = vpop.eup %1164  ;;  %351 = vrot.lane.b32.xlu0 %v1163_v26, %s1276_s2 }
 0x3bc   :  { %363 = vrot.lane.b32.xlu1 %v1165_v27, %s1276_s2  ;;  %v1167_v31 = vpop.eup %1166 }
 0x3bd   :  { %v1169_v32 = vpop.eup %1168  ;;  %v339_v34 = vadd.f32 1.0, %v1167_v31 }
 0x3be   :  { %v345_v35 = vadd.f32 1.0, %v1169_v32 }
 0x3bf   :  { %1170 = vrcp.f32 %v339_v34 }
 0x3c0   :  { %1172 = vrcp.f32 %v345_v35 }
 0x3c9   :  { %v1171_v36 = vpop.eup %1170 }
 0x3ca   :  { %v1173_v39 = vpop.eup %1172  ;;  %v348_v44 = vmul.f32 %v1171_v36, %v1422_v59 }
 0x3cb   :  { %v360_v46 = vmul.f32 %v1173_v39, %v1425_v62  ;;  %v441_v62 = vrot.slane %v1415_v40, 2 }
 0x42d   :  { %v352_v38 = vpop.permute.xlu0 %351 }
 0x42e   :  { %v354_v41 = vmul.f32 %v1171_v36, %v352_v38  ;;  %v364_v42 = vpop.permute.xlu1 %363 }
 0x42f   :  { %v366_v43 = vmul.f32 %v1173_v39, %v364_v42 }
 0x430   :  { %356 = vrot.lane.b32.xlu0 %v354_v41, %s1276_s2 }
 0x431   :  { %368 = vrot.lane.b32.xlu1 %v366_v43, %s1276_s2 }
 0x4a2   :  { %v357_v45 = vpop.permute.xlu0 %356 }
 0x4a3   :  { %v359_v47 = vadd.f32 %v357_v45, %v348_v44  ;;  %v369_v48 = vpop.permute.xlu1 %368 }
 0x4a4   :  { %v371_v49 = vadd.f32 %v369_v48, %v360_v46 }
 0x4a5   :  { %1174 = vtanh.f32 %v359_v47 }
 0x4a6   :  { %1176 = vtanh.f32 %v371_v49 }
 0x4af   :  { %v1175_v50 = vpop.eup %1174 }
 0x4b0   :  { %v1177_v51 = vpop.eup %1176  ;;  %374 = vrot.lane.b32.xlu0 %v1175_v50, %s1276_s2 }
 0x4b1   :  { %380 = vrot.lane.b32.xlu1 %v1177_v51, %s1276_s2 }
 0x522   :  { %v375_v52 = vpop.permute.xlu0 %374 }
 0x523   :  { %v377_v53 = vmul.f32 %v1171_v36, %v375_v52  ;;  %v381_v54 = vpop.permute.xlu1 %380 }
 0x524   :  { %v383_v55 = vmul.f32 %v1173_v39, %v381_v54 }
 0x525   :  { %385 = vrot.lane.b32.xlu0 %v377_v53, %s1277_s3 }
 0x526   :  { %389 = vrot.lane.b32.xlu1 %v383_v55, %s1278_s25 }
 0x597   :  { %v1461_v56 = vpop.permute.xlu0 %385 }
 0x598   :  { %v1463_v57 = vpop.permute.xlu1 %389 }
 0x599   :  { %v392_v58 = vsel %vm282_vm1, %v1461_v56, %v1463_v57 }
 0x59a   :  { %v393_v59 = vpack.c.bf16 %v392_v58, %v392_v58 }
 0x59c   :  { %1099 = vmatmul.mubr.msk.bf16.vlgmr.msra.gmra.mrb[4].mxu1 %vm81_vm0, %v393_v59 }
 0x59d   :  { %612 = vmatpush1.bf16.msra.mxu1 %v1320_v4  ;;  %643 = vmatprep.mubr.bf16.mxu1 %v1274_v1 }
 0x59e   :  { %613 = vmatprep.subr.bf16.mxu1 %v1330_v6 }
 0x5a1   :  { %614 = vmatpush1.bf16.msra.mxu1 %v1338_v8 }
 0x5a2   :  { %615 = vmatprep.subr.bf16.mxu1 %v1347_v10 }
 0x5a5   :  { %616 = vmatpush1.bf16.msra.mxu1 %v1355_v12 }
 0x5a6   :  { %617 = vmatprep.subr.bf16.mxu1 %v1365_v14 }
 0x5a9   :  { %618 = vmatpush1.bf16.msra.mxu1 %v1374_v16 }
 0x5aa   :  { %827 = vmatprep.subr.bf16.mxu1 %v1312_v2 }
 0x66f   :  { %v431_v61 = vpop.f32.mrb[4].mxu1 }
 0x670   :  { %v440_v63 = vadd.f32 %v438_v60, %v431_v61  ;;  %v433_v0 = vpop.f32.mrb[5].mxu1 }
 0x671   :  { %v443_v3 = vadd.f32 %v441_v62, %v433_v0  ;;  %v435_v5 = vpop.f32.mrb[6].mxu1 }
 0x672   :  { %1178 = vtanh.f32 %v440_v63  ;;  %v436_v7 = vpop.f32.mrb[7].mxu1  ;;  %v1100_v17 = vmul.f32 -1.442695, %v440_v63 }
 0x673   :  { %1180 = vtanh.f32 %v443_v3  ;;  %v1101_v18 = vmul.f32 -1.442695, %v443_v3 }
 0x674   :  { %1182 = vpow2.f32 %v1100_v17 }
 0x675   :  { %1184 = vpow2.f32 %v1101_v18 }
 0x67c   :  { %v1179_v9 = vpop.eup %1178 }
 0x67d   :  { %v1181_v15 = vpop.eup %1180  ;;  %459 = vrot.lane.b32.xlu0 %v1179_v9, %s1276_s2 }
 0x67e   :  { %471 = vrot.lane.b32.xlu1 %v1181_v15, %s1276_s2  ;;  %v1183_v19 = vpop.eup %1182 }
 0x67f   :  { %v1185_v20 = vpop.eup %1184  ;;  %v447_v21 = vadd.f32 1.0, %v1183_v19 }
 0x680   :  { %v453_v22 = vadd.f32 1.0, %v1185_v20 }
 0x681   :  { %1186 = vrcp.f32 %v447_v21 }
 0x682   :  { %1188 = vrcp.f32 %v453_v22 }
 0x68b   :  { %v1187_v23 = vpop.eup %1186 }
 0x68c   :  { %v1189_v25 = vpop.eup %1188  ;;  %v456_v29 = vmul.f32 %v1187_v23, %v359_v47 }
 0x68d   :  { %v468_v32 = vmul.f32 %v1189_v25, %v371_v49  ;;  %v546_v49 = vrot.slane %v1408_v30, 6 }
 0x6ef   :  { %v460_v24 = vpop.permute.xlu0 %459 }
 0x6f0   :  { %v462_v26 = vmul.f32 %v1187_v23, %v460_v24  ;;  %v472_v27 = vpop.permute.xlu1 %471 }
 0x6f1   :  { %v474_v28 = vmul.f32 %v1189_v25, %v472_v27 }
 0x6f2   :  { %464 = vrot.lane.b32.xlu0 %v462_v26, %s1276_s2 }
 0x6f3   :  { %476 = vrot.lane.b32.xlu1 %v474_v28, %s1276_s2 }
 0x764   :  { %v465_v31 = vpop.permute.xlu0 %464 }
 0x765   :  { %v467_v34 = vadd.f32 %v465_v31, %v456_v29  ;;  %v477_v35 = vpop.permute.xlu1 %476 }
 0x766   :  { %v479_v36 = vadd.f32 %v477_v35, %v468_v32  ;;  %v654_v35 = vrot.slane %v1410_v33, 6 }
 0x767   :  { %1190 = vtanh.f32 %v467_v34 }
 0x768   :  { %1192 = vtanh.f32 %v479_v36 }
 0x771   :  { %v1191_v38 = vpop.eup %1190 }
 0x772   :  { %v1193_v39 = vpop.eup %1192  ;;  %482 = vrot.lane.b32.xlu0 %v1191_v38, %s1276_s2 }
 0x773   :  { %488 = vrot.lane.b32.xlu1 %v1193_v39, %s1276_s2 }
 0x7e4   :  { %v483_v41 = vpop.permute.xlu0 %482 }
 0x7e5   :  { %v485_v42 = vmul.f32 %v1187_v23, %v483_v41  ;;  %v489_v43 = vpop.permute.xlu1 %488 }
 0x7e6   :  { %v491_v44 = vmul.f32 %v1189_v25, %v489_v43 }
 0x7e7   :  { %493 = vrot.lane.b32.xlu0 %v485_v42, %s1277_s3 }
 0x7e8   :  { %497 = vrot.lane.b32.xlu1 %v491_v44, %s1278_s25 }
 0x859   :  { %v1488_v45 = vpop.permute.xlu0 %493 }
 0x85a   :  { %v1490_v46 = vpop.permute.xlu1 %497 }
 0x85b   :  { %v500_v47 = vsel %vm282_vm1, %v1488_v45, %v1490_v46 }
 0x85c   :  { %v501_v48 = vpack.c.bf16 %v500_v47, %v500_v47 }
 0x85e   :  { %1102 = vmatmul.mubr.msk.bf16.vlgmr.msra.gmra.mrb[8].mxu0 %vm81_vm0, %v501_v48 }
 0x85f   :  { %719 = vmatpush1.bf16.msra.mxu0 %v1320_v4  ;;  %750 = vmatprep.mubr.bf16.mxu0 %v1274_v1 }
 0x860   :  { %720 = vmatprep.subr.bf16.mxu0 %v1330_v6 }
 0x863   :  { %721 = vmatpush1.bf16.msra.mxu0 %v1338_v8 }
 0x864   :  { %722 = vmatprep.subr.bf16.mxu0 %v1347_v10 }
 0x867   :  { %723 = vmatpush1.bf16.msra.mxu0 %v1355_v12 }
 0x868   :  { %724 = vmatprep.subr.bf16.mxu0 %v1365_v14 }
 0x86b   :  { %725 = vmatpush1.bf16.msra.mxu0 %v1374_v16 }
 0x86c   :  { %935 = vmatprep.subr.bf16.mxu0 %v1312_v2 }
 0x931   :  { %v539_v50 = vpop.f32.mrb[8].mxu0 }
 0x932   :  { %v548_v51 = vadd.f32 %v546_v49, %v539_v50  ;;  %v541_v52 = vpop.f32.mrb[9].mxu0 }
 0x933   :  { %v549_v53 = vadd.f32 %v541_v52, %v1415_v40  ;;  %v543_v54 = vpop.f32.mrb[10].mxu0 }
 0x934   :  { %1194 = vtanh.f32 %v548_v51  ;;  %v544_v55 = vpop.f32.mrb[11].mxu0  ;;  %v1103_v60 = vmul.f32 -1.442695, %v548_v51 }
 0x935   :  { %1196 = vtanh.f32 %v549_v53  ;;  %v1104_v61 = vmul.f32 -1.442695, %v549_v53 }
 0x936   :  { %1198 = vpow2.f32 %v1103_v60 }
 0x937   :  { %1200 = vpow2.f32 %v1104_v61 }
 0x93e   :  { %v1195_v58 = vpop.eup %1194 }
 0x93f   :  { %v1197_v59 = vpop.eup %1196  ;;  %565 = vrot.lane.b32.xlu0 %v1195_v58, %s1276_s2 }
 0x940   :  { %577 = vrot.lane.b32.xlu1 %v1197_v59, %s1276_s2  ;;  %v1199_v2 = vpop.eup %1198 }
 0x941   :  { %v1201_v30 = vpop.eup %1200  ;;  %v553_v62 = vadd.f32 1.0, %v1199_v2 }
 0x942   :  { %v559_v63 = vadd.f32 1.0, %v1201_v30 }
 0x943   :  { %1202 = vrcp.f32 %v553_v62 }
 0x944   :  { %1204 = vrcp.f32 %v559_v63 }
 0x94d   :  { %v1203_v40 = vpop.eup %1202 }
 0x94e   :  { %v1205_v3 = vpop.eup %1204  ;;  %v562_v15 = vmul.f32 %v1203_v40, %v467_v34 }
 0x94f   :  { %v574_v18 = vmul.f32 %v1205_v3, %v479_v36 }
 0x9b1   :  { %v566_v0 = vpop.permute.xlu0 %565 }
 0x9b2   :  { %v568_v5 = vmul.f32 %v1203_v40, %v566_v0  ;;  %v578_v7 = vpop.permute.xlu1 %577 }
 0x9b3   :  { %v580_v9 = vmul.f32 %v1205_v3, %v578_v7 }
 0x9b4   :  { %570 = vrot.lane.b32.xlu0 %v568_v5, %s1276_s2 }
 0x9b5   :  { %582 = vrot.lane.b32.xlu1 %v580_v9, %s1276_s2 }
 0xa26   :  { %v571_v17 = vpop.permute.xlu0 %570 }
 0xa27   :  { %v573_v19 = vadd.f32 %v571_v17, %v562_v15  ;;  %v583_v20 = vpop.permute.xlu1 %582 }
 0xa28   :  { %v585_v21 = vadd.f32 %v583_v20, %v574_v18 }
 0xa29   :  { %1206 = vtanh.f32 %v573_v19 }
 0xa2a   :  { %1208 = vtanh.f32 %v585_v21 }
 0xa33   :  { %v1207_v22 = vpop.eup %1206 }
 0xa34   :  { %v1209_v23 = vpop.eup %1208  ;;  %588 = vrot.lane.b32.xlu0 %v1207_v22, %s1276_s2 }
 0xa35   :  { %594 = vrot.lane.b32.xlu1 %v1209_v23, %s1276_s2  ;;  %v763_v23 = vrot.slane %v1410_v33, 4 }
 0xaa6   :  { %v589_v24 = vpop.permute.xlu0 %588 }
 0xaa7   :  { %v591_v25 = vmul.f32 %v1203_v40, %v589_v24  ;;  %v595_v26 = vpop.permute.xlu1 %594 }
 0xaa8   :  { %v597_v27 = vmul.f32 %v1205_v3, %v595_v26 }
 0xaa9   :  { %599 = vrot.lane.b32.xlu0 %v591_v25, %s1277_s3 }
 0xaaa   :  { %603 = vrot.lane.b32.xlu1 %v597_v27, %s1278_s25 }
 0xb1b   :  { %v1515_v28 = vpop.permute.xlu0 %599 }
 0xb1c   :  { %v1517_v29 = vpop.permute.xlu1 %603 }
 0xb1d   :  { %v606_v31 = vsel %vm282_vm1, %v1515_v28, %v1517_v29 }
 0xb1e   :  { %v607_v32 = vpack.c.bf16 %v606_v31, %v606_v31 }
 0xb20   :  { %1105 = vmatmul.mubr.msk.bf16.vlgmr.msra.gmra.mrb[8].mxu1 %vm81_vm0, %v607_v32 }
 0xb21   :  { %828 = vmatpush1.bf16.msra.mxu1 %v1320_v4  ;;  %859 = vmatprep.mubr.bf16.mxu1 %v1274_v1 }
 0xb22   :  { %829 = vmatprep.subr.bf16.mxu1 %v1330_v6 }
 0xb25   :  { %830 = vmatpush1.bf16.msra.mxu1 %v1338_v8 }
 0xb26   :  { %831 = vmatprep.subr.bf16.mxu1 %v1347_v10 }
 0xb29   :  { %832 = vmatpush1.bf16.msra.mxu1 %v1355_v12 }
 0xb2a   :  { %833 = vmatprep.subr.bf16.mxu1 %v1365_v14 }
 0xb2d   :  { %834 = vmatpush1.bf16.msra.mxu1 %v1374_v16 }
 0xbf3   :  { %v645_v34 = vpop.f32.mrb[8].mxu1 }
 0xbf4   :  { %v652_v36 = vadd.f32 %v645_v34, %v1413_v37  ;;  %v647_v38 = vpop.f32.mrb[9].mxu1 }
 0xbf5   :  { %v656_v39 = vadd.f32 %v654_v35, %v647_v38  ;;  %v649_v41 = vpop.f32.mrb[10].mxu1 }
 0xbf6   :  { %1210 = vtanh.f32 %v652_v36  ;;  %v650_v42 = vpop.f32.mrb[11].mxu1  ;;  %v1106_v47 = vmul.f32 -1.442695, %v652_v36 }
 0xbf7   :  { %1212 = vtanh.f32 %v656_v39  ;;  %v1107_v48 = vmul.f32 -1.442695, %v656_v39 }
 0xbf8   :  { %1214 = vpow2.f32 %v1106_v47 }
 0xbf9   :  { %1216 = vpow2.f32 %v1107_v48 }
 0xc00   :  { %v1211_v43 = vpop.eup %1210 }
 0xc01   :  { %v1213_v44 = vpop.eup %1212  ;;  %672 = vrot.lane.b32.xlu0 %v1211_v43, %s1276_s2 }
 0xc02   :  { %684 = vrot.lane.b32.xlu1 %v1213_v44, %s1276_s2  ;;  %v1215_v49 = vpop.eup %1214 }
 0xc03   :  { %v1217_v50 = vpop.eup %1216  ;;  %v660_v51 = vadd.f32 1.0, %v1215_v49 }
 0xc04   :  { %v666_v52 = vadd.f32 1.0, %v1217_v50 }
 0xc05   :  { %1218 = vrcp.f32 %v660_v51 }
 0xc06   :  { %1220 = vrcp.f32 %v666_v52 }
 0xc0f   :  { %v1219_v53 = vpop.eup %1218 }
 0xc10   :  { %v1221_v55 = vpop.eup %1220  ;;  %v669_v61 = vmul.f32 %v1219_v53, %v573_v19 }
 0xc11   :  { %v681_v30 = vmul.f32 %v1221_v55, %v585_v21  ;;  %v760_v21 = vrot.slane %v1413_v37, 2 }
 0xc73   :  { %v673_v54 = vpop.permute.xlu0 %672 }
 0xc74   :  { %v675_v58 = vmul.f32 %v1219_v53, %v673_v54  ;;  %v685_v59 = vpop.permute.xlu1 %684 }
 0xc75   :  { %v687_v60 = vmul.f32 %v1221_v55, %v685_v59 }
 0xc76   :  { %677 = vrot.lane.b32.xlu0 %v675_v58, %s1276_s2 }
 0xc77   :  { %689 = vrot.lane.b32.xlu1 %v687_v60, %s1276_s2 }
 0xce8   :  { %v678_v2 = vpop.permute.xlu0 %677 }
 0xce9   :  { %v680_v62 = vadd.f32 %v678_v2, %v669_v61  ;;  %v690_v63 = vpop.permute.xlu1 %689  ;;  %v868_v61 = vrot.slane %v1413_v37, 4 }
 0xcea   :  { %v692_v40 = vadd.f32 %v690_v63, %v681_v30  ;;  %v871_v30 = vrot.slane %v1410_v33, 2 }
 0xceb   :  { %1222 = vtanh.f32 %v680_v62 }
 0xcec   :  { %1224 = vtanh.f32 %v692_v40 }
 0xcf5   :  { %v1223_v0 = vpop.eup %1222 }
 0xcf6   :  { %v1225_v3 = vpop.eup %1224  ;;  %695 = vrot.lane.b32.xlu0 %v1223_v0, %s1276_s2 }
 0xcf7   :  { %701 = vrot.lane.b32.xlu1 %v1225_v3, %s1276_s2 }
 0xd68   :  { %v696_v5 = vpop.permute.xlu0 %695 }
 0xd69   :  { %v698_v7 = vmul.f32 %v1219_v53, %v696_v5  ;;  %v702_v9 = vpop.permute.xlu1 %701 }
 0xd6a   :  { %v704_v15 = vmul.f32 %v1221_v55, %v702_v9 }
 0xd6b   :  { %706 = vrot.lane.b32.xlu0 %v698_v7, %s1277_s3 }
 0xd6c   :  { %710 = vrot.lane.b32.xlu1 %v704_v15, %s1278_s25 }
 0xddd   :  { %v1541_v17 = vpop.permute.xlu0 %706 }
 0xdde   :  { %v1543_v18 = vpop.permute.xlu1 %710 }
 0xddf   :  { %v713_v19 = vsel %vm282_vm1, %v1541_v17, %v1543_v18 }
 0xde0   :  { %v714_v20 = vpack.c.bf16 %v713_v19, %v713_v19 }
 0xde2   :  { %1108 = vmatmul.mubr.msk.bf16.vlgmr.msra.gmra.mrb[12].mxu0 %vm81_vm0, %v714_v20 }
 0xde3   :  { %936 = vmatpush1.bf16.msra.mxu0 %v1320_v4  ;;  %967 = vmatprep.mubr.bf16.mxu0 %v1274_v1 }
 0xde4   :  { %937 = vmatprep.subr.bf16.mxu0 %v1330_v6 }
 0xde7   :  { %938 = vmatpush1.bf16.msra.mxu0 %v1338_v8 }
 0xde8   :  { %939 = vmatprep.subr.bf16.mxu0 %v1347_v10 }
 0xdeb   :  { %940 = vmatpush1.bf16.msra.mxu0 %v1355_v12 }
 0xdec   :  { %941 = vmatprep.subr.bf16.mxu0 %v1365_v14 }
 0xdef   :  { %942 = vmatpush1.bf16.msra.mxu0 %v1374_v16 }
 0xeb5   :  { %v752_v22 = vpop.f32.mrb[12].mxu0 }
 0xeb6   :  { %v762_v4 = vadd.f32 %v760_v21, %v752_v22  ;;  %v754_v24 = vpop.f32.mrb[13].mxu0 }
 0xeb7   :  { %v765_v1 = vadd.f32 %v763_v23, %v754_v24  ;;  %v756_v25 = vpop.f32.mrb[14].mxu0 }
 0xeb8   :  { %1226 = vtanh.f32 %v762_v4  ;;  %v757_v6 = vpop.f32.mrb[15].mxu0  ;;  %v1109_v12 = vmul.f32 -1.442695, %v762_v4 }
 0xeb9   :  { %1228 = vtanh.f32 %v765_v1  ;;  %v1110_v14 = vmul.f32 -1.442695, %v765_v1 }
 0xeba   :  { %1230 = vpow2.f32 %v1109_v12 }
 0xebb   :  { %1232 = vpow2.f32 %v1110_v14 }
 0xec2   :  { %v1227_v8 = vpop.eup %1226 }
 0xec3   :  { %v1229_v10 = vpop.eup %1228  ;;  %781 = vrot.lane.b32.xlu0 %v1227_v8, %s1276_s2 }
 0xec4   :  { %793 = vrot.lane.b32.xlu1 %v1229_v10, %s1276_s2  ;;  %v1231_v16 = vpop.eup %1230 }
 0xec5   :  { %v1233_v26 = vpop.eup %1232  ;;  %v769_v27 = vadd.f32 1.0, %v1231_v16 }
 0xec6   :  { %v775_v31 = vadd.f32 1.0, %v1233_v26 }
 0xec7   :  { %1234 = vrcp.f32 %v769_v27 }
 0xec8   :  { %1236 = vrcp.f32 %v775_v31 }
 0xed1   :  { %v1235_v32 = vpop.eup %1234 }
 0xed2   :  { %v1237_v35 = vpop.eup %1236  ;;  %v778_v41 = vmul.f32 %v1235_v32, %v680_v62 }
 0xed3   :  { %v790_v43 = vmul.f32 %v1237_v35, %v692_v40 }
 0xf35   :  { %v782_v34 = vpop.permute.xlu0 %781 }
 0xf36   :  { %v784_v36 = vmul.f32 %v1235_v32, %v782_v34  ;;  %v794_v38 = vpop.permute.xlu1 %793 }
 0xf37   :  { %v796_v39 = vmul.f32 %v1237_v35, %v794_v38 }
 0xf38   :  { %786 = vrot.lane.b32.xlu0 %v784_v36, %s1276_s2 }
 0xf39   :  { %798 = vrot.lane.b32.xlu1 %v796_v39, %s1276_s2 }
 0xfaa   :  { %v787_v42 = vpop.permute.xlu0 %786 }
 0xfab   :  { %v789_v44 = vadd.f32 %v787_v42, %v778_v41  ;;  %v799_v47 = vpop.permute.xlu1 %798 }
 0xfac   :  { %v801_v48 = vadd.f32 %v799_v47, %v790_v43  ;;  %v976_v43 = vrot.slane %v1413_v37, 6 }
 0xfad   :  { %1238 = vtanh.f32 %v789_v44 }
 0xfae   :  { %1240 = vtanh.f32 %v801_v48 }
 0xfb7   :  { %v1239_v49 = vpop.eup %1238 }
 0xfb8   :  { %v1241_v50 = vpop.eup %1240  ;;  %804 = vrot.lane.b32.xlu0 %v1239_v49, %s1276_s2 }
 0xfb9   :  { %810 = vrot.lane.b32.xlu1 %v1241_v50, %s1276_s2 }
0x102a   :  { %v805_v51 = vpop.permute.xlu0 %804 }
0x102b   :  { %v807_v52 = vmul.f32 %v1235_v32, %v805_v51  ;;  %v811_v53 = vpop.permute.xlu1 %810 }
0x102c   :  { %v813_v54 = vmul.f32 %v1237_v35, %v811_v53 }
0x102d   :  { %815 = vrot.lane.b32.xlu0 %v807_v52, %s1277_s3 }
0x102e   :  { %819 = vrot.lane.b32.xlu1 %v813_v54, %s1278_s25 }
0x109f   :  { %v1567_v55 = vpop.permute.xlu0 %815 }
0x10a0   :  { %v1569_v58 = vpop.permute.xlu1 %819 }
0x10a1   :  { %v822_v59 = vsel %vm282_vm1, %v1567_v55, %v1569_v58 }
0x10a2   :  { %v823_v60 = vpack.c.bf16 %v822_v59, %v822_v59 }
0x10a4   :  { %1111 = vmatmul.mubr.msk.bf16.vlgmr.msra.gmra.mrb[12].mxu1 %vm81_vm0, %v823_v60 }
0x1177   :  { %v861_v2 = vpop.f32.mrb[12].mxu1 }
0x1178   :  { %v870_v62 = vadd.f32 %v868_v61, %v861_v2  ;;  %v863_v63 = vpop.f32.mrb[13].mxu1 }
0x1179   :  { %v873_v40 = vadd.f32 %v871_v30, %v863_v63  ;;  %v865_v0 = vpop.f32.mrb[14].mxu1 }
0x117a   :  { %1242 = vtanh.f32 %v870_v62  ;;  %v866_v3 = vpop.f32.mrb[15].mxu1  ;;  %v1112_v9 = vmul.f32 -1.442695, %v870_v62 }
0x117b   :  { %1244 = vtanh.f32 %v873_v40  ;;  %v1113_v15 = vmul.f32 -1.442695, %v873_v40 }
0x117c   :  { %1246 = vpow2.f32 %v1112_v9 }
0x117d   :  { %1248 = vpow2.f32 %v1113_v15 }
0x1184   :  { %v1243_v5 = vpop.eup %1242 }
0x1185   :  { %v1245_v7 = vpop.eup %1244  ;;  %889 = vrot.lane.b32.xlu0 %v1243_v5, %s1276_s2 }
0x1186   :  { %901 = vrot.lane.b32.xlu1 %v1245_v7, %s1276_s2  ;;  %v1247_v19 = vpop.eup %1246 }
0x1187   :  { %v1249_v20 = vpop.eup %1248  ;;  %v877_v21 = vadd.f32 1.0, %v1247_v19 }
0x1188   :  { %v883_v22 = vadd.f32 1.0, %v1249_v20 }
0x1189   :  { %1250 = vrcp.f32 %v877_v21 }
0x118a   :  { %1252 = vrcp.f32 %v883_v22 }
0x1193   :  { %v1251_v23 = vpop.eup %1250 }
0x1194   :  { %v1253_v24 = vpop.eup %1252  ;;  %v886_v8 = vmul.f32 %v1251_v23, %v789_v44 }
0x1195   :  { %v898_v12 = vmul.f32 %v1253_v24, %v801_v48 }
0x11f7   :  { %v890_v4 = vpop.permute.xlu0 %889 }
0x11f8   :  { %v892_v1 = vmul.f32 %v1251_v23, %v890_v4  ;;  %v902_v25 = vpop.permute.xlu1 %901 }
0x11f9   :  { %v904_v6 = vmul.f32 %v1253_v24, %v902_v25 }
0x11fa   :  { %894 = vrot.lane.b32.xlu0 %v892_v1, %s1276_s2  ;;  %v1037_v1 = vsel %vm282_vm1, %v1567_v55, %v1490_v46 }
0x11fb   :  { %906 = vrot.lane.b32.xlu1 %v904_v6, %s1276_s2  ;;  %v1054_v6 = vrot.slane %v1037_v1, 6 }
0x126c   :  { %v895_v10 = vpop.permute.xlu0 %894 }
0x126d   :  { %v897_v14 = vadd.f32 %v895_v10, %v886_v8  ;;  %v907_v16 = vpop.permute.xlu1 %906  ;;  %v1034_v10 = vsel %vm282_vm1, %v1488_v45, %v1569_v58 }
0x126e   :  { %v909_v26 = vadd.f32 %v907_v16, %v898_v12 }
0x126f   :  { %1254 = vtanh.f32 %v897_v14 }
0x1270   :  { %1256 = vtanh.f32 %v909_v26 }
0x1279   :  { %v1255_v27 = vpop.eup %1254 }
0x127a   :  { %v1257_v31 = vpop.eup %1256  ;;  %912 = vrot.lane.b32.xlu0 %v1255_v27, %s1276_s2 }
0x127b   :  { %918 = vrot.lane.b32.xlu1 %v1257_v31, %s1276_s2 }
0x12ec   :  { %v913_v32 = vpop.permute.xlu0 %912 }
0x12ed   :  { %v915_v34 = vmul.f32 %v1251_v23, %v913_v32  ;;  %v919_v35 = vpop.permute.xlu1 %918 }
0x12ee   :  { %v921_v36 = vmul.f32 %v1253_v24, %v919_v35 }
0x12ef   :  { %923 = vrot.lane.b32.xlu0 %v915_v34, %s1277_s3 }
0x12f0   :  { %927 = vrot.lane.b32.xlu1 %v921_v36, %s1278_s25 }
0x1361   :  { %v924_v38 = vpop.permute.xlu0 %923 }
0x1362   :  { %v928_v39 = vpop.permute.xlu1 %927  ;;  %v1038_v25 = vsel %vm282_vm1, %v924_v38, %v1463_v57  ;;  %v1036_v57 = vsel %vm282_vm1, %v1541_v17, %v1517_v29 }
0x1363   :  { %v930_v41 = vsel %vm282_vm1, %v924_v38, %v928_v39  ;;  %v1033_v8 = vsel %vm282_vm1, %v1461_v56, %v928_v39  ;;  %v1057_v12 = vrot.slane %v1038_v25, 4  ;;  %v1068_v58 = vsel %vm1062_vm2, %v1036_v57, %v1054_v6 }
0x1364   :  { %v931_v42 = vpack.c.bf16 %v930_v41, %v930_v41  ;;  %v1045_v46 = vrot.slane %v1033_v8, 6 }
0x1366   :  { %1114 = vmatmul.mubr.msk.bf16.vlgmr.msra.gmra.mrb[16].mxu0 %vm81_vm0, %v931_v42 }
0x1439   :  { %v969_v44 = vpop.f32.mrb[16].mxu0 }
0x143a   :  { %v978_v47 = vadd.f32 %v976_v43, %v969_v44  ;;  %v971_v48 = vpop.f32.mrb[17].mxu0 }
0x143b   :  { %v979_v49 = vadd.f32 %v971_v48, %v1410_v33  ;;  %v973_v50 = vpop.f32.mrb[18].mxu0 }
0x143c   :  { %1258 = vtanh.f32 %v978_v47  ;;  %v974_v51 = vpop.f32.mrb[19].mxu0  ;;  %v1115_v54 = vmul.f32 -1.442695, %v978_v47 }
0x143d   :  { %1260 = vtanh.f32 %v979_v49  ;;  %v1116_v59 = vmul.f32 -1.442695, %v979_v49 }
0x143e   :  { %1262 = vpow2.f32 %v1115_v54 }
0x143f   :  { %1264 = vpow2.f32 %v1116_v59 }
0x1446   :  { %v1259_v52 = vpop.eup %1258 }
0x1447   :  { %v1261_v53 = vpop.eup %1260  ;;  %995 = vrot.lane.b32.xlu0 %v1259_v52, %s1276_s2 }
0x1448   :  { %1007 = vrot.lane.b32.xlu1 %v1261_v53, %s1276_s2  ;;  %v1263_v37 = vpop.eup %1262 }
0x1449   :  { %v1265_v60 = vpop.eup %1264  ;;  %v983_v61 = vadd.f32 1.0, %v1263_v37 }
0x144a   :  { %v989_v2 = vadd.f32 1.0, %v1265_v60 }
0x144b   :  { %1266 = vrcp.f32 %v983_v61 }
0x144c   :  { %1268 = vrcp.f32 %v989_v2 }
0x1455   :  { %v1267_v33 = vpop.eup %1266 }
0x1456   :  { %v1269_v62 = vpop.eup %1268  ;;  %v992_v3 = vmul.f32 %v1267_v33, %v897_v14  ;;  %v1035_v14 = vsel %vm282_vm1, %v1515_v28, %v1543_v18  ;;  %v1069_v18 = vsel %vm1064_vm3, %v1068_v58, %v1057_v12 }
0x1457   :  { %v1004_v7 = vmul.f32 %v1269_v62, %v909_v26  ;;  %v1048_v26 = vrot.slane %v1034_v10, 4  ;;  %v1051_v28 = vrot.slane %v1035_v14, 2 }
0x14b9   :  { %v996_v30 = vpop.permute.xlu0 %995 }
0x14ba   :  { %v998_v63 = vmul.f32 %v1267_v33, %v996_v30  ;;  %v1008_v40 = vpop.permute.xlu1 %1007 }
0x14bb   :  { %v1010_v0 = vmul.f32 %v1269_v62, %v1008_v40 }
0x14bc   :  { %1000 = vrot.lane.b32.xlu0 %v998_v63, %s1276_s2 }
0x14bd   :  { %1012 = vrot.lane.b32.xlu1 %v1010_v0, %s1276_s2 }
0x152e   :  { %v1001_v5 = vpop.permute.xlu0 %1000 }
0x152f   :  { %v1003_v9 = vadd.f32 %v1001_v5, %v992_v3  ;;  %v1013_v15 = vpop.permute.xlu1 %1012 }
0x1530   :  { %v1015_v19 = vadd.f32 %v1013_v15, %v1004_v7 }
0x1531   :  { %1270 = vtanh.f32 %v1003_v9 }
0x1532   :  { %1272 = vtanh.f32 %v1015_v19 }
0x153b   :  { %v1271_v20 = vpop.eup %1270 }
0x153c   :  { %v1273_v21 = vpop.eup %1272  ;;  %1018 = vrot.lane.b32.xlu0 %v1271_v20, %s1276_s2 }
0x153d   :  { %1024 = vrot.lane.b32.xlu1 %v1273_v21, %s1276_s2 }
0x15ae   :  { %v1019_v22 = vpop.permute.xlu0 %1018 }
0x15af   :  { %v1021_v23 = vmul.f32 %v1267_v33, %v1019_v22  ;;  %v1025_v4 = vpop.permute.xlu1 %1024 }
0x15b0   :  { %v1027_v24 = vmul.f32 %v1269_v62, %v1025_v4 }
0x15b1   :  { %1040 = vrot.lane.b32.xlu1 %v1021_v23, %s1277_s3 }
0x15b2   :  { %1029 = vrot.lane.b32.xlu0 %v1027_v24, %s1278_s25 }
0x1623   :  { %v1041_v16 = vpop.permute.xlu1 %1040 }
0x1624   :  { %v1043_v56 = vsel %vm282_vm1, %v1041_v16, %v1434_v13  ;;  %v1030_v55 = vpop.permute.xlu0 %1029 }
0x1625   :  { %v1060_v45 = vrot.slane %v1043_v56, 2  ;;  %v1032_v27 = vsel %vm282_vm1, %v1432_v11, %v1030_v55 }
0x1626   :  { %v1063_v31 = vsel %vm1062_vm2, %v1032_v27, %v1045_v46 }
0x1627   :  { %v1065_v32 = vsel %vm1064_vm3, %v1063_v31, %v1048_v26  ;;  %v1070_v34 = vsel %vm1066_vm4, %v1069_v18, %v1060_v45 }
0x1628   :  { %v1067_v29 = vsel %vm1066_vm4, %v1065_v32, %v1051_v28  ;;  %1072 = vst.msk [vmem:[%s1631_s4 + $0x8] sm:$0xff] %vm81_vm0, %v1070_v34 }
0x1629   :  { %1071 = vst.msk [vmem:[%s1631_s4] sm:$0xff] %vm81_vm0, %v1067_v29 }

// kernel: _lambda_.6
= control target key start
LH: loop header
LB: loop body
LE: loop exit
PB: predicated region body
PF: predicated region fallthrough
CT: control target
= control target key end

     0   :  { %v5581_v1 = vmov 0   ;;  %vm108_vm0 = vcmask 523264   ;;  %v58_v12 = vlaneseq  ;;  %v5582_v16 = vmov 0.0   ;;  %s5585_s30 = smov 64   ;;  %s5586_s14 = smov 96   ;;  %s6471_s1 = inlined_call_operand.vmem [shape: bf16[64,192], index: 1, kind: input, shape index: {}]   ;;  %s6472_s0 = inlined_call_operand.vmem [shape: f32[16,64], index: 0, kind: input, shape index: {}]   ;;  %s6473_s2 = inlined_call_operand.vmem [shape: f32[1,192], index: 2, kind: input, shape index: {}]   ;;  %s6474_s3 = inlined_call_operand.vmem [shape: bf16[64,64], index: 3, kind: input, shape index: {}]   ;;  %s6475_s4 = inlined_call_operand.vmem [shape: f32[1,64], index: 4, kind: input, shape index: {}]   ;;  %s6476_s5 = inlined_call_operand.vmem [shape: bf16[64,128], index: 5, kind: input, shape index: {}]   ;;  %s6477_s7 = inlined_call_operand.vmem [shape: bf16[128,64], index: 7, kind: input, shape index: {}]   ;;  %s6478_s9 = inlined_call_operand.vmem [shape: f32[1,64], index: 9, kind: input, shape index: {}, may-alias: {9,11}]   ;;  %s6479_s10 = inlined_call_operand.vmem [shape: f32[1,64], index: 10, kind: input, shape index: {}, may-alias: {10,12}]   ;;  %s6480_s6 = inlined_call_operand.vmem [shape: f32[1,128], index: 6, kind: input, shape index: {}]   ;;  %s6481_s8 = inlined_call_operand.vmem [shape: f32[1,64], index: 8, kind: input, shape index: {}]   ;;  %s6482_s11 = inlined_call_operand.vmem [shape: f32[1,64], index: 11, kind: input, shape index: {}, may-alias: {9,11}]   ;;  %s6483_s12 = inlined_call_operand.vmem [shape: f32[1,64], index: 12, kind: input, shape index: {}, may-alias: {10,12}]   ;;  %s6484_s13 = inlined_call_operand.vmem [shape: f32[16,64], index: 13, kind: output, shape index: {}]  }
   0x1   :  { %v5511_v0 = vld [vmem:[%s6471_s1 + $0x4] ss:$8 sps:$4 sm:$0xff]   ;;  %144 = vmatprep.mubr.bf16.mxu0 %v5581_v1  ;;  %v5513_v2 = vld [vmem:[%s6471_s1] ss:$8 sps:$4 sm:$0xff]   ;;  %v5514_v3 = vld [vmem:[%s6471_s1 + $0x14] ss:$8 sps:$4 sm:$0xff]   ;;  %5344 = vmatprep.subr.bf16.mxu1 %v5582_v16 }
   0x2   :  { %112 = vmatprep.subr.bf16.mxu0 %v5511_v0  ;;  %v5516_v4 = vld [vmem:[%s6471_s1 + $0x10] ss:$8 sps:$4 sm:$0xff]   ;;  %v5517_v5 = vld [vmem:[%s6471_s1 + $0x24] ss:$8 sps:$4 sm:$0xff]   ;;  %v5519_v6 = vld [vmem:[%s6471_s1 + $0x20] ss:$8 sps:$4 sm:$0xff]  }
   0x3   :  { %113 = vmatpush1.bf16.msra.mxu0 %v5513_v2  ;;  %v5520_v7 = vld [vmem:[%s6471_s1 + $0x34] ss:$8 sps:$4 sm:$0xff]   ;;  %v5522_v8 = vld [vmem:[%s6471_s1 + $0x30] ss:$8 sps:$4 sm:$0xff]   ;;  %v45_v9 = vld [vmem:[%s6472_s0] sm:$0xff]  ;;  %v59_v13 = vshrl.u32 %v58_v12, 7 }
   0x4   :  { %114 = vmatprep.subr.bf16.mxu0 %v5514_v3  ;;  %v46_v10 = vld [vmem:[%s6472_s0 + $0x8] sm:$0xff]  ;;  %v56_v15 = vld [vmem:[%s6473_s2] sm:$0x3]  ;;  %s5583_s1 = smov 80   ;;  %s5584_s2 = smov 112   ;;  %vm5589_vm1 = vmmov 0  }
   0x5   :  { %v47_v11 = vpack.c.bf16 %v46_v10, %v45_v9  ;;  %v60_v14 = vsub.s32 0, %v59_v13  ;;  %v64_v18 = vsub.s32 1, %v59_v13  ;;  %v5587_v30 = vmov 1983009808   ;;  %5346 = vmatprep.mubr.msk.bf16.mxu1 %vm5589_vm1, %v5582_v16  ;;  %s5590_s23 = smov 32   ;;  %s5591_s24 = smov 16  }
   0x6   :  { %v168_v31 = vunpack.c.l.s4 %v5587_v30  ;;  %v5588_v33 = vmov 1934713408   ;;  %vm1137_vm2 = vcmask 130048   ;;  %vm1314_vm3 = vcmask 64512  }
   0x7   :  { %115 = vmatpush1.bf16.msra.mxu0 %v5516_v4  ;;  %v61_v17 = vrot.slane %v56_v15, %v60_v14  ;;  %v5704_v22 = vrot.slane %v56_v15, %v64_v18  ;;  %v200_v34 = vunpack.c.l.s4 %v5588_v33  ;;  %vm2500_vm4 = vcmask 261120  }
   0x8   :  { %116 = vmatprep.subr.bf16.mxu0 %v5517_v5  ;;  %v169_v32 = vunpack.c.0.s8 %v168_v31  ;;  %vm2502_vm5 = vcmask 392192  }
   0x9   :  { %v201_v38 = vunpack.c.0.s8 %v200_v34 }
   0xa   :  { %v5731_v37 = vsub.s32 %v169_v32, %v59_v13 }
   0xb   :  { %117 = vmatpush1.bf16.msra.mxu0 %v5519_v6  ;;  %v5737_v49 = vsub.s32 %v201_v38, %v59_v13 }
   0xc   :  { %118 = vmatprep.subr.bf16.mxu0 %v5520_v7 }
   0xf   :  { %119 = vmatpush1.bf16.msra.mxu0 %v5522_v8 }
  0x10   :  { %5362 = vmatprep.subr.bf16.mxu0 %v5582_v16 }
  0x12   :  { %5239 = vmatmul.mubr.msk.bf16.vlgmr.msra.gmra.mrb[0].mxu0 %vm108_vm0, %v47_v11 }
  0x13   :  { %5364 = vmatprep.mubr.msk.bf16.mxu0 %vm5589_vm1, %v5582_v16 }
  0xe5   :  { %v146_v19 = vpop.f32.mrb[0].mxu0 }
  0xe6   :  { %v5700_v20 = vadd.f32 %v146_v19, %v61_v17  ;;  %v5702_v21 = vpop.f32.mrb[1].mxu0 }
  0xe7   :  { %v150_v23 = vpop.f32.mrb[2].mxu0 }
  0xe8   :  { %v5706_v24 = vadd.f32 %v150_v23, %v61_v17  ;;  %v152_v25 = vpop.f32.mrb[3].mxu0  ;;  %162 = vrot.lane.b32.xlu1 %v5700_v20, %s5583_s1  ;;  %156 = vrot.lane.b32.xlu0 %v5700_v20, %s5584_s2 }
  0xe9   :  { %v5713_v26 = vadd.f32 %v152_v25, %v5704_v22 }
  0xec   :  { %233 = vrot.lane.b32.xlu1 %v5700_v20, %s5585_s30  ;;  %159 = vrot.lane.b32.xlu0 %v5700_v20, %s5586_s14 }
 0x15a   :  { %v5719_v27 = vpop.permute.xlu0 %156  ;;  %v5723_v28 = vpop.permute.xlu1 %162 }
 0x15b   :  { %235 = vrot.lane.b32.xlu0 %v5719_v27, %s5585_s30 }
 0x15e   :  { %v5725_v29 = vpop.permute.xlu0 %159  ;;  %v234_v35 = vpop.permute.xlu1 %233 }
 0x15f   :  { %239 = vrot.lane.b32.xlu0 %v5723_v28, %s5585_s30  ;;  %237 = vrot.lane.b32.xlu1 %v5725_v29, %s5585_s30 }
 0x1cd   :  { %v236_v36 = vpop.permute.xlu0 %235 }
 0x1d1   :  { %v238_v39 = vpop.permute.xlu1 %237  ;;  %v240_v40 = vpop.permute.xlu0 %239 }
 0x1d2   :  { %v245_v41 = vcombine.low %v234_v35, %v238_v39  ;;  %v246_v42 = vcombine.high %v234_v35, %v238_v39  ;;  %v261_v43 = vcombine.low %v236_v36, %v240_v40  ;;  %v262_v44 = vcombine.high %v236_v36, %v240_v40 }
 0x1d4   :  { %v253_v45 = vrot.slane %v245_v41, %v5731_v37  ;;  %v260_v46 = vrot.slane %v246_v42, %v5731_v37  ;;  %v269_v47 = vrot.slane %v261_v43, %v5731_v37  ;;  %v276_v48 = vrot.slane %v262_v44, %v5731_v37 }
 0x1d6   :  { %v278_v50 = vcombine.high %v253_v45, %v269_v47  ;;  %v277_v51 = vcombine.low %v253_v45, %v269_v47  ;;  %v293_v52 = vcombine.low %v260_v46, %v276_v48  ;;  %v294_v55 = vcombine.high %v260_v46, %v276_v48 }
 0x1d8   :  { %v292_v53 = vrot.slane %v278_v50, %v5737_v49  ;;  %v285_v54 = vrot.slane %v277_v51, %v5737_v49  ;;  %v301_v58 = vrot.slane %v293_v52, %v5737_v49  ;;  %v308_v60 = vrot.slane %v294_v55, %v5737_v49 }
 0x1da   :  { %v401_v56 = vpack.c.bf16 %v292_v53, %v292_v53  ;;  %v399_v57 = vpack.c.bf16 %v285_v54, %v285_v54  ;;  %v310_v59 = vcombine.high %v292_v53, %v5582_v16  ;;  %v403_v61 = vpack.c.bf16 %v301_v58, %v301_v58 }
 0x1db   :  { %v311_v63 = vcombine.high %v301_v58, %v5582_v16  ;;  %v309_v0 = vcombine.high %v285_v54, %v5582_v16  ;;  %v312_v4 = vcombine.high %v308_v60, %v5582_v16  ;;  %v405_v6 = vpack.c.bf16 %v308_v60, %v308_v60 }
 0x1dc   :  { %501 = vxpose.xlu0.c.b16.start.end [1/1] (short) (narrow) %v401_v56, 16  ;;  %469 = vxpose.xlu1.c.b16.start.end [1/1] (short) (narrow) %v399_v57, 16  ;;  %v402_v62 = vpack.c.bf16 %v310_v59, %v310_v59 }
 0x1dd   :  { %v404_v2 = vpack.c.bf16 %v311_v63, %v311_v63  ;;  %v400_v3 = vpack.c.bf16 %v309_v0, %v309_v0  ;;  %v406_v5 = vpack.c.bf16 %v312_v4, %v312_v4 }
 0x1e0   :  { %533 = vxpose.xlu0.c.b16.start.end [1/1] (short) (narrow) %v403_v61, 16  ;;  %517 = vxpose.xlu1.c.b16.start.end [1/1] (short) (narrow) %v402_v62, 16 }
 0x1e4   :  { %549 = vxpose.xlu1.c.b16.start.end [1/1] (short) (narrow) %v404_v2, 16  ;;  %485 = vxpose.xlu0.c.b16.start.end [1/1] (short) (narrow) %v400_v3, 16 }
 0x1e8   :  { %581 = vxpose.xlu1.c.b16.start.end [1/1] (short) (narrow) %v406_v5, 16  ;;  %565 = vxpose.xlu0.c.b16.start.end [1/1] (short) (narrow) %v405_v6, 16 }
 0x242   :  { %v509_v7 = vpop.trf.xlu0  ;;  %v477_v8 = vpop.trf.xlu1 }
 0x243   :  { %v601_v11 = vshrl.u32 %v477_v8, 16  ;;  %v609_v31 = vshrl.u32 %v509_v7, 16 }
 0x246   :  { %v541_v9 = vpop.trf.xlu0  ;;  %v525_v10 = vpop.trf.xlu1 }
 0x247   :  { %v617_v12 = vshrl.u32 %v541_v9, 16  ;;  %v610_v23 = vshrl.u32 %v525_v10, 16  ;;  %v607_v32 = vpack.i.b16 %v525_v10, %v509_v7 }
 0x249   :  { %v611_v40 = vpack.i.b16 %v610_v23, %v609_v31  ;;  %v5783_v23 = vadd.f32 %v5702_v21, %v5704_v22  ;;  %v166_v21 = vcombine.high %v5700_v20, %v5725_v29  ;;  %v181_v31 = vcombine.low %v5719_v27, %v5723_v28 }
 0x24a   :  { %v557_v13 = vpop.trf.xlu1  ;;  %v493_v14 = vpop.trf.xlu0 }
 0x24b   :  { %v615_v15 = vpack.i.b16 %v557_v13, %v541_v9  ;;  %v618_v17 = vshrl.u32 %v557_v13, 16  ;;  %v599_v18 = vpack.i.b16 %v493_v14, %v477_v8  ;;  %v602_v19 = vshrl.u32 %v493_v14, 16 }
 0x24d   :  { %v619_v25 = vpack.i.b16 %v618_v17, %v617_v12  ;;  %v603_v30 = vpack.i.b16 %v602_v19, %v601_v11  ;;  %v629_v35 = vcombine.low %v599_v18, %v615_v15  ;;  %v630_v48 = vcombine.high %v599_v18, %v615_v15 }
 0x24e   :  { %v589_v33 = vpop.trf.xlu1  ;;  %v573_v34 = vpop.trf.xlu0 }
 0x24f   :  { %v626_v36 = vshrl.u32 %v589_v33, 16  ;;  %v623_v38 = vpack.i.b16 %v589_v33, %v573_v34  ;;  %v625_v39 = vshrl.u32 %v573_v34, 16  ;;  %v697_v43 = vcombine.low %v603_v30, %v619_v25 }
 0x250   :  { %v637_v45 = vrot.slane %v629_v35, %v5731_v37  ;;  %v698_v54 = vcombine.high %v603_v30, %v619_v25  ;;  %v644_v61 = vrot.slane %v630_v48, %v5731_v37  ;;  %v165_v30 = vcombine.low %v5700_v20, %v5725_v29 }
 0x251   :  { %v627_v41 = vpack.i.b16 %v626_v36, %v625_v39  ;;  %v645_v42 = vcombine.low %v607_v32, %v623_v38  ;;  %v646_v44 = vcombine.high %v607_v32, %v623_v38  ;;  %v705_v51 = vrot.slane %v697_v43, %v5731_v37 }
 0x252   :  { %v712_v2 = vrot.slane %v698_v54, %v5731_v37  ;;  %v182_v32 = vcombine.high %v5719_v27, %v5723_v28  ;;  %v173_v34 = vrot.slane %v165_v30, %v5731_v37  ;;  %v180_v35 = vrot.slane %v166_v21, %v5731_v37 }
 0x253   :  { %v653_v46 = vrot.slane %v645_v42, %v5731_v37  ;;  %v713_v47 = vcombine.low %v611_v40, %v627_v41  ;;  %v714_v53 = vcombine.high %v611_v40, %v627_v41  ;;  %v660_v58 = vrot.slane %v646_v44, %v5731_v37 }
 0x254   :  { %v189_v38 = vrot.slane %v181_v31, %v5731_v37  ;;  %v196_v39 = vrot.slane %v182_v32, %v5731_v37 }
 0x255   :  { %v661_v50 = vcombine.low %v637_v45, %v653_v46  ;;  %v721_v52 = vrot.slane %v713_v47, %v5731_v37  ;;  %v662_v57 = vcombine.high %v637_v45, %v653_v46  ;;  %v728_v62 = vrot.slane %v714_v53, %v5731_v37 }
 0x256   :  { %v677_v0 = vcombine.low %v644_v61, %v660_v58  ;;  %v678_v6 = vcombine.high %v644_v61, %v660_v58  ;;  %v197_v41 = vcombine.low %v173_v34, %v189_v38  ;;  %v198_v20 = vcombine.high %v173_v34, %v189_v38 }
 0x257   :  { %v669_v55 = vrot.slane %v661_v50, %v5737_v49  ;;  %v729_v56 = vcombine.low %v705_v51, %v721_v52  ;;  %v730_v60 = vcombine.high %v705_v51, %v721_v52  ;;  %v676_v63 = vrot.slane %v662_v57, %v5737_v49 }
 0x258   :  { %v745_v4 = vcombine.low %v712_v2, %v728_v62  ;;  %v685_v5 = vrot.slane %v677_v0, %v5737_v49  ;;  %v746_v8 = vcombine.high %v712_v2, %v728_v62  ;;  %v692_v9 = vrot.slane %v678_v6, %v5737_v49 }
 0x259   :  { %765 = vxpose.xlu0.c.b16.start.end [1/1] (short) (narrow) %v669_v55, 16  ;;  %v737_v59 = vrot.slane %v729_v56, %v5737_v49  ;;  %v744_v3 = vrot.slane %v730_v60, %v5737_v49  ;;  %v693_v11 = vcombine.high %v669_v55, %v5581_v1  ;;  %v694_v13 = vcombine.high %v676_v63, %v5581_v1 }
 0x25a   :  { %v753_v7 = vrot.slane %v745_v4, %v5737_v49  ;;  %v760_v10 = vrot.slane %v746_v8, %v5737_v49  ;;  %v695_v15 = vcombine.high %v685_v5, %v5581_v1  ;;  %v696_v18 = vcombine.high %v692_v9, %v5581_v1 }
 0x25b   :  { %781 = vxpose.xlu1.c.b16.start.end [1/1] (short) (narrow) %v737_v59, 16  ;;  %v761_v12 = vcombine.high %v737_v59, %v5581_v1  ;;  %v762_v14 = vcombine.high %v744_v3, %v5581_v1  ;;  %v213_v29 = vcombine.low %v180_v35, %v196_v39  ;;  %v214_v42 = vcombine.high %v180_v35, %v196_v39 }
 0x25c   :  { %v763_v17 = vcombine.high %v753_v7, %v5581_v1  ;;  %v764_v19 = vcombine.high %v760_v10, %v5581_v1  ;;  %v205_v45 = vrot.slane %v197_v41, %v5737_v49  ;;  %v212_v27 = vrot.slane %v198_v20, %v5737_v49 }
 0x25d   :  { %829 = vxpose.xlu0.c.b16.start.end [1/1] (short) (narrow) %v676_v63, 16  ;;  %v221_v28 = vrot.slane %v213_v29, %v5737_v49  ;;  %v228_v46 = vrot.slane %v214_v42, %v5737_v49 }
 0x25e   :  { %v229_v50 = vcombine.high %v205_v45, %v5582_v16  ;;  %v230_v51 = vcombine.high %v212_v27, %v5582_v16 }
 0x25f   :  { %845 = vxpose.xlu1.c.b16.start.end [1/1] (short) (narrow) %v744_v3, 16  ;;  %v231_v52 = vcombine.high %v221_v28, %v5582_v16  ;;  %v232_v53 = vcombine.high %v228_v46, %v5582_v16  ;;  %v5240_v60 = vpack.c.bf16 %v221_v28, %v205_v45  ;;  %v5241_v61 = vpack.c.bf16 %v228_v46, %v212_v27 }
 0x261   :  { %893 = vxpose.xlu0.c.b16.start.end [1/1] (short) (narrow) %v685_v5, 16  ;;  %v5242_v56 = vpack.c.bf16 %v231_v52, %v229_v50  ;;  %v5243_v57 = vpack.c.bf16 %v232_v53, %v230_v51  ;;  %v414_v8 = vrot.slane %v5240_v60, %v5731_v37 }
 0x263   :  { %909 = vxpose.xlu1.c.b16.start.end [1/1] (short) (narrow) %v753_v7, 16  ;;  %v439_v4 = vrot.slane %v5242_v56, %v5731_v37  ;;  %v447_v5 = vrot.slane %v5243_v57, %v5731_v37 }
 0x265   :  { %957 = vxpose.xlu0.c.b16.start.end [1/1] (short) (narrow) %v692_v9, 16  ;;  %v422_v9 = vrot.slane %v5241_v61, %v5731_v37 }
 0x267   :  { %973 = vxpose.xlu1.c.b16.start.end [1/1] (short) (narrow) %v760_v10, 16 }
 0x269   :  { %797 = vxpose.xlu0.c.b16.start.end [1/1] (short) (narrow) %v693_v11, 16 }
 0x26b   :  { %813 = vxpose.xlu1.c.b16.start.end [1/1] (short) (narrow) %v761_v12, 16 }
 0x26d   :  { %861 = vxpose.xlu0.c.b16.start.end [1/1] (short) (narrow) %v694_v13, 16 }
 0x26f   :  { %877 = vxpose.xlu1.c.b16.start.end [1/1] (short) (narrow) %v762_v14, 16 }
 0x271   :  { %925 = vxpose.xlu0.c.b16.start.end [1/1] (short) (narrow) %v695_v15, 16 }
 0x273   :  { %941 = vxpose.xlu1.c.b16.start.end [1/1] (short) (narrow) %v763_v17, 16 }
 0x275   :  { %989 = vxpose.xlu0.c.b16.start.end [1/1] (short) (narrow) %v696_v18, 16  ;;  %v448_v18 = vcombine.low %v439_v4, %v447_v5 }
 0x277   :  { %1005 = vxpose.xlu1.c.b16.start.end [1/1] (short) (narrow) %v764_v19, 16  ;;  %v455_v35 = vrot.slane %v448_v18, %v5737_v49 }
 0x279   :  { %v456_v42 = vcombine.high %v455_v35, %v5581_v1 }
 0x27b   :  { %2508 = vrot.lane.b32.xlu1 %v5706_v24, %s5586_s14  ;;  %v467_v50 = vshrl.u32 %v456_v42, 16 }
 0x27e   :  { %2505 = vrot.lane.b32.xlu0 %v5706_v24, %s5584_s2 }
 0x27f   :  { %2511 = vrot.lane.b32.xlu1 %v5706_v24, %s5583_s1 }
 0x282   :  { %317 = vrot.lane.b32.xlu0 %v5783_v23, %s5586_s14 }
 0x283   :  { %314 = vrot.lane.b32.xlu1 %v5783_v23, %s5584_s2 }
 0x287   :  { %320 = vrot.lane.b32.xlu1 %v5783_v23, %s5583_s1 }
 0x28b   :  { %2582 = vrot.lane.b32.xlu1 %v5706_v24, %s5585_s30 }
 0x2bf   :  { %v773_v25 = vpop.trf.xlu0 }
 0x2c1   :  { %v789_v22 = vpop.trf.xlu1 }
 0x2c3   :  { %v837_v33 = vpop.trf.xlu0 }
 0x2c4   :  { %v1021_v63 = vcombine.low %v773_v25, %v837_v33 }
 0x2c5   :  { %v853_v36 = vpop.trf.xlu1 }
 0x2c6   :  { %v1071_v2 = vcombine.low %v789_v22, %v853_v36  ;;  %v1028_v11 = vrot.slane %v1021_v63, %v5731_v37  ;;  %v423_v22 = vcombine.low %v414_v8, %v422_v9 }
 0x2c7   :  { %v901_v40 = vpop.trf.xlu0 }
 0x2c8   :  { %v1078_v15 = vrot.slane %v1071_v2, %v5731_v37 }
 0x2c9   :  { %v917_v43 = vpop.trf.xlu1 }
 0x2cb   :  { %v965_v44 = vpop.trf.xlu0 }
 0x2cc   :  { %v1037_v6 = vcombine.low %v901_v40, %v965_v44  ;;  %v430_v40 = vrot.slane %v423_v22, %v5737_v49 }
 0x2cd   :  { %v981_v47 = vpop.trf.xlu1 }
 0x2ce   :  { %v1087_v12 = vcombine.low %v917_v43, %v981_v47  ;;  %v1044_v19 = vrot.slane %v1037_v6, %v5731_v37  ;;  %v431_v27 = vcombine.high %v430_v40, %v5581_v1  ;;  %v459_v53 = vpack.i.b16 %v455_v35, %v430_v40 }
 0x2cf   :  { %v805_v48 = vpop.trf.xlu0  ;;  %v460_v61 = vshrl.u32 %v430_v40, 16 }
 0x2d0   :  { %v1094_v31 = vrot.slane %v1087_v12, %v5731_v37 }
 0x2d1   :  { %v821_v54 = vpop.trf.xlu1 }
 0x2d3   :  { %v869_v55 = vpop.trf.xlu0 }
 0x2d4   :  { %v1029_v59 = vcombine.low %v805_v48, %v869_v55 }
 0x2d5   :  { %v885_v58 = vpop.trf.xlu1 }
 0x2d6   :  { %v1079_v0 = vcombine.low %v821_v54, %v885_v58  ;;  %v1036_v7 = vrot.slane %v1029_v59, %v5731_v37  ;;  %v466_v54 = vshrl.u32 %v431_v27, 16  ;;  %v461_v58 = vshrl.u32 %v455_v35, 16 }
 0x2d7   :  { %v933_v62 = vpop.trf.xlu0 }
 0x2d8   :  { %v1086_v13 = vrot.slane %v1079_v0, %v5731_v37  ;;  %v1053_v25 = vcombine.low %v1028_v11, %v1036_v7  ;;  %v468_v57 = vpack.i.b16 %v467_v50, %v466_v54 }
 0x2d9   :  { %v949_v3 = vpop.trf.xlu1 }
 0x2da   :  { %v1103_v32 = vcombine.low %v1078_v15, %v1086_v13  ;;  %v1060_v38 = vrot.slane %v1053_v25, %v5737_v49 }
 0x2db   :  { %v997_v10 = vpop.trf.xlu0 }
 0x2dc   :  { %v1045_v14 = vcombine.low %v933_v62, %v997_v10  ;;  %v1110_v20 = vrot.slane %v1103_v32, %v5737_v49  ;;  %v462_v62 = vpack.i.b16 %v461_v58, %v460_v61 }
 0x2dd   :  { %v1013_v17 = vpop.trf.xlu1 }
 0x2de   :  { %v1052_v30 = vrot.slane %v1045_v14, %v5731_v37  ;;  %v1095_v21 = vcombine.low %v949_v3, %v1013_v17  ;;  %v465_v3 = vpack.i.b16 %v456_v42, %v431_v27 }
 0x2e0   :  { %v1061_v33 = vcombine.low %v1044_v19, %v1052_v30  ;;  %v1102_v34 = vrot.slane %v1095_v21, %v5731_v37 }
 0x2e2   :  { %v1111_v36 = vcombine.low %v1094_v31, %v1102_v34  ;;  %v1068_v39 = vrot.slane %v1061_v33, %v5737_v49 }
 0x2e4   :  { %v1070_v41 = vcombine.high %v1060_v38, %v1068_v39  ;;  %v1118_v29 = vrot.slane %v1111_v36, %v5737_v49  ;;  %v1069_v43 = vcombine.low %v1060_v38, %v1068_v39 }
 0x2e6   :  { %v1119_v44 = vcombine.low %v1110_v20, %v1118_v29  ;;  %v1120_v45 = vcombine.high %v1110_v20, %v1118_v29  ;;  %v1133_v47 = vshrl.u32 %v1070_v41, 16  ;;  %v1125_v51 = vshrl.u32 %v1069_v43, 16 }
 0x2e8   :  { %v1123_v28 = vpack.i.b16 %v1119_v44, %v1069_v43  ;;  %v1126_v46 = vshrl.u32 %v1119_v44, 16  ;;  %v1134_v48 = vshrl.u32 %v1120_v45, 16  ;;  %v1131_v63 = vpack.i.b16 %v1120_v45, %v1070_v41 }
 0x2ea   :  { %5345 = vmatpush3.bf16.msra.mxu1 %v1123_v28  ;;  %v1135_v52 = vpack.i.b16 %v1134_v48, %v1133_v47  ;;  %v1127_v55 = vpack.i.b16 %v1126_v46, %v1125_v51 }
 0x2eb   :  { %5350 = vmatprep.subr.bf16.mxu1 %v5582_v16 }
 0x2ec   :  { %5363 = vmatpush3.bf16.msra.mxu0 %v1135_v52 }
 0x2ed   :  { %v5834_v56 = vpop.permute.xlu1 %2508  ;;  %5347 = vmatmul.mubr.msk.bf16.vlgmr.msra.gmra.mrb[0].mxu1 %vm1137_vm2, %v459_v53  ;;  %5374 = vmatprep.subr.bf16.mxu0 %v5582_v16 }
 0x2ee   :  { %2586 = vrot.lane.b32.xlu1 %v5834_v56, %s5585_s30  ;;  %5351 = vmatpush3.bf16.msra.mxu1 %v1127_v55 }
 0x2ef   :  { %5365 = vmatmul.mubr.msk.bf16.vlgmr.msra.gmra.mrb[4].mxu0 %vm1137_vm2, %v468_v57  ;;  %5352 = vmatprep.mubr.msk.bf16.mxu1 %vm5589_vm1, %v5582_v16 }
 0x2f0   :  { %v5843_v59 = vpop.permute.xlu0 %2505  ;;  %5356 = vmatprep.subr.bf16.mxu1 %v5582_v16  ;;  %5376 = vmatprep.mubr.msk.bf16.mxu0 %vm5589_vm1, %v5582_v16 }
 0x2f1   :  { %v5848_v60 = vpop.permute.xlu1 %2511  ;;  %2584 = vrot.lane.b32.xlu0 %v5843_v59, %s5585_s30 }
 0x2f4   :  { %v318_v4 = vpop.permute.xlu0 %317 }
 0x2f5   :  { %v315_v0 = vpop.permute.xlu1 %314  ;;  %5353 = vmatmul.mubr.msk.bf16.vlgmr.msra.gmra.mrb[4].mxu1 %vm1137_vm2, %v462_v62  ;;  %2588 = vrot.lane.b32.xlu0 %v5848_v60, %s5585_s30  ;;  %v323_v6 = vcombine.low %v5783_v23, %v318_v4  ;;  %v324_v10 = vcombine.high %v5783_v23, %v318_v4 }
 0x2f6   :  { %5357 = vmatpush3.bf16.msra.mxu1 %v1131_v63  ;;  %5358 = vmatprep.mubr.msk.bf16.mxu1 %vm5589_vm1, %v5582_v16 }
 0x2f7   :  { %5368 = vmatprep.subr.bf16.mxu1 %v5582_v16  ;;  %v331_v8 = vrot.slane %v323_v6, %v5731_v37  ;;  %v338_v14 = vrot.slane %v324_v10, %v5731_v37 }
 0x2f9   :  { %v321_v2 = vpop.permute.xlu1 %320 }
 0x2fa   :  { %v339_v5 = vcombine.low %v315_v0, %v321_v2  ;;  %v340_v9 = vcombine.high %v315_v0, %v321_v2 }
 0x2fc   :  { %v347_v7 = vrot.slane %v339_v5, %v5731_v37  ;;  %v354_v12 = vrot.slane %v340_v9, %v5731_v37 }
 0x2fd   :  { %5359 = vmatmul.mubr.msk.bf16.vlgmr.msra.gmra.mrb[8].mxu1 %vm1137_vm2, %v465_v3  ;;  %v2583_v41 = vpop.permute.xlu1 %2582 }
 0x2fe   :  { %5370 = vmatprep.mubr.msk.bf16.mxu1 %vm5589_vm1, %v5582_v16  ;;  %v355_v11 = vcombine.low %v331_v8, %v347_v7  ;;  %v356_v13 = vcombine.high %v331_v8, %v347_v7  ;;  %v371_v18 = vcombine.low %v338_v14, %v354_v12  ;;  %v372_v22 = vcombine.high %v338_v14, %v354_v12 }
 0x300   :  { %v363_v15 = vrot.slane %v355_v11, %v5737_v49  ;;  %v370_v17 = vrot.slane %v356_v13, %v5737_v49  ;;  %v379_v21 = vrot.slane %v371_v18, %v5737_v49  ;;  %v386_v33 = vrot.slane %v372_v22, %v5737_v49 }
 0x302   :  { %v387_v19 = vcombine.high %v363_v15, %v5582_v16  ;;  %v1363_v25 = vpack.c.bf16 %v363_v15, %v363_v15  ;;  %v388_v30 = vcombine.high %v370_v17, %v5582_v16  ;;  %v389_v32 = vcombine.high %v379_v21, %v5582_v16 }
 0x303   :  { %v1365_v34 = vpack.c.bf16 %v370_v17, %v370_v17  ;;  %v390_v36 = vcombine.high %v386_v33, %v5582_v16  ;;  %v1367_v38 = vpack.c.bf16 %v379_v21, %v379_v21  ;;  %v1369_v40 = vpack.c.bf16 %v386_v33, %v386_v33 }
 0x304   :  { %v1364_v23 = vpack.c.bf16 %v387_v19, %v387_v19  ;;  %v1366_v31 = vpack.c.bf16 %v388_v30, %v388_v30  ;;  %v1368_v35 = vpack.c.bf16 %v389_v32, %v389_v32 }
 0x305   :  { %v1370_v39 = vpack.c.bf16 %v390_v36, %v390_v36 }
 0x311   :  { %1371 = vxpose.xlu1.c.b16.start.end [1/1] (short) (narrow) %v1363_v25, 16 }
 0x313   :  { %1387 = vxpose.xlu0.c.b16.start.end [1/1] (short) (narrow) %v1364_v23, 16 }
 0x315   :  { %1419 = vxpose.xlu1.c.b16.start.end [1/1] (short) (narrow) %v1366_v31, 16 }
 0x317   :  { %1403 = vxpose.xlu0.c.b16.start.end [1/1] (short) (narrow) %v1365_v34, 16 }
 0x319   :  { %1451 = vxpose.xlu1.c.b16.start.end [1/1] (short) (narrow) %v1368_v35, 16 }
 0x31b   :  { %1435 = vxpose.xlu0.c.b16.start.end [1/1] (short) (narrow) %v1367_v38, 16 }
 0x31d   :  { %1483 = vxpose.xlu1.c.b16.start.end [1/1] (short) (narrow) %v1370_v39, 16 }
 0x31f   :  { %1467 = vxpose.xlu0.c.b16.start.end [1/1] (short) (narrow) %v1369_v40, 16 }
 0x360   :  { %v2587_v20 = vpop.permute.xlu1 %2586 }
 0x361   :  { %v2594_v42 = vcombine.low %v2583_v41, %v2587_v20  ;;  %v2595_v44 = vcombine.high %v2583_v41, %v2587_v20 }
 0x363   :  { %v2585_v29 = vpop.permute.xlu0 %2584  ;;  %v2602_v28 = vrot.slane %v2594_v42, %v5731_v37  ;;  %v2609_v48 = vrot.slane %v2595_v44, %v5731_v37 }
 0x367   :  { %v2589_v43 = vpop.permute.xlu0 %2588 }
 0x368   :  { %v2610_v45 = vcombine.low %v2585_v29, %v2589_v43  ;;  %v2611_v27 = vcombine.high %v2585_v29, %v2589_v43 }
 0x36a   :  { %v2618_v46 = vrot.slane %v2610_v45, %v5731_v37  ;;  %v2625_v47 = vrot.slane %v2611_v27, %v5731_v37 }
 0x36c   :  { %v2626_v50 = vcombine.low %v2602_v28, %v2618_v46  ;;  %v2627_v51 = vcombine.high %v2602_v28, %v2618_v46  ;;  %v2642_v54 = vcombine.low %v2609_v48, %v2625_v47  ;;  %v2643_v63 = vcombine.high %v2609_v48, %v2625_v47 }
 0x36e   :  { %v2634_v52 = vrot.slane %v2626_v50, %v5737_v49  ;;  %v2641_v53 = vrot.slane %v2627_v51, %v5737_v49  ;;  %v2650_v62 = vrot.slane %v2642_v54, %v5737_v49  ;;  %v2657_v4 = vrot.slane %v2643_v63, %v5737_v49 }
 0x370   :  { %v2748_v55 = vpack.c.bf16 %v2634_v52, %v2634_v52  ;;  %v2658_v57 = vcombine.high %v2634_v52, %v5582_v16  ;;  %v2659_v61 = vcombine.high %v2641_v53, %v5582_v16  ;;  %v2750_v0 = vpack.c.bf16 %v2641_v53, %v2641_v53 }
 0x371   :  { %v2660_v3 = vcombine.high %v2650_v62, %v5582_v16  ;;  %v2752_v6 = vpack.c.bf16 %v2650_v62, %v2650_v62  ;;  %v2661_v9 = vcombine.high %v2657_v4, %v5582_v16  ;;  %v2754_v11 = vpack.c.bf16 %v2657_v4, %v2657_v4 }
 0x372   :  { %2818 = vxpose.xlu0.c.b16.start.end [1/1] (short) (narrow) %v2748_v55, 16  ;;  %v2749_v58 = vpack.c.bf16 %v2658_v57, %v2658_v57  ;;  %v2751_v2 = vpack.c.bf16 %v2659_v61, %v2659_v61 }
 0x373   :  { %v2753_v8 = vpack.c.bf16 %v2660_v3, %v2660_v3  ;;  %v2755_v13 = vpack.c.bf16 %v2661_v9, %v2661_v9 }
 0x374   :  { %2834 = vxpose.xlu1.c.b16.start.end [1/1] (short) (narrow) %v2749_v58, 16 }
 0x376   :  { %2850 = vxpose.xlu0.c.b16.start.end [1/1] (short) (narrow) %v2750_v0, 16 }
 0x377   :  { %v1379_v5 = vpop.trf.xlu1 }
 0x378   :  { %2866 = vxpose.xlu1.c.b16.start.end [1/1] (short) (narrow) %v2751_v2, 16  ;;  %v1503_v14 = vshrl.u32 %v1379_v5, 16 }
 0x379   :  { %v1395_v7 = vpop.trf.xlu0 }
 0x37a   :  { %2882 = vxpose.xlu0.c.b16.start.end [1/1] (short) (narrow) %v2752_v6, 16  ;;  %v1504_v15 = vshrl.u32 %v1395_v7, 16  ;;  %v1501_v18 = vpack.i.b16 %v1395_v7, %v1379_v5 }
 0x37b   :  { %v1427_v10 = vpop.trf.xlu1 }
 0x37c   :  { %2898 = vxpose.xlu1.c.b16.start.end [1/1] (short) (narrow) %v2753_v8, 16  ;;  %v1512_v30 = vshrl.u32 %v1427_v10, 16  ;;  %v1505_v31 = vpack.i.b16 %v1504_v15, %v1503_v14 }
 0x37d   :  { %v1411_v12 = vpop.trf.xlu0 }
 0x37e   :  { %2914 = vxpose.xlu0.c.b16.start.end [1/1] (short) (narrow) %v2754_v11, 16  ;;  %v1511_v21 = vshrl.u32 %v1411_v12, 16  ;;  %v1509_v33 = vpack.i.b16 %v1427_v10, %v1411_v12 }
 0x37f   :  { %v1459_v17 = vpop.trf.xlu1 }
 0x380   :  { %2930 = vxpose.xlu1.c.b16.start.end [1/1] (short) (narrow) %v2755_v13, 16  ;;  %v1520_v19 = vshrl.u32 %v1459_v17, 16  ;;  %v1513_v40 = vpack.i.b16 %v1512_v30, %v1511_v21 }
 0x381   :  { %v1443_v25 = vpop.trf.xlu0 }
 0x382   :  { %v1517_v22 = vpack.i.b16 %v1459_v17, %v1443_v25  ;;  %v1519_v23 = vshrl.u32 %v1443_v25, 16 }
 0x383   :  { %v1491_v32 = vpop.trf.xlu1 }
 0x384   :  { %v1521_v34 = vpack.i.b16 %v1520_v19, %v1519_v23  ;;  %v1531_v35 = vcombine.low %v1501_v18, %v1517_v22  ;;  %v1528_v36 = vshrl.u32 %v1491_v32, 16  ;;  %v1532_v38 = vcombine.high %v1501_v18, %v1517_v22 }
 0x385   :  { %v1475_v39 = vpop.trf.xlu0 }
 0x386   :  { %v1600_v41 = vcombine.high %v1505_v31, %v1521_v34  ;;  %v1525_v20 = vpack.i.b16 %v1491_v32, %v1475_v39  ;;  %v1527_v29 = vshrl.u32 %v1475_v39, 16  ;;  %v1599_v42 = vcombine.low %v1505_v31, %v1521_v34 }
 0x387   :  { %v1539_v27 = vrot.slane %v1531_v35, %v5731_v37  ;;  %v5890_v46 = vrot.slane %v1532_v38, %v5731_v37 }
 0x388   :  { %v1529_v43 = vpack.i.b16 %v1528_v36, %v1527_v29  ;;  %v1547_v44 = vcombine.low %v1509_v33, %v1525_v20  ;;  %v1548_v45 = vcombine.high %v1509_v33, %v1525_v20  ;;  %v1607_v28 = vrot.slane %v1599_v42, %v5731_v37 }
 0x389   :  { %v5897_v52 = vrot.slane %v1600_v41, %v5731_v37 }
 0x38a   :  { %v1616_v47 = vcombine.high %v1513_v40, %v1529_v43  ;;  %v1555_v48 = vrot.slane %v1547_v44, %v5731_v37  ;;  %v1615_v50 = vcombine.low %v1513_v40, %v1529_v43  ;;  %v5894_v51 = vrot.slane %v1548_v45, %v5731_v37 }
 0x38c   :  { %v1563_v53 = vcombine.low %v1539_v27, %v1555_v48  ;;  %v1623_v54 = vrot.slane %v1615_v50, %v5731_v37  ;;  %v5901_v55 = vrot.slane %v1616_v47, %v5731_v37  ;;  %v1580_v57 = vcombine.high %v5890_v46, %v5894_v51 }
 0x38d   :  { %v1564_v3 = vcombine.high %v1539_v27, %v1555_v48  ;;  %v1579_v9 = vcombine.low %v5890_v46, %v5894_v51 }
 0x38e   :  { %v1571_v58 = vrot.slane %v1563_v53, %v5737_v49  ;;  %v1631_v61 = vcombine.low %v1607_v28, %v1623_v54  ;;  %v1647_v62 = vcombine.low %v5897_v52, %v5901_v55  ;;  %v1648_v63 = vcombine.high %v5897_v52, %v5901_v55 }
 0x38f   :  { %v1632_v5 = vcombine.high %v1607_v28, %v1623_v54  ;;  %v1578_v6 = vrot.slane %v1564_v3, %v5737_v49  ;;  %v5920_v11 = vrot.slane %v1579_v9, %v5737_v49 }
 0x390   :  { %1667 = vxpose.xlu0.c.b16.start.end [1/1] (short) (narrow) %v1571_v58, 16  ;;  %v1595_v0 = vcombine.high %v1571_v58, %v5581_v1  ;;  %v1639_v2 = vrot.slane %v1631_v61, %v5737_v49 }
 0x391   :  { %v1646_v7 = vrot.slane %v1632_v5, %v5737_v49  ;;  %v1596_v8 = vcombine.high %v1578_v6, %v5581_v1 }
 0x392   :  { %1683 = vxpose.xlu1.c.b16.start.end [1/1] (short) (narrow) %v1639_v2, 16  ;;  %v1663_v4 = vcombine.high %v1639_v2, %v5581_v1 }
 0x393   :  { %v1664_v10 = vcombine.high %v1646_v7, %v5581_v1 }
 0x394   :  { %1699 = vxpose.xlu0.c.b16.start.end [1/1] (short) (narrow) %v1595_v0, 16 }
 0x396   :  { %1715 = vxpose.xlu1.c.b16.start.end [1/1] (short) (narrow) %v1663_v4, 16 }
 0x398   :  { %1731 = vxpose.xlu0.c.b16.start.end [1/1] (short) (narrow) %v1578_v6, 16 }
 0x39a   :  { %1747 = vxpose.xlu1.c.b16.start.end [1/1] (short) (narrow) %v1646_v7, 16 }
 0x39c   :  { %1763 = vxpose.xlu0.c.b16.start.end [1/1] (short) (narrow) %v1596_v8, 16 }
 0x39e   :  { %1779 = vxpose.xlu1.c.b16.start.end [1/1] (short) (narrow) %v1664_v10, 16 }
 0x3a0   :  { %1795 = vxpose.xlu0.c.b16.start.end [1/1] (short) (narrow) %v5920_v11, 16 }
 0x3c0   :  { %v1175_v12 = vpop.f32.mrb[0].mxu1 }
 0x3c1   :  { %v5923_v13 = vmul.f32 0.25, %v1175_v12  ;;  %v5348_v14 = vpop.f32.mrb[1].mxu1 }
 0x3c2   :  { %v1178_v15 = vpop.f32.mrb[2].mxu1  ;;  %v1304_v17 = vpop.f32.mrb[4].mxu0 }
 0x3c3   :  { %v5925_v18 = vmul.f32 0.25, %v1304_v17  ;;  %v5349_v19 = vpop.f32.mrb[3].mxu1  ;;  %v5366_v25 = vpop.f32.mrb[5].mxu0  ;;  %v1315_v30 = vsel %vm1314_vm3, %v5923_v13, -inf }
 0x3c4   :  { %v1307_v21 = vpop.f32.mrb[6].mxu0  ;;  %1316 = vmax.xlane.f32.xlu0 %v1315_v30 }
 0x3c5   :  { %v5367_v22 = vpop.f32.mrb[7].mxu0  ;;  %v1324_v23 = vsel %vm1314_vm3, %v5925_v18, -inf }
 0x3c8   :  { %v1218_v31 = vpop.f32.mrb[4].mxu1  ;;  %1325 = vmax.xlane.f32.xlu0 %v1324_v23 }
 0x3c9   :  { %v5931_v32 = vmul.f32 0.25, %v1218_v31  ;;  %v5354_v33 = vpop.f32.mrb[5].mxu1 }
 0x3ca   :  { %v1221_v34 = vpop.f32.mrb[6].mxu1  ;;  %v1597_v33 = vcombine.high %v5920_v11, %v5581_v1 }
 0x3cb   :  { %v5355_v35 = vpop.f32.mrb[7].mxu1  ;;  %v1318_v36 = vsel %vm1314_vm3, %v5931_v32, -inf }
 0x3cc   :  { %1319 = vmax.xlane.f32.xlu1 %v1318_v36  ;;  %v1594_v36 = vrot.slane %v1580_v57, %v5737_v49 }
 0x3ce   :  { %v1598_v11 = vcombine.high %v1594_v36, %v5581_v1 }
 0x3d0   :  { %v5935_v38 = vpop.f32.mrb[8].mxu1 }
 0x3d1   :  { %v5360_v39 = vpop.f32.mrb[9].mxu1 }
 0x3d2   :  { %v1264_v40 = vpop.f32.mrb[10].mxu1 }
 0x3d3   :  { %v5361_v41 = vpop.f32.mrb[11].mxu1  ;;  %v1655_v40 = vrot.slane %v1647_v62, %v5737_v49  ;;  %v1662_v62 = vrot.slane %v1648_v63, %v5737_v49 }
 0x3d5   :  { %v1665_v46 = vcombine.high %v1655_v40, %v5581_v1 }
 0x3d8   :  { %v2826_v20 = vpop.trf.xlu0 }
 0x3d9   :  { %v2950_v44 = vshrl.u32 %v2826_v20, 16 }
 0x3da   :  { %v2842_v29 = vpop.trf.xlu1 }
 0x3db   :  { %v2951_v43 = vshrl.u32 %v2842_v29, 16  ;;  %v2948_v28 = vpack.i.b16 %v2842_v29, %v2826_v20 }
 0x3dc   :  { %v2858_v42 = vpop.trf.xlu0 }
 0x3dd   :  { %v2952_v48 = vpack.i.b16 %v2951_v43, %v2950_v44  ;;  %v2958_v54 = vshrl.u32 %v2858_v42, 16 }
 0x3de   :  { %v2874_v45 = vpop.trf.xlu1 }
 0x3df   :  { %v2959_v53 = vshrl.u32 %v2874_v45, 16  ;;  %v2956_v2 = vpack.i.b16 %v2874_v45, %v2858_v42 }
 0x3e0   :  { %v2890_v27 = vpop.trf.xlu0 }
 0x3e1   :  { %v2966_v47 = vshrl.u32 %v2890_v27, 16  ;;  %v2960_v7 = vpack.i.b16 %v2959_v53, %v2958_v54  ;;  %v1666_v54 = vcombine.high %v1662_v62, %v5581_v1 }
 0x3e2   :  { %v2906_v50 = vpop.trf.xlu1 }
 0x3e3   :  { %v2967_v58 = vshrl.u32 %v2906_v50, 16  ;;  %v2964_v61 = vpack.i.b16 %v2906_v50, %v2890_v27 }
 0x3e4   :  { %v2922_v0 = vpop.trf.xlu0 }
 0x3e5   :  { %v2968_v3 = vpack.i.b16 %v2967_v58, %v2966_v47  ;;  %v2979_v4 = vcombine.high %v2948_v28, %v2964_v61  ;;  %v2974_v5 = vshrl.u32 %v2922_v0, 16  ;;  %v2978_v34 = vcombine.low %v2948_v28, %v2964_v61 }
 0x3e6   :  { %v2938_v6 = vpop.trf.xlu1 }
 0x3e7   :  { %v3047_v8 = vcombine.high %v2952_v48, %v2968_v3  ;;  %v2975_v9 = vshrl.u32 %v2938_v6, 16  ;;  %v2972_v10 = vpack.i.b16 %v2938_v6, %v2922_v0  ;;  %v5938_v15 = vrot.slane %v2979_v4, %v5731_v37 }
 0x3e8   :  { %v2986_v41 = vrot.slane %v2978_v34, %v5731_v37  ;;  %v3046_v57 = vcombine.low %v2952_v48, %v2968_v3 }
 0x3e9   :  { %v2976_v12 = vpack.i.b16 %v2975_v9, %v2974_v5  ;;  %v2995_v14 = vcombine.high %v2956_v2, %v2972_v10  ;;  %v5944_v25 = vrot.slane %v3047_v8, %v5731_v37  ;;  %v2994_v35 = vcombine.low %v2956_v2, %v2972_v10 }
 0x3ea   :  { %v3054_v28 = vrot.slane %v3046_v57, %v5731_v37 }
 0x3eb   :  { %v5941_v17 = vrot.slane %v2995_v14, %v5731_v37  ;;  %v3063_v19 = vcombine.high %v2960_v7, %v2976_v12  ;;  %v3002_v20 = vrot.slane %v2994_v35, %v5731_v37  ;;  %v3062_v43 = vcombine.low %v2960_v7, %v2976_v12 }
 0x3ec   :  { %v6000_v35 = vmul.f32 0.25, %v5935_v38 }
 0x3ed   :  { %v5947_v30 = vrot.slane %v3063_v19, %v5731_v37  ;;  %v3026_v21 = vcombine.low %v5938_v15, %v5941_v17  ;;  %v3027_v22 = vcombine.high %v5938_v15, %v5941_v17  ;;  %v3010_v51 = vcombine.low %v2986_v41, %v3002_v20 }
 0x3ee   :  { %v3070_v47 = vrot.slane %v3062_v43, %v5731_v37  ;;  %v3011_v58 = vcombine.high %v2986_v41, %v3002_v20 }
 0x3ef   :  { %v3094_v23 = vcombine.low %v5944_v25, %v5947_v30  ;;  %v3095_v31 = vcombine.high %v5944_v25, %v5947_v30  ;;  %v3018_v27 = vrot.slane %v3010_v51, %v5737_v49  ;;  %v3041_v30 = vrot.slane %v3027_v22, %v5737_v49 }
 0x3f0   :  { %v3078_v52 = vcombine.low %v3054_v28, %v3070_v47  ;;  %v3025_v7 = vrot.slane %v3011_v58, %v5737_v49  ;;  %v3079_v19 = vcombine.high %v3054_v28, %v3070_v47 }
 0x3f1   :  { %v3042_v0 = vcombine.high %v3018_v27, %v5581_v1 }
 0x3f2   :  { %v3086_v6 = vrot.slane %v3078_v52, %v5737_v49  ;;  %v3043_v14 = vcombine.high %v3025_v7, %v5581_v1 }
 0x3f4   :  { %v3110_v12 = vcombine.high %v3086_v6, %v5581_v1 }
 0x3f5   :  { %1827 = vxpose.xlu0.c.b16.start.end [1/1] (short) (narrow) %v1597_v33, 16  ;;  %v3093_v33 = vrot.slane %v3079_v19, %v5737_v49 }
 0x3f6   :  { %v1675_v39 = vpop.trf.xlu0 }
 0x3f7   :  { %v3111_v34 = vcombine.high %v3093_v33, %v5581_v1 }
 0x3f8   :  { %v1691_v29 = vpop.trf.xlu1 }
 0x3f9   :  { %1811 = vxpose.xlu1.c.b16.start.end [1/1] (short) (narrow) %v1655_v40, 16  ;;  %1859 = vxpose.xlu0.c.b16.start.end [1/1] (short) (narrow) %v1594_v36, 16  ;;  %v1321_v36 = vsel %vm1314_vm3, %v6000_v35, -inf }
 0x3fa   :  { %v1707_v42 = vpop.trf.xlu0 }
 0x3fc   :  { %v1723_v44 = vpop.trf.xlu1 }
 0x3fd   :  { %1843 = vxpose.xlu1.c.b16.start.end [1/1] (short) (narrow) %v1665_v46, 16  ;;  %1891 = vxpose.xlu0.c.b16.start.end [1/1] (short) (narrow) %v1598_v11, 16 }
 0x3fe   :  { %v1739_v45 = vpop.trf.xlu0 }
 0x3ff   :  { %v1923_v50 = vcombine.low %v1675_v39, %v1739_v45  ;;  %v6008_v39 = vrot.slane %v3026_v21, %v5737_v49 }
 0x400   :  { %v1755_v53 = vpop.trf.xlu1 }
 0x401   :  { %1875 = vxpose.xlu1.c.b16.start.end [1/1] (short) (narrow) %v1662_v62, 16  ;;  %3114 = vxpose.xlu0.c.b16.start.end [1/1] (short) (narrow) %v3018_v27, 16  ;;  %v1973_v48 = vcombine.low %v1691_v29, %v1755_v53  ;;  %v5981_v55 = vrot.slane %v1923_v50, %v5731_v37 }
 0x402   :  { %v1771_v61 = vpop.trf.xlu0 }
 0x403   :  { %v1931_v63 = vcombine.low %v1707_v42, %v1771_v61  ;;  %v5985_v4 = vrot.slane %v1973_v48, %v5731_v37 }
 0x404   :  { %v1787_v2 = vpop.trf.xlu1 }
 0x405   :  { %1907 = vxpose.xlu1.c.b16.start.end [1/1] (short) (narrow) %v1666_v54, 16  ;;  %3146 = vxpose.xlu0.c.b16.start.end [1/1] (short) (narrow) %v3042_v0, 16  ;;  %v1938_v3 = vrot.slane %v1931_v63, %v5731_v37  ;;  %v1981_v5 = vcombine.low %v1723_v44, %v1787_v2 }
 0x406   :  { %v1803_v40 = vpop.trf.xlu0 }
 0x407   :  { %v1955_v8 = vcombine.low %v5981_v55, %v1938_v3  ;;  %v5991_v9 = vrot.slane %v1981_v5, %v5731_v37 }
 0x409   :  { %3130 = vxpose.xlu1.c.b16.start.end [1/1] (short) (narrow) %v3086_v6, 16  ;;  %3178 = vxpose.xlu0.c.b16.start.end [1/1] (short) (narrow) %v3025_v7, 16  ;;  %v2005_v10 = vcombine.low %v5985_v4, %v5991_v9  ;;  %v1962_v55 = vrot.slane %v1955_v8, %v5737_v49 }
 0x40b   :  { %v2012_v19 = vrot.slane %v2005_v10, %v5737_v49 }
 0x40d   :  { %3162 = vxpose.xlu1.c.b16.start.end [1/1] (short) (narrow) %v3110_v12, 16  ;;  %3210 = vxpose.xlu0.c.b16.start.end [1/1] (short) (narrow) %v3043_v14, 16 }
 0x411   :  { %3194 = vxpose.xlu1.c.b16.start.end [1/1] (short) (narrow) %v3093_v33, 16 }
 0x415   :  { %3226 = vxpose.xlu1.c.b16.start.end [1/1] (short) (narrow) %v3111_v34, 16 }
 0x41a   :  { %1322 = vmax.xlane.f32.xlu0 %v1321_v36 }
 0x447   :  { %3242 = vxpose.xlu0.c.b16.start.end [1/1] (short) (narrow) %v6008_v39, 16 }
 0x451   :  { %v1317_v41 = vpop.xlane.xlu0 %1316 }
 0x452   :  { %v1327_v20 = vsub.f32 %v5923_v13, %v1317_v41 }
 0x454   :  { %v1331_v29 = vmul.f32 1.442695, %v1327_v20 }
 0x455   :  { %v1326_v38 = vpop.xlane.xlu0 %1325 }
 0x456   :  { %5539 = vpow2.f32 %v1331_v29  ;;  %v1330_v11 = vsub.f32 %v5925_v18, %v1326_v38 }
 0x458   :  { %v1337_v42 = vmul.f32 1.442695, %v1330_v11 }
 0x459   :  { %v1320_v43 = vpop.xlane.xlu1 %1319 }
 0x45a   :  { %5541 = vpow2.f32 %v1337_v42  ;;  %v1328_v46 = vsub.f32 %v5931_v32, %v1320_v43 }
 0x45b   :  { %v1835_v51 = vpop.trf.xlu0 }
 0x45c   :  { %v1333_v57 = vmul.f32 1.442695, %v1328_v46 }
 0x45e   :  { %5543 = vpow2.f32 %v1333_v57 }
 0x45f   :  { %v1819_v21 = vpop.trf.xlu1  ;;  %v1867_v44 = vpop.trf.xlu0 }
 0x460   :  { %v6014_v62 = vpop.eup %5539  ;;  %v1939_v45 = vcombine.low %v1803_v40, %v1867_v44 }
 0x461   :  { %v1339_v13 = vsel %vm1314_vm3, %v6014_v62, 0.0 }
 0x462   :  { %1340 = vadd.xlane.f32.xlu0 %v1339_v13  ;;  %v1946_v47 = vrot.slane %v1939_v45, %v5731_v37 }
 0x463   :  { %v1851_v27 = vpop.trf.xlu1  ;;  %v1899_v28 = vpop.trf.xlu0 }
 0x464   :  { %v6018_v18 = vpop.eup %5541  ;;  %v1947_v50 = vcombine.low %v1835_v51, %v1899_v28 }
 0x465   :  { %v1348_v32 = vsel %vm1314_vm3, %v6018_v18, 0.0 }
 0x466   :  { %v1954_v53 = vrot.slane %v1947_v50, %v5731_v37  ;;  %1349 = vadd.xlane.f32.xlu1 %v1348_v32 }
 0x467   :  { %v1883_v48 = vpop.trf.xlu1  ;;  %v3122_v54 = vpop.trf.xlu0 }
 0x468   :  { %v6024_v58 = vpop.eup %5543  ;;  %v1963_v61 = vcombine.low %v1946_v47, %v1954_v53  ;;  %v1989_v0 = vcombine.low %v1819_v21, %v1883_v48  ;;  %v3044_v48 = vcombine.high %v6008_v39, %v5581_v1 }
 0x469   :  { %v1342_v52 = vsel %vm1314_vm3, %v6024_v58, 0.0 }
 0x46a   :  { %v1970_v63 = vrot.slane %v1963_v61, %v5737_v49  ;;  %1343 = vadd.xlane.f32.xlu1 %v1342_v52  ;;  %v1996_v6 = vrot.slane %v1989_v0, %v5731_v37  ;;  %v3109_v0 = vrot.slane %v3095_v31, %v5737_v49  ;;  %v3045_v31 = vcombine.high %v3041_v30, %v5581_v1 }
 0x46b   :  { %v1915_v2 = vpop.trf.xlu1  ;;  %v3154_v3 = vpop.trf.xlu0 }
 0x46c   :  { %v6030_v4 = vcombine.low %v1962_v55, %v1970_v63  ;;  %v6032_v5 = vcombine.high %v1962_v55, %v1970_v63  ;;  %v1997_v7 = vcombine.low %v1851_v27, %v1915_v2  ;;  %v3113_v52 = vcombine.high %v3109_v0, %v5581_v1 }
 0x46e   :  { %v2004_v9 = vrot.slane %v1997_v7, %v5731_v37  ;;  %v2026_v38 = vshrl.u32 %v6030_v4, 16  ;;  %v2032_v11 = vshrl.u32 %v6032_v5, 16 }
 0x46f   :  { %v3186_v12 = vpop.trf.xlu0  ;;  %v3138_v14 = vpop.trf.xlu1 }
 0x470   :  { %v2013_v33 = vcombine.low %v1996_v6, %v2004_v9  ;;  %v3370_v8 = vcombine.low %v3122_v54, %v3186_v12  ;;  %v3102_v54 = vrot.slane %v3094_v23, %v5737_v49 }
 0x472   :  { %v2020_v34 = vrot.slane %v2013_v33, %v5737_v49  ;;  %v6045_v42 = vrot.slane %v3370_v8, %v5731_v37  ;;  %v3112_v61 = vcombine.high %v3102_v54, %v5581_v1 }
 0x473   :  { %v3218_v36 = vpop.trf.xlu0  ;;  %v3170_v40 = vpop.trf.xlu1 }
 0x474   :  { %v6038_v41 = vcombine.low %v2012_v19, %v2020_v34  ;;  %v6040_v20 = vcombine.high %v2012_v19, %v2020_v34  ;;  %v3378_v29 = vcombine.low %v3154_v3, %v3218_v36  ;;  %v2531_v34 = vcombine.high %v5843_v59, %v5848_v60 }
 0x476   :  { %v2025_v10 = vpack.i.b16 %v6038_v41, %v6030_v4  ;;  %v2027_v43 = vshrl.u32 %v6038_v41, 16  ;;  %v2031_v46 = vpack.i.b16 %v6040_v20, %v6032_v5  ;;  %v2033_v51 = vshrl.u32 %v6040_v20, 16 }
 0x477   :  { %v6054_v57 = vrot.slane %v3378_v29, %v5731_v37  ;;  %v3202_v21 = vpop.trf.xlu1  ;;  %v2515_v41 = vcombine.high %v5706_v24, %v5834_v56 }
 0x478   :  { %v3420_v44 = vcombine.low %v3138_v14, %v3202_v21  ;;  %v2028_v45 = vpack.i.b16 %v2027_v43, %v2026_v38  ;;  %v2034_v13 = vpack.i.b16 %v2033_v51, %v2032_v11  ;;  %v2545_v38 = vrot.slane %v2531_v34, %v5731_v37 }
 0x479   :  { %v3402_v27 = vcombine.low %v6045_v42, %v6054_v57 }
 0x47a   :  { %v6059_v47 = vrot.slane %v3420_v44, %v5731_v37 }
 0x47b   :  { %v3234_v28 = vpop.trf.xlu1 }
 0x47c   :  { %v3428_v50 = vcombine.low %v3170_v40, %v3234_v28  ;;  %v2514_v40 = vcombine.low %v5706_v24, %v5834_v56 }
 0x47e   :  { %v6062_v32 = vrot.slane %v3428_v50, %v5731_v37  ;;  %v2522_v11 = vrot.slane %v2514_v40, %v5731_v37 }
 0x480   :  { %v3452_v53 = vcombine.low %v6059_v47, %v6062_v32  ;;  %v3409_v47 = vrot.slane %v3402_v27, %v5737_v49 }
 0x48f   :  { %3274 = vxpose.xlu0.c.b16.start.end [1/1] (short) (narrow) %v3044_v48, 16 }
 0x497   :  { %3258 = vxpose.xlu1.c.b16.start.end [1/1] (short) (narrow) %v3102_v54, 16 }
 0x49b   :  { %3290 = vxpose.xlu1.c.b16.start.end [1/1] (short) (narrow) %v3112_v61, 16 }
 0x49f   :  { %3322 = vxpose.xlu1.c.b16.start.end [1/1] (short) (narrow) %v3109_v0, 16 }
 0x4a3   :  { %3354 = vxpose.xlu1.c.b16.start.end [1/1] (short) (narrow) %v3113_v52, 16 }
 0x4a7   :  { %2666 = vrot.lane.b32.xlu1 %v5713_v26, %s5586_s14  ;;  %v1323_v39 = vpop.xlane.xlu0 %1322 }
 0x4a8   :  { %v1329_v55 = vsub.f32 %v6000_v35, %v1323_v39 }
 0x4aa   :  { %v1335_v23 = vmul.f32 1.442695, %v1329_v55 }
 0x4ab   :  { %2669 = vrot.lane.b32.xlu1 %v5713_v26, %s5583_s1 }
 0x4ac   :  { %5545 = vpow2.f32 %v1335_v23 }
 0x4ad   :  { %v6092_v35 = vpop.trf.xlu0 }
 0x4b6   :  { %v6083_v63 = vpop.eup %5545 }
 0x4b7   :  { %v1345_v25 = vsel %vm1314_vm3, %v6083_v63, 0.0 }
 0x4b8   :  { %1346 = vadd.xlane.f32.xlu0 %v1345_v25 }
 0x4e5   :  { %3306 = vxpose.xlu0.c.b16.start.end [1/1] (short) (narrow) %v3041_v30, 16 }
 0x4e9   :  { %3338 = vxpose.xlu0.c.b16.start.end [1/1] (short) (narrow) %v3045_v31, 16 }
 0x4ef   :  { %v1341_v2 = vpop.xlane.xlu0 %1340 }
 0x4f0   :  { %5547 = vrcp.f32 %v1341_v2 }
 0x4f2   :  { %2663 = vrot.lane.b32.xlu0 %v5713_v26, %s5584_s2 }
 0x4f3   :  { %v1350_v3 = vpop.xlane.xlu1 %1349 }
 0x4f7   :  { %v1344_v4 = vpop.xlane.xlu1 %1343 }
 0x4f8   :  { %5549 = vrcp.f32 %v1344_v4 }
 0x4f9   :  { %5551 = vrcp.f32 %v1350_v3 }
 0x4fa   :  { %v5548_v6 = vpop.eup %5547 }
 0x4fb   :  { %v1355_v7 = vmul.f32 %v5548_v6, %v6014_v62 }
 0x4fd   :  { %v1359_v15 = vpack.c.bf16 %v1355_v7, %v1355_v7 }
 0x4ff   :  { %v2039_v17 = vsel %vm1314_vm3, %v1359_v15, 0 }
 0x500   :  { %5369 = vmatpush3.bf16.xpose.msra.mxu1 %v2039_v17 }
 0x501   :  { %5380 = vmatprep.subr.bf16.mxu1 %v5582_v16 }
 0x502   :  { %v5550_v22 = vpop.eup %5549 }
 0x503   :  { %v1356_v9 = vmul.f32 %v5550_v22, %v6024_v58  ;;  %v5552_v12 = vpop.eup %5551  ;;  %v2530_v58 = vcombine.low %v5843_v59, %v5848_v60  ;;  %v3282_v60 = vpop.trf.xlu0 }
 0x504   :  { %v1358_v33 = vmul.f32 %v5552_v12, %v6018_v18  ;;  %v3266_v18 = vpop.trf.xlu1 }
 0x505   :  { %v1360_v14 = vpack.c.bf16 %v1356_v9, %v1356_v9  ;;  %v2538_v29 = vrot.slane %v2530_v58, %v5731_v37 }
 0x506   :  { %v1362_v62 = vpack.c.bf16 %v1358_v33, %v1358_v33 }
 0x507   :  { %5371 = vmatmul.mubr.msk.bf16.vlgmr.msra.gmra.mrb[12].mxu1 %vm1314_vm3, %v2025_v10  ;;  %v2086_v19 = vsel %vm1314_vm3, %v1360_v14, 0  ;;  %v2529_v10 = vrot.slane %v2515_v41, %v5731_v37  ;;  %v2546_v51 = vcombine.low %v2522_v11, %v2538_v29  ;;  %v2547_v21 = vcombine.high %v2522_v11, %v2538_v29 }
 0x508   :  { %5375 = vmatpush3.bf16.xpose.msra.mxu0 %v2086_v19  ;;  %5382 = vmatprep.mubr.msk.bf16.mxu1 %vm5589_vm1, %v5582_v16  ;;  %v2180_v8 = vsel %vm1314_vm3, %v1362_v62, 0  ;;  %v3298_v36 = vpop.trf.xlu1  ;;  %v3459_v19 = vrot.slane %v3452_v53, %v5737_v49 }
 0x509   :  { %5386 = vmatprep.subr.bf16.mxu0 %v5582_v16  ;;  %v2562_v44 = vcombine.low %v2529_v10, %v2545_v38  ;;  %v2563_v59 = vcombine.high %v2529_v10, %v2545_v38 }
 0x50b   :  { %v2570_v24 = vrot.slane %v2562_v44, %v5737_v49  ;;  %v2577_v56 = vrot.slane %v2563_v59, %v5737_v49 }
 0x50c   :  { %v3330_v43 = vpop.trf.xlu1 }
 0x50d   :  { %v3436_v50 = vcombine.low %v3266_v18, %v3330_v43  ;;  %v2580_v52 = vcombine.high %v2570_v24, %v5582_v16  ;;  %v2581_v39 = vcombine.high %v2577_v56, %v5582_v16 }
 0x50f   :  { %5377 = vmatmul.mubr.msk.bf16.vlgmr.msra.gmra.mrb[8].mxu0 %vm1314_vm3, %v2028_v45  ;;  %v2554_v45 = vrot.slane %v2546_v51, %v5737_v49  ;;  %v3443_v55 = vrot.slane %v3436_v50, %v5731_v37 }
 0x510   :  { %5387 = vmatpush3.bf16.xpose.msra.mxu0 %v2180_v8  ;;  %5388 = vmatprep.mubr.msk.bf16.mxu0 %vm5589_vm1, %v5582_v16  ;;  %v3362_v28 = vpop.trf.xlu1 }
 0x511   :  { %5398 = vmatprep.subr.bf16.mxu0 %v5582_v16  ;;  %v3444_v48 = vcombine.low %v3298_v36, %v3362_v28  ;;  %v2578_v61 = vcombine.high %v2554_v45, %v5582_v16  ;;  %v5254_v2 = vpack.c.bf16 %v2570_v24, %v2554_v45 }
 0x513   :  { %v3451_v23 = vrot.slane %v3444_v48, %v5731_v37  ;;  %v5256_v25 = vpack.c.bf16 %v2580_v52, %v2578_v61  ;;  %v2763_v9 = vrot.slane %v5254_v2, %v5731_v37 }
 0x515   :  { %v3460_v4 = vcombine.low %v3443_v55, %v3451_v23  ;;  %v2788_v7 = vrot.slane %v5256_v25, %v5731_v37 }
 0x517   :  { %5389 = vmatmul.mubr.msk.bf16.vlgmr.msra.gmra.mrb[12].mxu0 %vm1314_vm3, %v2034_v13  ;;  %v2561_v13 = vrot.slane %v2547_v21, %v5737_v49  ;;  %v3467_v33 = vrot.slane %v3460_v4, %v5737_v49 }
 0x518   :  { %5400 = vmatprep.mubr.msk.bf16.mxu0 %vm5589_vm1, %v5582_v16 }
 0x519   :  { %v2579_v0 = vcombine.high %v2561_v13, %v5582_v16  ;;  %v5255_v3 = vpack.c.bf16 %v2577_v56, %v2561_v13  ;;  %v3468_v40 = vcombine.low %v3459_v19, %v3467_v33  ;;  %v3469_v41 = vcombine.high %v3459_v19, %v3467_v33  ;;  %v2667_v45 = vpop.permute.xlu1 %2666 }
 0x51a   :  { %v2672_v20 = vcombine.low %v5713_v26, %v2667_v45  ;;  %v2673_v48 = vcombine.high %v5713_v26, %v2667_v45 }
 0x51b   :  { %v5257_v30 = vpack.c.bf16 %v2581_v39, %v2579_v0  ;;  %v2771_v14 = vrot.slane %v5255_v3, %v5731_v37  ;;  %v3475_v11 = vshrl.u32 %v3468_v40, 16  ;;  %v3483_v43 = vshrl.u32 %v3469_v41, 16 }
 0x51c   :  { %v2680_v52 = vrot.slane %v2672_v20, %v5731_v37  ;;  %v2687_v26 = vrot.slane %v2673_v48, %v5731_v37 }
 0x51d   :  { %v2796_v15 = vrot.slane %v5257_v30, %v5731_v37  ;;  %v2772_v36 = vcombine.low %v2763_v9, %v2771_v14  ;;  %v2670_v28 = vpop.permute.xlu1 %2669 }
 0x51f   :  { %v2797_v18 = vcombine.low %v2788_v7, %v2796_v15  ;;  %v2779_v10 = vrot.slane %v2772_v36, %v5737_v49 }
 0x521   :  { %v2804_v53 = vrot.slane %v2797_v18, %v5737_v49  ;;  %v2809_v27 = vshrl.u32 %v2779_v10, 16  ;;  %v2780_v5 = vcombine.high %v2779_v10, %v5581_v1 }
 0x523   :  { %v2805_v24 = vcombine.high %v2804_v53, %v5581_v1  ;;  %v2815_v0 = vshrl.u32 %v2780_v5, 16 }
 0x525   :  { %v2816_v56 = vshrl.u32 %v2805_v24, 16  ;;  %v2814_v3 = vpack.i.b16 %v2805_v24, %v2780_v5 }
 0x527   :  { %v2817_v23 = vpack.i.b16 %v2816_v56, %v2815_v0 }
 0x545   :  { %v1347_v54 = vpop.xlane.xlu0 %1346 }
 0x546   :  { %5553 = vrcp.f32 %v1347_v54 }
 0x54b   :  { %v3314_v31 = vpop.trf.xlu0 }
 0x54c   :  { %v3386_v6 = vcombine.low %v6092_v35, %v3314_v31 }
 0x54e   :  { %v3393_v62 = vrot.slane %v3386_v6, %v5731_v37 }
 0x54f   :  { %v3346_v17 = vpop.trf.xlu0 }
 0x550   :  { %v5554_v22 = vpop.eup %5553  ;;  %v3394_v12 = vcombine.low %v3282_v60, %v3346_v17  ;;  %v2810_v60 = vshrl.u32 %v2804_v53, 16 }
 0x551   :  { %v1357_v35 = vmul.f32 %v5554_v22, %v6083_v63 }
 0x552   :  { %v3401_v8 = vrot.slane %v3394_v12, %v5731_v37  ;;  %v2811_v13 = vpack.i.b16 %v2810_v60, %v2809_v27 }
 0x553   :  { %v1361_v58 = vpack.c.bf16 %v1357_v35, %v1357_v35 }
 0x554   :  { %v3410_v34 = vcombine.low %v3393_v62, %v3401_v8 }
 0x555   :  { %v2133_v29 = vsel %vm1314_vm3, %v1361_v58, 0 }
 0x556   :  { %v3417_v32 = vrot.slane %v3410_v34, %v5737_v49  ;;  %5381 = vmatpush3.bf16.xpose.msra.mxu1 %v2133_v29 }
 0x557   :  { %5392 = vmatprep.subr.bf16.mxu1 %v5582_v16 }
 0x558   :  { %v3418_v63 = vcombine.low %v3409_v47, %v3417_v32  ;;  %v3419_v38 = vcombine.high %v3409_v47, %v3417_v32 }
 0x55a   :  { %v3472_v51 = vpack.i.b16 %v3468_v40, %v3418_v63  ;;  %v3474_v21 = vshrl.u32 %v3418_v63, 16  ;;  %v3482_v44 = vshrl.u32 %v3419_v38, 16  ;;  %v3480_v59 = vpack.i.b16 %v3469_v41, %v3419_v38 }
 0x55c   :  { %v3476_v42 = vpack.i.b16 %v3475_v11, %v3474_v21  ;;  %v3484_v57 = vpack.i.b16 %v3483_v43, %v3482_v44 }
 0x55d   :  { %5383 = vmatmul.mubr.msk.bf16.vlgmr.msra.gmra.mrb[16].mxu1 %vm1314_vm3, %v2031_v46  ;;  %v2808_v46 = vpack.i.b16 %v2804_v53, %v2779_v10 }
 0x55e   :  { %5393 = vmatpush3.bf16.msra.mxu1 %v3472_v51  ;;  %5399 = vmatpush3.bf16.msra.mxu0 %v3476_v42 }
 0x55f   :  { %5410 = vmatprep.subr.bf16.mxu0 %v5582_v16  ;;  %5394 = vmatprep.mubr.msk.bf16.mxu1 %vm5589_vm1, %v5582_v16 }
 0x560   :  { %5404 = vmatprep.subr.bf16.mxu1 %v5582_v16 }
 0x561   :  { %5401 = vmatmul.mubr.msk.bf16.vlgmr.msra.gmra.mrb[16].mxu0 %vm1137_vm2, %v2811_v13 }
 0x562   :  { %5411 = vmatpush3.bf16.msra.mxu0 %v3484_v57  ;;  %5412 = vmatprep.mubr.msk.bf16.mxu0 %vm5589_vm1, %v5582_v16 }
 0x563   :  { %5422 = vmatprep.subr.bf16.mxu0 %v5582_v16 }
 0x564   :  { %v2664_v50 = vpop.permute.xlu0 %2663 }
 0x565   :  { %v2688_v54 = vcombine.low %v2664_v50, %v2670_v28  ;;  %v2689_v61 = vcombine.high %v2664_v50, %v2670_v28  ;;  %5395 = vmatmul.mubr.msk.bf16.vlgmr.msra.gmra.mrb[20].mxu1 %vm1137_vm2, %v2808_v46 }
 0x566   :  { %5405 = vmatpush3.bf16.msra.mxu1 %v3480_v59  ;;  %5406 = vmatprep.mubr.msk.bf16.mxu1 %vm5589_vm1, %v5582_v16 }
 0x567   :  { %v2696_v39 = vrot.slane %v2688_v54, %v5731_v37  ;;  %v2703_v55 = vrot.slane %v2689_v61, %v5731_v37  ;;  %5416 = vmatprep.subr.bf16.mxu1 %v5582_v16 }
 0x569   :  { %v2704_v25 = vcombine.low %v2680_v52, %v2696_v39  ;;  %v2705_v30 = vcombine.high %v2680_v52, %v2696_v39  ;;  %5413 = vmatmul.mubr.msk.bf16.vlgmr.msra.gmra.mrb[20].mxu0 %vm1137_vm2, %v2817_v23  ;;  %v2720_v2 = vcombine.low %v2687_v26, %v2703_v55  ;;  %v2721_v15 = vcombine.high %v2687_v26, %v2703_v55 }
 0x56a   :  { %5424 = vmatprep.mubr.msk.bf16.mxu0 %vm5589_vm1, %v5582_v16 }
 0x56b   :  { %v2712_v31 = vrot.slane %v2704_v25, %v5737_v49  ;;  %v2719_v7 = vrot.slane %v2705_v30, %v5737_v49  ;;  %v2728_v22 = vrot.slane %v2720_v2, %v5737_v49  ;;  %v2735_v19 = vrot.slane %v2721_v15, %v5737_v49 }
 0x56d   :  { %5407 = vmatmul.mubr.msk.bf16.vlgmr.msra.gmra.mrb[24].mxu1 %vm1137_vm2, %v2814_v3  ;;  %v3710_v4 = vpack.c.bf16 %v2712_v31, %v2712_v31  ;;  %v2736_v6 = vcombine.high %v2712_v31, %v5582_v16  ;;  %v3712_v9 = vpack.c.bf16 %v2719_v7, %v2719_v7  ;;  %v2737_v12 = vcombine.high %v2719_v7, %v5582_v16 }
 0x56e   :  { %5418 = vmatprep.mubr.msk.bf16.mxu1 %vm5589_vm1, %v5582_v16  ;;  %v3714_v14 = vpack.c.bf16 %v2728_v22, %v2728_v22  ;;  %v2738_v35 = vcombine.high %v2728_v22, %v5582_v16  ;;  %v3716_v62 = vpack.c.bf16 %v2735_v19, %v2735_v19  ;;  %v2739_v18 = vcombine.high %v2735_v19, %v5582_v16 }
 0x56f   :  { %3718 = vxpose.xlu0.c.b16.start.end [1/1] (short) (narrow) %v3710_v4, 16  ;;  %v3711_v17 = vpack.c.bf16 %v2736_v6, %v2736_v6  ;;  %v3713_v33 = vpack.c.bf16 %v2737_v12, %v2737_v12 }
 0x570   :  { %v3715_v8 = vpack.c.bf16 %v2738_v35, %v2738_v35  ;;  %v3717_v58 = vpack.c.bf16 %v2739_v18, %v2739_v18 }
 0x571   :  { %3734 = vxpose.xlu1.c.b16.start.end [1/1] (short) (narrow) %v3711_v17, 16 }
 0x573   :  { %3750 = vxpose.xlu0.c.b16.start.end [1/1] (short) (narrow) %v3712_v9, 16 }
 0x575   :  { %3782 = vxpose.xlu1.c.b16.start.end [1/1] (short) (narrow) %v3714_v14, 16 }
 0x577   :  { %3766 = vxpose.xlu0.c.b16.start.end [1/1] (short) (narrow) %v3713_v33, 16 }
 0x579   :  { %3814 = vxpose.xlu1.c.b16.start.end [1/1] (short) (narrow) %v3716_v62, 16 }
 0x57b   :  { %3798 = vxpose.xlu0.c.b16.start.end [1/1] (short) (narrow) %v3715_v8, 16 }
 0x57f   :  { %3830 = vxpose.xlu0.c.b16.start.end [1/1] (short) (narrow) %v3717_v58, 16 }
 0x5d5   :  { %v3726_v34 = vpop.trf.xlu0 }
 0x5d6   :  { %v3850_v38 = vshrl.u32 %v3726_v34, 16 }
 0x5d7   :  { %v3742_v36 = vpop.trf.xlu1 }
 0x5d8   :  { %v3851_v11 = vshrl.u32 %v3742_v36, 16  ;;  %v3848_v10 = vpack.i.b16 %v3742_v36, %v3726_v34 }
 0x5d9   :  { %v3758_v40 = vpop.trf.xlu0 }
 0x5da   :  { %v6196_v41 = vpop.f32.mrb[12].mxu1  ;;  %v3852_v44 = vpack.i.b16 %v3851_v11, %v3850_v38  ;;  %v3858_v27 = vshrl.u32 %v3758_v40, 16 }
 0x5db   :  { %v5372_v29 = vpop.f32.mrb[13].mxu1  ;;  %v3790_v32 = vpop.trf.xlu1 }
 0x5dc   :  { %v6198_v47 = vpop.f32.mrb[14].mxu1  ;;  %v3866_v43 = vshrl.u32 %v3790_v32, 16 }
 0x5dd   :  { %v5373_v53 = vpop.f32.mrb[15].mxu1  ;;  %v3774_v63 = vpop.trf.xlu0 }
 0x5de   :  { %v3859_v45 = vshrl.u32 %v3774_v63, 16  ;;  %v3856_v46 = vpack.i.b16 %v3774_v63, %v3758_v40 }
 0x5df   :  { %v3822_v42 = vpop.trf.xlu1 }
 0x5e0   :  { %v3874_v50 = vshrl.u32 %v3822_v42, 16  ;;  %v3860_v61 = vpack.i.b16 %v3859_v45, %v3858_v27 }
 0x5e1   :  { %v3806_v51 = vpop.trf.xlu0 }
 0x5e2   :  { %v6200_v21 = vpop.f32.mrb[8].mxu0  ;;  %v3867_v59 = vshrl.u32 %v3806_v51, 16  ;;  %v3864_v60 = vpack.i.b16 %v3806_v51, %v3790_v32 }
 0x5e3   :  { %v5378_v57 = vpop.f32.mrb[9].mxu0 }
 0x5e4   :  { %v6202_v13 = vpop.f32.mrb[10].mxu0  ;;  %v3868_v24 = vpack.i.b16 %v3867_v59, %v3866_v43  ;;  %v3879_v5 = vcombine.high %v3848_v10, %v3864_v60  ;;  %v3878_v56 = vcombine.low %v3848_v10, %v3864_v60 }
 0x5e5   :  { %v5379_v20 = vpop.f32.mrb[11].mxu0  ;;  %v3838_v28 = vpop.trf.xlu0 }
 0x5e6   :  { %v3946_v48 = vcombine.low %v3852_v44, %v3868_v24  ;;  %v3947_v54 = vcombine.high %v3852_v44, %v3868_v24  ;;  %v3875_v0 = vshrl.u32 %v3838_v28, 16  ;;  %v3872_v52 = vpack.i.b16 %v3838_v28, %v3822_v42 }
 0x5e7   :  { %v6205_v39 = vrot.slane %v3878_v56, %v5731_v37  ;;  %v6210_v30 = vrot.slane %v3879_v5, %v5731_v37 }
 0x5e8   :  { %v3876_v55 = vpack.i.b16 %v3875_v0, %v3874_v50  ;;  %v3894_v23 = vcombine.low %v3856_v46, %v3872_v52  ;;  %v3895_v26 = vcombine.high %v3856_v46, %v3872_v52  ;;  %v3954_v31 = vrot.slane %v3946_v48, %v5731_v37 }
 0x5e9   :  { %v6220_v17 = vrot.slane %v3947_v54, %v5731_v37 }
 0x5ea   :  { %v6207_v25 = vpop.f32.mrb[12].mxu0  ;;  %v3902_v3 = vrot.slane %v3894_v23, %v5731_v37  ;;  %v6215_v4 = vrot.slane %v3895_v26, %v5731_v37  ;;  %v3962_v6 = vcombine.low %v3860_v61, %v3876_v55  ;;  %v3963_v7 = vcombine.high %v3860_v61, %v3876_v55 }
 0x5eb   :  { %v5390_v2 = vpop.f32.mrb[13].mxu0 }
 0x5ec   :  { %v6217_v15 = vpop.f32.mrb[14].mxu0  ;;  %v3911_v9 = vcombine.high %v6205_v39, %v3902_v3  ;;  %v3970_v12 = vrot.slane %v3962_v6, %v5731_v37  ;;  %v6225_v14 = vrot.slane %v3963_v7, %v5731_v37  ;;  %v3910_v19 = vcombine.low %v6205_v39, %v3902_v3 }
 0x5ed   :  { %v5391_v22 = vpop.f32.mrb[15].mxu0  ;;  %v3926_v33 = vcombine.low %v6210_v30, %v6215_v4  ;;  %v3927_v35 = vcombine.high %v6210_v30, %v6215_v4 }
 0x5ee   :  { %v3918_v62 = vrot.slane %v3910_v19, %v5737_v49  ;;  %v3978_v8 = vcombine.low %v3954_v31, %v3970_v12  ;;  %v3979_v18 = vcombine.high %v3954_v31, %v3970_v12  ;;  %v3994_v58 = vcombine.low %v6220_v17, %v6225_v14 }
 0x5ef   :  { %v3995_v34 = vcombine.high %v6220_v17, %v6225_v14  ;;  %v3925_v55 = vrot.slane %v3911_v9, %v5737_v49  ;;  %v3934_v31 = vrot.slane %v3926_v33, %v5737_v49  ;;  %v3941_v6 = vrot.slane %v3927_v35, %v5737_v49 }
 0x5f0   :  { %4014 = vxpose.xlu1.c.b16.start.end [1/1] (short) (narrow) %v3918_v62, 16  ;;  %v3986_v36 = vrot.slane %v3978_v8, %v5737_v49  ;;  %v3942_v48 = vcombine.high %v3918_v62, %v5581_v1  ;;  %v3993_v23 = vrot.slane %v3979_v18, %v5737_v49  ;;  %v4002_v2 = vrot.slane %v3994_v58, %v5737_v49 }
 0x5f1   :  { %v3943_v26 = vcombine.high %v3925_v55, %v5581_v1  ;;  %v3944_v3 = vcombine.high %v3934_v31, %v5581_v1  ;;  %v4009_v7 = vrot.slane %v3995_v34, %v5737_v49 }
 0x5f2   :  { %4030 = vxpose.xlu0.c.b16.start.end [1/1] (short) (narrow) %v3986_v36, 16  ;;  %v4010_v54 = vcombine.high %v3986_v36, %v5581_v1  ;;  %v4011_v30 = vcombine.high %v3993_v23, %v5581_v1  ;;  %v4012_v4 = vcombine.high %v4002_v2, %v5581_v1 }
 0x630   :  { %v6238_v40 = vpop.f32.mrb[16].mxu1 }
 0x631   :  { %v5384_v29 = vpop.f32.mrb[17].mxu1 }
 0x632   :  { %v6240_v32 = vpop.f32.mrb[18].mxu1 }
 0x633   :  { %v5385_v53 = vpop.f32.mrb[19].mxu1 }
 0x634   :  { %v3566_v63 = vpop.f32.mrb[16].mxu0 }
 0x635   :  { %v3659_v38 = vmul.f32 0.25, %v3566_v63  ;;  %v5402_v11 = vpop.f32.mrb[17].mxu0 }
 0x636   :  { %v3569_v10 = vpop.f32.mrb[18].mxu0 }
 0x637   :  { %v5403_v43 = vpop.f32.mrb[19].mxu0  ;;  %v3665_v51 = vsel %vm1314_vm3, %v3659_v38, -inf }
 0x638   :  { %v3523_v44 = vpop.f32.mrb[20].mxu1  ;;  %3666 = vmax.xlane.f32.xlu1 %v3665_v51 }
 0x639   :  { %v3658_v59 = vmul.f32 0.25, %v3523_v44  ;;  %v5396_v60 = vpop.f32.mrb[21].mxu1 }
 0x63a   :  { %v3526_v42 = vpop.f32.mrb[22].mxu1 }
 0x63b   :  { %v5397_v57 = vpop.f32.mrb[23].mxu1  ;;  %v3662_v27 = vsel %vm1314_vm3, %v3658_v59, -inf }
 0x63c   :  { %v3652_v45 = vpop.f32.mrb[20].mxu0  ;;  %3663 = vmax.xlane.f32.xlu0 %v3662_v27 }
 0x63d   :  { %v5414_v24 = vpop.f32.mrb[21].mxu0  ;;  %v3661_v61 = vmul.f32 0.25, %v3652_v45 }
 0x63e   :  { %v3655_v5 = vpop.f32.mrb[22].mxu0 }
 0x63f   :  { %v5415_v20 = vpop.f32.mrb[23].mxu0  ;;  %v3671_v52 = vsel %vm1314_vm3, %v3661_v61, -inf }
 0x640   :  { %v3609_v46 = vpop.f32.mrb[24].mxu1 }
 0x641   :  { %v5408_v56 = vpop.f32.mrb[25].mxu1  ;;  %v3660_v0 = vmul.f32 0.25, %v3609_v46 }
 0x642   :  { %v3612_v28 = vpop.f32.mrb[26].mxu1 }
 0x643   :  { %v5409_v50 = vpop.f32.mrb[27].mxu1  ;;  %v3668_v39 = vsel %vm1314_vm3, %v3660_v0, -inf }
 0x656   :  { %v4022_v17 = vpop.trf.xlu1 }
 0x658   :  { %v4038_v22 = vpop.trf.xlu0 }
 0x665   :  { %4046 = vxpose.xlu1.c.b16.start.end [1/1] (short) (narrow) %v3942_v48, 16 }
 0x669   :  { %4062 = vxpose.xlu0.c.b16.start.end [1/1] (short) (narrow) %v4010_v54, 16 }
 0x672   :  { %3672 = vmax.xlane.f32.xlu1 %v3671_v52 }
 0x676   :  { %3669 = vmax.xlane.f32.xlu0 %v3668_v39 }
 0x69f   :  { %4078 = vxpose.xlu1.c.b16.start.end [1/1] (short) (narrow) %v3925_v55, 16 }
 0x6a3   :  { %4094 = vxpose.xlu0.c.b16.start.end [1/1] (short) (narrow) %v3993_v23, 16  ;;  %4110 = vxpose.xlu1.c.b16.start.end [1/1] (short) (narrow) %v3943_v26, 16 }
 0x6a7   :  { %4126 = vxpose.xlu0.c.b16.start.end [1/1] (short) (narrow) %v4011_v30, 16  ;;  %4142 = vxpose.xlu1.c.b16.start.end [1/1] (short) (narrow) %v3934_v31, 16 }
 0x6ab   :  { %4158 = vxpose.xlu0.c.b16.start.end [1/1] (short) (narrow) %v4002_v2, 16  ;;  %4174 = vxpose.xlu1.c.b16.start.end [1/1] (short) (narrow) %v3944_v3, 16 }
 0x6af   :  { %4190 = vxpose.xlu0.c.b16.start.end [1/1] (short) (narrow) %v4012_v4, 16  ;;  %4206 = vxpose.xlu1.c.b16.start.end [1/1] (short) (narrow) %v3941_v6, 16 }
 0x6b3   :  { %4222 = vxpose.xlu0.c.b16.start.end [1/1] (short) (narrow) %v4009_v7, 16 }
 0x6c5   :  { %v3667_v9 = vpop.xlane.xlu1 %3666 }
 0x6c6   :  { %v3675_v12 = vsub.f32 %v3659_v38, %v3667_v9 }
 0x6c8   :  { %v3680_v14 = vmul.f32 1.442695, %v3675_v12 }
 0x6c9   :  { %v3664_v19 = vpop.xlane.xlu0 %3663 }
 0x6ca   :  { %5555 = vpow2.f32 %v3680_v14  ;;  %v3674_v33 = vsub.f32 %v3658_v59, %v3664_v19 }
 0x6cb   :  { %v4054_v34 = vpop.trf.xlu1 }
 0x6cc   :  { %v3678_v62 = vmul.f32 1.442695, %v3674_v33 }
 0x6ce   :  { %5557 = vpow2.f32 %v3678_v62 }
 0x6cf   :  { %v4070_v36 = vpop.trf.xlu0 }
 0x6d4   :  { %v5556_v8 = vpop.eup %5555 }
 0x6d5   :  { %v3689_v18 = vsel %vm1314_vm3, %v5556_v8, 0.0 }
 0x6d6   :  { %3690 = vadd.xlane.f32.xlu0 %v3689_v18 }
 0x6d8   :  { %v5558_v35 = vpop.eup %5557 }
 0x6d9   :  { %v3686_v58 = vsel %vm1314_vm3, %v5558_v35, 0.0 }
 0x6da   :  { %3687 = vadd.xlane.f32.xlu1 %v3686_v58 }
 0x6ff   :  { %v3673_v29 = vpop.xlane.xlu1 %3672 }
 0x700   :  { %v3677_v53 = vsub.f32 %v3661_v61, %v3673_v29  ;;  %v4013_v61 = vcombine.high %v4009_v7, %v5581_v1 }
 0x702   :  { %v3684_v63 = vmul.f32 1.442695, %v3677_v53 }
 0x703   :  { %v3670_v38 = vpop.xlane.xlu0 %3669 }
 0x704   :  { %5559 = vpow2.f32 %v3684_v63  ;;  %v3676_v11 = vsub.f32 %v3660_v0, %v3670_v38  ;;  %v3945_v0 = vcombine.high %v3941_v6, %v5581_v1 }
 0x705   :  { %v4086_v10 = vpop.trf.xlu1 }
 0x706   :  { %v3682_v43 = vmul.f32 1.442695, %v3676_v11  ;;  %v4270_v51 = vcombine.low %v4022_v17, %v4086_v10 }
 0x708   :  { %5561 = vpow2.f32 %v3682_v43  ;;  %v6261_v42 = vrot.slane %v4270_v51, %v5731_v37 }
 0x709   :  { %v4102_v44 = vpop.trf.xlu0  ;;  %v4118_v59 = vpop.trf.xlu1 }
 0x70a   :  { %v4278_v60 = vcombine.low %v4054_v34, %v4118_v59  ;;  %v4320_v57 = vcombine.low %v4038_v22, %v4102_v44 }
 0x70c   :  { %v6264_v27 = vrot.slane %v4278_v60, %v5731_v37  ;;  %v4327_v56 = vrot.slane %v4320_v57, %v5731_v37 }
 0x70d   :  { %v4134_v45 = vpop.trf.xlu0  ;;  %v4150_v39 = vpop.trf.xlu1 }
 0x70e   :  { %v6266_v24 = vpop.eup %5559  ;;  %v4302_v5 = vcombine.low %v6261_v42, %v6264_v27  ;;  %v4328_v20 = vcombine.low %v4070_v36, %v4134_v45 }
 0x70f   :  { %v3695_v46 = vsel %vm1314_vm3, %v6266_v24, 0.0 }
 0x710   :  { %v4335_v28 = vrot.slane %v4328_v20, %v5731_v37  ;;  %3696 = vadd.xlane.f32.xlu0 %v3695_v46  ;;  %v4309_v38 = vrot.slane %v4302_v5, %v5737_v49 }
 0x711   :  { %v4166_v52 = vpop.trf.xlu0  ;;  %v4182_v55 = vpop.trf.xlu1 }
 0x712   :  { %v5562_v50 = vpop.eup %5561  ;;  %v4352_v48 = vcombine.low %v4327_v56, %v4335_v28 }
 0x713   :  { %v3692_v54 = vsel %vm1314_vm3, %v5562_v50, 0.0 }
 0x714   :  { %3693 = vadd.xlane.f32.xlu1 %v3692_v54  ;;  %v4359_v62 = vrot.slane %v4352_v48, %v5737_v49 }
 0x715   :  { %v4198_v1 = vpop.trf.xlu0 }
 0x719   :  { %v4230_v23 = vpop.trf.xlu0 }
 0x71a   :  { %v4336_v4 = vcombine.low %v4166_v52, %v4230_v23 }
 0x71c   :  { %v4343_v17 = vrot.slane %v4336_v4, %v5731_v37 }
 0x73d   :  { %4254 = vxpose.xlu0.c.b16.start.end [1/1] (short) (narrow) %v4013_v61, 16 }
 0x741   :  { %4238 = vxpose.xlu1.c.b16.start.end [1/1] (short) (narrow) %v3945_v0, 16  ;;  %2255 = vxpose.xlu0.b32.start [1/2] (short) (narrow) %v6200_v21, 8  ;;  %v4214_v21 = vpop.trf.xlu1 }
 0x742   :  { %v4286_v22 = vcombine.low %v4150_v39, %v4214_v21 }
 0x745   :  { %2256 = vxpose.xlu0.b32.end [2/2] (short) (narrow) %v6202_v13, 8 }
 0x749   :  { %2287 = vxpose.xlu0.b32.start [1/2] (short) (narrow) %v6238_v40, 8 }
 0x74b   :  { %2223 = vxpose.xlu1.b32.start [1/2] (short) (narrow) %v6196_v41, 8 }
 0x74d   :  { %2288 = vxpose.xlu0.b32.end [2/2] (short) (narrow) %v6240_v32, 8 }
 0x74f   :  { %2224 = vxpose.xlu1.b32.end [2/2] (short) (narrow) %v6198_v47, 8 }
 0x753   :  { %2319 = vxpose.xlu1.b32.start [1/2] (short) (narrow) %v6207_v25, 8 }
 0x757   :  { %2320 = vxpose.xlu1.b32.end [2/2] (short) (narrow) %v6217_v15, 8 }
 0x763   :  { %v3691_v26 = vpop.xlane.xlu0 %3690 }
 0x764   :  { %5563 = vrcp.f32 %v3691_v26 }
 0x767   :  { %v3688_v13 = vpop.xlane.xlu1 %3687 }
 0x768   :  { %5565 = vrcp.f32 %v3688_v13 }
 0x76e   :  { %v5564_v40 = vpop.eup %5563 }
 0x76f   :  { %v3703_v41 = vmul.f32 %v5564_v40, %v5556_v8  ;;  %v4293_v8 = vrot.slane %v4286_v22, %v5731_v37 }
 0x771   :  { %v3707_v30 = vpack.c.bf16 %v3703_v41, %v3703_v41 }
 0x772   :  { %v5566_v32 = vpop.eup %5565 }
 0x773   :  { %v4433_v47 = vsel %vm1314_vm3, %v3707_v30, 0  ;;  %v3702_v31 = vmul.f32 %v5566_v32, %v5558_v35 }
 0x774   :  { %5423 = vmatpush3.bf16.xpose.msra.mxu0 %v4433_v47 }
 0x775   :  { %v3706_v25 = vpack.c.bf16 %v3702_v31, %v3702_v31  ;;  %5434 = vmatprep.subr.bf16.mxu0 %v5582_v16 }
 0x777   :  { %v4386_v15 = vsel %vm1314_vm3, %v3706_v25, 0 }
 0x778   :  { %5417 = vmatpush3.bf16.xpose.msra.mxu1 %v4386_v15 }
 0x779   :  { %5428 = vmatprep.subr.bf16.mxu1 %v5582_v16 }
 0x79d   :  { %v3697_v2 = vpop.xlane.xlu0 %3696 }
 0x79e   :  { %5567 = vrcp.f32 %v3697_v2 }
 0x7a1   :  { %v3694_v3 = vpop.xlane.xlu1 %3693 }
 0x7a2   :  { %5569 = vrcp.f32 %v3694_v3 }
 0x7a3   :  { %v4262_v6 = vpop.trf.xlu0 }
 0x7a4   :  { %v4344_v7 = vcombine.low %v4198_v1, %v4262_v6 }
 0x7a6   :  { %v4351_v9 = vrot.slane %v4344_v7, %v5731_v37 }
 0x7a7   :  { %v4246_v12 = vpop.trf.xlu1 }
 0x7a8   :  { %v4360_v14 = vcombine.low %v4343_v17, %v4351_v9  ;;  %v4294_v19 = vcombine.low %v4182_v55, %v4246_v12  ;;  %v5568_v33 = vpop.eup %5567 }
 0x7a9   :  { %v3705_v63 = vmul.f32 %v5568_v33, %v6266_v24 }
 0x7aa   :  { %v4367_v18 = vrot.slane %v4360_v14, %v5737_v49  ;;  %v4301_v35 = vrot.slane %v4294_v19, %v5731_v37 }
 0x7ab   :  { %v3709_v60 = vpack.c.bf16 %v3705_v63, %v3705_v63 }
 0x7ac   :  { %v5570_v58 = vpop.eup %5569  ;;  %v4368_v34 = vcombine.low %v4359_v62, %v4367_v18  ;;  %v4369_v36 = vcombine.high %v4359_v62, %v4367_v18  ;;  %v4310_v29 = vcombine.low %v4293_v8, %v4301_v35 }
 0x7ad   :  { %v3704_v53 = vmul.f32 %v5570_v58, %v5562_v50  ;;  %v4527_v42 = vsel %vm1314_vm3, %v3709_v60, 0 }
 0x7ae   :  { %v4317_v11 = vrot.slane %v4310_v29, %v5737_v49  ;;  %v4374_v44 = vshrl.u32 %v4368_v34, 16  ;;  %v4380_v59 = vshrl.u32 %v4369_v36, 16 }
 0x7af   :  { %v3708_v51 = vpack.c.bf16 %v3704_v53, %v3704_v53 }
 0x7b0   :  { %v4318_v10 = vcombine.low %v4309_v38, %v4317_v11  ;;  %v4319_v43 = vcombine.high %v4309_v38, %v4317_v11 }
 0x7b1   :  { %v4480_v24 = vsel %vm1314_vm3, %v3708_v51, 0  ;;  %v5523_v51 = vld [vmem:[%s6474_s3] sm:$0xff]  }
 0x7b2   :  { %v4372_v57 = vpack.i.b16 %v4368_v34, %v4318_v10  ;;  %v4373_v45 = vshrl.u32 %v4318_v10, 16  ;;  %v4378_v20 = vpack.i.b16 %v4369_v36, %v4319_v43  ;;  %v4379_v46 = vshrl.u32 %v4319_v43, 16 }
 0x7b4   :  { %5419 = vmatmul.mubr.msk.bf16.vlgmr.msra.gmra.mrb[28].mxu1 %vm1314_vm3, %v4372_v57  ;;  %v4375_v56 = vpack.i.b16 %v4374_v44, %v4373_v45  ;;  %v4381_v28 = vpack.i.b16 %v4380_v59, %v4379_v46  ;;  %v5524_v44 = vld [vmem:[%s6474_s3 + $0x8] sm:$0xff]  }
 0x7b5   :  { %5429 = vmatpush3.bf16.xpose.msra.mxu1 %v4480_v24  ;;  %5430 = vmatprep.mubr.msk.bf16.mxu1 %vm5589_vm1, %v5582_v16 }
 0x7b6   :  { %5425 = vmatmul.mubr.msk.bf16.vlgmr.msra.gmra.mrb[24].mxu0 %vm1314_vm3, %v4375_v56  ;;  %5464 = vmatprep.subr.bf16.mxu1 %v5582_v16 }
 0x7b7   :  { %5435 = vmatpush3.bf16.xpose.msra.mxu0 %v4527_v42  ;;  %5436 = vmatprep.mubr.msk.bf16.mxu0 %vm5589_vm1, %v5582_v16 }
 0x7b8   :  { %5440 = vmatprep.subr.bf16.mxu0 %v5582_v16 }
 0x7bc   :  { %5431 = vmatmul.mubr.msk.bf16.vlgmr.msra.gmra.mrb[32].mxu1 %vm1314_vm3, %v4378_v20 }
 0x7bd   :  { %5480 = vmatprep.mubr.msk.bf16.mxu1 %vm5589_vm1, %v5582_v16 }
 0x7be   :  { %5437 = vmatmul.mubr.msk.bf16.vlgmr.msra.gmra.mrb[28].mxu0 %vm1314_vm3, %v4381_v28 }
 0x7bf   :  { %5448 = vmatprep.mubr.msk.bf16.mxu0 %vm5589_vm1, %v5582_v16  ;;  %5441 = vmatpush3.bf16.msra.mxu0 %v5523_v51 }
 0x7c0   :  { %5442 = vmatprep.subr.bf16.mxu0 %v5582_v16 }
 0x7c1   :  { %v2271_v27 = vpop.trf.xlu0 }
 0x7c3   :  { %5443 = vmatpush3.bf16.msra.mxu0 %v5524_v44 }
 0x7c4   :  { %5444 = vmatprep.subr.bf16.mxu0 %v5582_v16 }
 0x7c9   :  { %v2303_v50 = vpop.trf.xlu0 }
 0x7cb   :  { %v2239_v5 = vpop.trf.xlu1 }
 0x7cc   :  { %v2351_v54 = vcombine.low %v2239_v5, %v2303_v50  ;;  %v2352_v61 = vcombine.high %v2239_v5, %v2303_v50 }
 0x7ce   :  { %v2359_v39 = vrot.slane %v2351_v54, %v5731_v37  ;;  %v2366_v1 = vrot.slane %v2352_v61, %v5731_v37 }
 0x7d3   :  { %v2335_v48 = vpop.trf.xlu1 }
 0x7d4   :  { %v2367_v0 = vcombine.low %v2271_v27, %v2335_v48  ;;  %v2368_v52 = vcombine.high %v2271_v27, %v2335_v48 }
 0x7d6   :  { %v2375_v55 = vrot.slane %v2367_v0, %v5731_v37  ;;  %v2382_v23 = vrot.slane %v2368_v52, %v5731_v37 }
 0x7d8   :  { %v2383_v26 = vcombine.low %v2359_v39, %v2375_v55  ;;  %v2384_v13 = vcombine.high %v2359_v39, %v2375_v55  ;;  %v2399_v40 = vcombine.low %v2366_v1, %v2382_v23  ;;  %v2400_v41 = vcombine.high %v2366_v1, %v2382_v23 }
 0x7da   :  { %v2391_v2 = vrot.slane %v2383_v26, %v5737_v49  ;;  %v2398_v3 = vrot.slane %v2384_v13, %v5737_v49  ;;  %v2407_v4 = vrot.slane %v2399_v40, %v5737_v49  ;;  %v2414_v6 = vrot.slane %v2400_v41, %v5737_v49  ;;  %v5525_v41 = vld [vmem:[%s6474_s3 + $0x10] sm:$0xff]  }
 0x7db   :  { %5445 = vmatpush3.bf16.msra.mxu0 %v5525_v41 }
 0x7dc   :  { %v2419_v22 = vcombine.low %v2391_v2, %v2398_v3  ;;  %v5252_v9 = vcombine.high %v2391_v2, %v2398_v3  ;;  %v2435_v12 = vcombine.low %v2407_v4, %v2414_v6  ;;  %v5253_v14 = vcombine.high %v2407_v4, %v2414_v6  ;;  %5446 = vmatprep.subr.bf16.mxu0 %v5582_v16 }
 0x7de   :  { %v2426_v58 = vrot.slane %v2419_v22, %v5731_v37  ;;  %v2434_v34 = vrot.slane %v5252_v9, %v5731_v37  ;;  %v2442_v36 = vrot.slane %v2435_v12, %v5731_v37  ;;  %v2450_v29 = vrot.slane %v5253_v14, %v5731_v37 }
 0x7e0   :  { %v2451_v63 = vcombine.low %v2426_v58, %v2434_v34  ;;  %v2467_v38 = vcombine.low %v2442_v36, %v2450_v29  ;;  %v2452_v55 = vcombine.high %v2426_v58, %v2434_v34  ;;  %v2468_v23 = vcombine.high %v2442_v36, %v2450_v29 }
 0x7e2   :  { %v6330_v11 = vrot.slane %v2451_v63, %v5737_v49  ;;  %v6333_v10 = vrot.slane %v2467_v38, %v5737_v49 }
 0x7e4   :  { %v2483_v43 = vcombine.low %v6330_v11, %v6333_v10 }
 0x887   :  { %v4422_v21 = vpop.f32.mrb[28].mxu1 }
 0x888   :  { %4570 = vxpose.xlu0.b32.start [1/2] (short) (narrow) %v4422_v21, 8  ;;  %v5420_v30 = vpop.f32.mrb[29].mxu1 }
 0x889   :  { %v4425_v32 = vpop.f32.mrb[30].mxu1  ;;  %v4469_v47 = vpop.f32.mrb[24].mxu0 }
 0x88a   :  { %4602 = vxpose.xlu1.b32.start [1/2] (short) (narrow) %v4469_v47, 8  ;;  %v5421_v31 = vpop.f32.mrb[31].mxu1  ;;  %v5426_v25 = vpop.f32.mrb[25].mxu0 }
 0x88b   :  { %v4472_v15 = vpop.f32.mrb[26].mxu0  ;;  %v2466_v25 = vrot.slane %v2452_v55, %v5737_v49 }
 0x88c   :  { %v5427_v7 = vpop.f32.mrb[27].mxu0  ;;  %4571 = vxpose.xlu0.b32.end [2/2] (short) (narrow) %v4425_v32, 8 }
 0x88e   :  { %4603 = vxpose.xlu1.b32.end [2/2] (short) (narrow) %v4472_v15, 8  ;;  %v2482_v15 = vrot.slane %v2468_v23, %v5737_v49 }
 0x88f   :  { %v4516_v17 = vpop.f32.mrb[32].mxu1 }
 0x890   :  { %4634 = vxpose.xlu0.b32.start [1/2] (short) (narrow) %v4516_v17, 8  ;;  %v5432_v19 = vpop.f32.mrb[33].mxu1  ;;  %v2485_v12 = vcombine.low %v2466_v25, %v2482_v15 }
 0x891   :  { %v4519_v33 = vpop.f32.mrb[34].mxu1  ;;  %v4563_v62 = vpop.f32.mrb[28].mxu0  ;;  %v2484_v19 = vcombine.high %v6330_v11, %v6333_v10  ;;  %v5268_v11 = vld [vmem:[%s6475_s4] ss:$0 sm:$0xff] }
 0x892   :  { %4666 = vxpose.xlu1.b32.start [1/2] (short) (narrow) %v4563_v62, 8  ;;  %v5433_v8 = vpop.f32.mrb[35].mxu1  ;;  %v5438_v18 = vpop.f32.mrb[29].mxu0 }
 0x893   :  { %v4566_v35 = vpop.f32.mrb[30].mxu0 }
 0x894   :  { %v5439_v53 = vpop.f32.mrb[31].mxu0  ;;  %4635 = vxpose.xlu0.b32.end [2/2] (short) (narrow) %v4519_v33, 8 }
 0x896   :  { %4667 = vxpose.xlu1.b32.end [2/2] (short) (narrow) %v4566_v35, 8 }
 0x908   :  { %v4586_v59 = vpop.trf.xlu0 }
 0x90a   :  { %v4618_v60 = vpop.trf.xlu1 }
 0x910   :  { %v4650_v57 = vpop.trf.xlu0 }
 0x911   :  { %v4698_v45 = vcombine.low %v4586_v59, %v4650_v57  ;;  %v4699_v20 = vcombine.high %v4586_v59, %v4650_v57 }
 0x912   :  { %v4682_v46 = vpop.trf.xlu1 }
 0x913   :  { %v4714_v24 = vcombine.low %v4618_v60, %v4682_v46  ;;  %v4715_v56 = vcombine.high %v4618_v60, %v4682_v46  ;;  %v4706_v28 = vrot.slane %v4698_v45, %v5731_v37  ;;  %v4713_v42 = vrot.slane %v4699_v20, %v5731_v37 }
 0x915   :  { %v4722_v27 = vrot.slane %v4714_v24, %v5731_v37  ;;  %v4729_v5 = vrot.slane %v4715_v56, %v5731_v37 }
 0x917   :  { %v4730_v50 = vcombine.low %v4706_v28, %v4722_v27  ;;  %v4731_v48 = vcombine.high %v4706_v28, %v4722_v27  ;;  %v4746_v54 = vcombine.low %v4713_v42, %v4729_v5  ;;  %v4747_v61 = vcombine.high %v4713_v42, %v4729_v5  ;;  %v5579_v27 = vld [vmem:[%s6472_s0] sm:$0xff] }
 0x919   :  { %v4738_v0 = vrot.slane %v4730_v50, %v5737_v49  ;;  %v4745_v52 = vrot.slane %v4731_v48, %v5737_v49  ;;  %v4754_v39 = vrot.slane %v4746_v54, %v5737_v49  ;;  %v4761_v1 = vrot.slane %v4747_v61, %v5737_v49  ;;  %v5580_v54 = vld [vmem:[%s6472_s0 + $0x8] sm:$0xff] }
 0x91b   :  { %v4766_v21 = vcombine.low %v4738_v0, %v4745_v52  ;;  %v5266_v26 = vcombine.high %v4738_v0, %v4745_v52  ;;  %v4782_v13 = vcombine.low %v4754_v39, %v4761_v1  ;;  %v5267_v40 = vcombine.high %v4754_v39, %v4761_v1 }
 0x91d   :  { %v4773_v30 = vrot.slane %v4766_v21, %v5731_v37  ;;  %v4781_v32 = vrot.slane %v5266_v26, %v5731_v37  ;;  %v4789_v47 = vrot.slane %v4782_v13, %v5731_v37  ;;  %v4797_v31 = vrot.slane %v5267_v40, %v5731_v37  ;;  %v5526_v37 = vld [vmem:[%s6474_s3 + $0x18] sm:$0xff]   ;;  %s5592_s3 = smov 48  }
 0x91e   :  { %5447 = vmatpush3.bf16.msra.mxu0 %v5526_v37 }
 0x91f   :  { %v4799_v2 = vcombine.high %v4773_v30, %v4781_v32  ;;  %v4815_v3 = vcombine.high %v4789_v47, %v4797_v31  ;;  %v4798_v4 = vcombine.low %v4773_v30, %v4781_v32  ;;  %v4814_v6 = vcombine.low %v4789_v47, %v4797_v31  ;;  %5452 = vmatprep.subr.bf16.mxu0 %v5582_v16  ;;  %v5527_v32 = vld [vmem:[%s6476_s5] sm:$0xff]   ;;  %v5528_v47 = vld [vmem:[%s6476_s5 + $0x8] sm:$0xff]   ;;  %v5529_v31 = vld [vmem:[%s6476_s5 + $0x10] sm:$0xff]  }
 0x921   :  { %v4813_v7 = vrot.slane %v4799_v2, %v5737_v49  ;;  %v4829_v17 = vrot.slane %v4815_v3, %v5737_v49  ;;  %v4806_v22 = vrot.slane %v4798_v4, %v5737_v49  ;;  %v4822_v9 = vrot.slane %v4814_v6, %v5737_v49  ;;  %v5532_v2 = vld [vmem:[%s6477_s7 + $0x8] sm:$0xff]   ;;  %v5533_v3 = vld [vmem:[%s6477_s7 + $0x10] sm:$0xff]   ;;  %v5534_v4 = vld [vmem:[%s6477_s7 + $0x18] sm:$0xff]  }
 0x922   :  { %v2486_v49 = vcombine.high %v2466_v25, %v2482_v15  ;;  %v5530_v25 = vld [vmem:[%s6476_s5 + $0x18] sm:$0xff]   ;;  %v5531_v15 = vld [vmem:[%s6477_s7] sm:$0xff]  }
 0x923   :  { %v4832_v14 = vcombine.low %v4813_v7, %v4829_v17  ;;  %v4831_v33 = vcombine.high %v4806_v22, %v4822_v9  ;;  %v4830_v62 = vcombine.low %v4806_v22, %v4822_v9  ;;  %v4833_v35 = vcombine.high %v4813_v7, %v4829_v17  ;;  %5465 = vmatpush3.bf16.msra.mxu1 %v5531_v15  ;;  %v5535_v6 = vld [vmem:[%s6477_s7 + $0x20] sm:$0xff]   ;;  %v5536_v7 = vld [vmem:[%s6477_s7 + $0x28] sm:$0xff]  }
 0x924   :  { %5466 = vmatprep.subr.bf16.mxu1 %v5582_v16 }
 0x925   :  { %v5501_v8 = vpack.i.bf16 %v4832_v14, %v2485_v12  ;;  %v5496_v18 = vpack.i.bf16 %v4831_v33, %v2484_v19  ;;  %v5506_v58 = vpack.i.bf16 %v4833_v35, %v2486_v49  ;;  %v5274_v33 = vld [vmem:[%s6478_s9] ss:$0 sm:$0xff] }
 0x926   :  { %v5275_v49 = vld [vmem:[%s6479_s10] ss:$0 sm:$0xff] }
 0x927   :  { %5502 = vrot.lane.b32.xlu1 %v5501_v8, %s5590_s23  ;;  %5497 = vrot.lane.b32.xlu0 %v5496_v18, %s5591_s24 }
 0x928   :  { %5467 = vmatpush3.bf16.msra.mxu1 %v5532_v2 }
 0x929   :  { %5468 = vmatprep.subr.bf16.mxu1 %v5582_v16 }
 0x92b   :  { %5507 = vrot.lane.b32.xlu1 %v5506_v58, %s5592_s3 }
 0x92c   :  { %5469 = vmatpush3.bf16.msra.mxu1 %v5533_v3  ;;  %v5292_v3 = vld [vmem:[%s6483_s12] ss:$0 sm:$0xff] }
 0x92d   :  { %5470 = vmatprep.subr.bf16.mxu1 %v5582_v16 }
 0x930   :  { %5471 = vmatpush3.bf16.msra.mxu1 %v5534_v4 }
 0x931   :  { %5472 = vmatprep.subr.bf16.mxu1 %v5582_v16 }
 0x934   :  { %5473 = vmatpush3.bf16.msra.mxu1 %v5535_v6 }
 0x935   :  { %5474 = vmatprep.subr.bf16.mxu1 %v5582_v16 }
 0x938   :  { %5475 = vmatpush3.bf16.msra.mxu1 %v5536_v7 }
 0x939   :  { %5476 = vmatprep.subr.bf16.mxu1 %v5582_v16 }
 0x999   :  { %v5503_v34 = vpop.permute.xlu1 %5502  ;;  %v5498_v36 = vpop.permute.xlu0 %5497 }
 0x99a   :  { %v5500_v29 = vunpack.i.h.bf16 %v5498_v36  ;;  %v5499_v53 = vunpack.i.l.bf16 %v5498_v36  ;;  %v5505_v63 = vunpack.i.h.bf16 %v5503_v34  ;;  %v5504_v38 = vunpack.i.l.bf16 %v5503_v34 }
 0x99c   :  { %v2499_v51 = vsel %vm1137_vm2, %v2483_v43, %v5499_v53  ;;  %v4846_v44 = vsel %vm1137_vm2, %v4830_v62, %v5500_v29  ;;  %v5537_v53 = vld [vmem:[%s6477_s7 + $0x30] sm:$0xff]  }
 0x99d   :  { %v5508_v59 = vpop.permute.xlu1 %5507  ;;  %v2501_v45 = vsel %vm2500_vm4, %v2499_v51, %v5504_v38  ;;  %v4847_v20 = vsel %vm2500_vm4, %v4846_v44, %v5505_v63  ;;  %5477 = vmatpush3.bf16.msra.mxu1 %v5537_v53  ;;  %v5538_v63 = vld [vmem:[%s6477_s7 + $0x38] sm:$0xff]   ;;  %v5276_v38 = vld [vmem:[%s6480_s6] ss:$0 sm:$0xff] }
 0x99e   :  { %v5510_v60 = vunpack.i.h.bf16 %v5508_v59  ;;  %v5509_v57 = vunpack.i.l.bf16 %v5508_v59  ;;  %5478 = vmatprep.subr.bf16.mxu1 %v5582_v16 }
 0x9a0   :  { %v2503_v46 = vsel %vm2502_vm5, %v2501_v45, %v5509_v57  ;;  %v4848_v24 = vsel %vm2502_vm5, %v4847_v20, %v5510_v60 }
 0x9a1   :  { %v4849_v56 = vpack.c.bf16 %v4848_v24, %v2503_v46  ;;  %5479 = vmatpush3.bf16.msra.mxu1 %v5538_v63 }
 0x9a3   :  { %5449 = vmatmul.mubr.msk.bf16.vlgmr.msra.gmra.mrb[32].mxu0 %vm108_vm0, %v4849_v56 }
 0x9a4   :  { %5460 = vmatprep.mubr.msk.bf16.mxu0 %vm5589_vm1, %v5582_v16  ;;  %5453 = vmatpush3.bf16.msra.mxu0 %v5527_v32 }
 0x9a5   :  { %5454 = vmatprep.subr.bf16.mxu0 %v5582_v16 }
 0x9a8   :  { %5455 = vmatpush3.bf16.msra.mxu0 %v5528_v47 }
 0x9a9   :  { %5456 = vmatprep.subr.bf16.mxu0 %v5582_v16 }
 0x9ac   :  { %5457 = vmatpush3.bf16.msra.mxu0 %v5529_v31 }
 0x9ad   :  { %5458 = vmatprep.subr.bf16.mxu0 %v5582_v16  ;;  %v5282_v16 = vld [vmem:[%s6481_s8] ss:$0 sm:$0xff] }
 0x9b0   :  { %5459 = vmatpush3.bf16.msra.mxu0 %v5530_v25  ;;  %v5291_v25 = vld [vmem:[%s6482_s11] ss:$0 sm:$0xff] }
 0xa76   :  { %v4926_v10 = vpop.f32.mrb[32].mxu0 }
 0xa77   :  { %v4927_v43 = vadd.f32 %v5268_v11, %v4926_v10  ;;  %v5450_v28 = vpop.f32.mrb[33].mxu0 }
 0xa78   :  { %v4929_v42 = vpop.f32.mrb[34].mxu0 }
 0xa79   :  { %v4933_v5 = vadd.f32 %v5579_v27, %v4927_v43  ;;  %v4930_v50 = vadd.f32 %v5268_v11, %v4929_v42  ;;  %v5451_v48 = vpop.f32.mrb[35].mxu0 }
 0xa7b   :  { %v4934_v61 = vadd.f32 %v5580_v54, %v4930_v50  ;;  %v4937_v0 = vsel %vm108_vm0, %v4933_v5, 0.0 }
 0xa7c   :  { %4938 = vadd.xlane.f32.xlu1 %v4937_v0 }
 0xa7d   :  { %v4940_v52 = vsel %vm108_vm0, %v4934_v61, 0.0 }
 0xa7e   :  { %4941 = vadd.xlane.f32.xlu0 %v4940_v52 }
 0xb09   :  { %v4939_v39 = vpop.xlane.xlu1 %4938 }
 0xb0a   :  { %v4944_v1 = vmul.f32 0.015625, %v4939_v39 }
 0xb0b   :  { %v4942_v55 = vpop.xlane.xlu0 %4941 }
 0xb0c   :  { %v4946_v23 = vsub.f32 %v4933_v5, %v4944_v1  ;;  %v4945_v21 = vmul.f32 0.015625, %v4942_v55 }
 0xb0e   :  { %v4947_v26 = vsub.f32 %v4934_v61, %v4945_v21  ;;  %v4948_v13 = vmul.f32 %v4946_v23, %v4946_v23 }
 0xb10   :  { %v4950_v40 = vsel %vm108_vm0, %v4948_v13, 0.0  ;;  %v4949_v41 = vmul.f32 %v4947_v26, %v4947_v26 }
 0xb11   :  { %4951 = vadd.xlane.f32.xlu0 %v4950_v40 }
 0xb12   :  { %v4953_v30 = vsel %vm108_vm0, %v4949_v41, 0.0 }
 0xb13   :  { %4954 = vadd.xlane.f32.xlu1 %v4953_v30 }
 0xb9e   :  { %v4952_v17 = vpop.xlane.xlu0 %4951 }
 0xb9f   :  { %v4956_v22 = vmul.f32 0.015625, %v4952_v17 }
 0xba0   :  { %v4955_v9 = vpop.xlane.xlu1 %4954 }
 0xba1   :  { %v4958_v37 = vadd.f32 1e-05, %v4956_v22  ;;  %v4957_v12 = vmul.f32 0.015625, %v4955_v9 }
 0xba3   :  { %5571 = vrsqrt.f32 %v4958_v37  ;;  %v4959_v14 = vadd.f32 1e-05, %v4957_v12 }
 0xba5   :  { %5573 = vrsqrt.f32 %v4959_v14 }
 0xbad   :  { %v5572_v19 = vpop.eup %5571 }
 0xbae   :  { %v4962_v62 = vmul.f32 %v5572_v19, %v4946_v23 }
 0xbaf   :  { %v5574_v8 = vpop.eup %5573 }
 0xbb0   :  { %v4970_v18 = vmul.f32 %v5274_v33, %v4962_v62  ;;  %v4963_v35 = vmul.f32 %v5574_v8, %v4947_v26 }
 0xbb2   :  { %v4971_v58 = vmul.f32 %v5274_v33, %v4963_v35  ;;  %v4978_v34 = vadd.f32 %v5275_v49, %v4970_v18 }
 0xbb4   :  { %v4979_v36 = vadd.f32 %v5275_v49, %v4971_v58 }
 0xbb6   :  { %v4980_v29 = vpack.c.bf16 %v4979_v36, %v4978_v34 }
 0xbb8   :  { %5461 = vmatmul.mubr.msk.bf16.vlgmr.msra.gmra.mrb[36].mxu0 %vm108_vm0, %v4980_v29 }
 0xc8b   :  { %v5057_v51 = vpop.f32.mrb[36].mxu0 }
 0xc8c   :  { %v5058_v44 = vadd.f32 %v5276_v38, %v5057_v51  ;;  %v5462_v59 = vpop.f32.mrb[37].mxu0 }
 0xc8d   :  { %v5060_v60 = vpop.f32.mrb[38].mxu0 }
 0xc8e   :  { %v5061_v57 = vadd.f32 %v5276_v38, %v5060_v60  ;;  %v5463_v45 = vpop.f32.mrb[39].mxu0  ;;  %v5064_v20 = vmax.f32 %v5058_v44, 0.0 }
 0xc90   :  { %v5065_v46 = vmax.f32 %v5061_v57, 0.0 }
 0xc92   :  { %v5066_v24 = vpack.c.bf16 %v5065_v46, %v5064_v20 }
 0xc94   :  { %5481 = vmatmul.mubr.bf16.vlgmr.msra.gmra.mrb[36].mxu1 %v5066_v24 }
 0xd67   :  { %v5172_v56 = vpop.f32.mrb[36].mxu1 }
 0xd68   :  { %v5173_v11 = vadd.f32 %v5282_v16, %v5172_v56  ;;  %v5482_v10 = vpop.f32.mrb[37].mxu1 }
 0xd69   :  { %v5175_v43 = vpop.f32.mrb[38].mxu1 }
 0xd6a   :  { %v5179_v28 = vadd.f32 %v5173_v11, %v4978_v34  ;;  %v5176_v42 = vadd.f32 %v5282_v16, %v5175_v43  ;;  %v5483_v27 = vpop.f32.mrb[39].mxu1 }
 0xd6c   :  { %v5180_v5 = vadd.f32 %v5176_v42, %v4979_v36  ;;  %v5183_v50 = vsel %vm108_vm0, %v5179_v28, 0.0 }
 0xd6d   :  { %5184 = vadd.xlane.f32.xlu0 %v5183_v50 }
 0xd6e   :  { %v5186_v48 = vsel %vm108_vm0, %v5180_v5, 0.0 }
 0xd6f   :  { %5187 = vadd.xlane.f32.xlu1 %v5186_v48 }
 0xdfa   :  { %v5185_v54 = vpop.xlane.xlu0 %5184 }
 0xdfb   :  { %v5189_v61 = vmul.f32 0.015625, %v5185_v54 }
 0xdfc   :  { %v5188_v0 = vpop.xlane.xlu1 %5187 }
 0xdfd   :  { %v5191_v52 = vsub.f32 %v5179_v28, %v5189_v61  ;;  %v5190_v39 = vmul.f32 0.015625, %v5188_v0 }
 0xdff   :  { %v5192_v1 = vsub.f32 %v5180_v5, %v5190_v39  ;;  %v5193_v55 = vmul.f32 %v5191_v52, %v5191_v52 }
 0xe01   :  { %v5195_v23 = vsel %vm108_vm0, %v5193_v55, 0.0  ;;  %v5194_v21 = vmul.f32 %v5192_v1, %v5192_v1 }
 0xe02   :  { %5196 = vadd.xlane.f32.xlu0 %v5195_v23 }
 0xe03   :  { %v5198_v26 = vsel %vm108_vm0, %v5194_v21, 0.0 }
 0xe04   :  { %5199 = vadd.xlane.f32.xlu1 %v5198_v26 }
 0xe8f   :  { %v5197_v13 = vpop.xlane.xlu0 %5196 }
 0xe90   :  { %v5201_v40 = vmul.f32 0.015625, %v5197_v13 }
 0xe91   :  { %v5200_v41 = vpop.xlane.xlu1 %5199 }
 0xe92   :  { %v5203_v30 = vadd.f32 1e-05, %v5201_v40  ;;  %v5202_v32 = vmul.f32 0.015625, %v5200_v41 }
 0xe94   :  { %5575 = vrsqrt.f32 %v5203_v30  ;;  %v5204_v47 = vadd.f32 1e-05, %v5202_v32 }
 0xe96   :  { %5577 = vrsqrt.f32 %v5204_v47 }
 0xe9e   :  { %v5576_v31 = vpop.eup %5575 }
 0xe9f   :  { %v5207_v15 = vmul.f32 %v5576_v31, %v5191_v52 }
 0xea0   :  { %v5578_v2 = vpop.eup %5577 }
 0xea1   :  { %v5215_v4 = vmul.f32 %v5291_v25, %v5207_v15  ;;  %v5208_v6 = vmul.f32 %v5578_v2, %v5192_v1 }
 0xea3   :  { %v5223_v7 = vadd.f32 %v5292_v3, %v5215_v4  ;;  %v5216_v17 = vmul.f32 %v5291_v25, %v5208_v6 }
 0xea5   :  { %5225 = vst.msk [vmem:[%s6484_s13] sm:$0xff] %vm108_vm0, %v5223_v7  ;;  %v5224_v22 = vadd.f32 %v5292_v3, %v5216_v17 }
 0xea7   :  { %5226 = vst.msk [vmem:[%s6484_s13 + $0x8] sm:$0xff] %vm108_vm0, %v5224_v22 }

</bundles_post_ra>
